<compile_context>
chip_gen: v5e
topology: v5e:2x2
jax: 0.10.0
libtpu: 0.0.40
codegen_flags: <defaults>
</compile_context>

<pallas_src>
import math
import itertools
import numpy as np

import jax
import jax.numpy as jnp
from jax import lax
from jax.experimental import pallas as pl
from jax.experimental.pallas import tpu as pltpu

# ------------------------- configuration (small, consistent shapes) -------------------------
B = 2
DIM = 32                      # embedding dim (C)
H = W = 8                     # input_resolution
NUM_HEADS = 2
WINDOW = 4                    # window_size (H != WINDOW -> window-partition branch in PyTorch)
MLP_RATIO = 4.0
LOCAL_CONV = 3                # local_conv_size

L = H * W
BL = B * L                    # folded batch*tokens = 128
HEAD_DIM = DIM // NUM_HEADS   # key_dim
ATTN_D = HEAD_DIM             # attn_ratio = 1  -> d = key_dim
DH = ATTN_D * NUM_HEADS       # == DIM
QKV_STEP = 2 * HEAD_DIM + ATTN_D
NWIN_TOK = WINDOW * WINDOW    # tokens per window (N)
MLP_HIDDEN = int(DIM * MLP_RATIO)
SCALE = HEAD_DIM ** (-0.5)
LN_EPS = 1e-5
BN_EPS = 1e-5
PAD = LOCAL_CONV // 2
NEG_INF = -1e30
TAPS = tuple((di, dj) for di in (-1, 0, 1) for dj in (-1, 0, 1))

# masked full-attention == windowed attention only when there is no window padding
assert H % WINDOW == 0 and W % WINDOW == 0


# ------------------------- fused Pallas kernel (whole batch, single grid step) -------------------------
def _block_kernel(x_ref, wqkv_ref, wo_ref, bq_ref, bias_ref, mw_ref,
                  w1_ref, b1_ref, w2_ref, vec_ref, o_ref):
    f32, bf16 = jnp.float32, jnp.bfloat16

    x = x_ref[...].astype(f32)                              # (BL, C)
    vec = vec_ref[...]                                       # (7, C) packed per-channel vectors
    ln1_g, ln1_b = vec[0:1], vec[1:2]
    bproj, bn_shift = vec[2:3], vec[3:4]
    ln2_g, ln2_b, b2 = vec[4:5], vec[5:6], vec[6:7]

    # ---- attention: LN1 -> per-head qkv -> masked (batch+window) softmax -> proj, + residual ----
    mu = jnp.mean(x, axis=-1, keepdims=True)
    msq = jnp.mean(x * x, axis=-1, keepdims=True)
    xn = (x - mu) * lax.rsqrt(msq - mu * mu + LN_EPS) * ln1_g + ln1_b
    xn_b = xn.astype(bf16)

    x1 = x + bproj                                           # residual + (proj bias + folded v-bias)
    for h in range(NUM_HEADS):                               # static tiny loop
        qh = jnp.dot(xn_b, wqkv_ref[0, h], preferred_element_type=f32) + bq_ref[h]   # scale folded
        kh = jnp.dot(xn_b, wqkv_ref[1, h], preferred_element_type=f32)               # k bias dropped
        vh = jnp.dot(xn_b, wqkv_ref[2, h], preferred_element_type=f32)               # v bias folded
        s = lax.dot_general(qh.astype(bf16), kh.astype(bf16), (((1,), (1,)), ((), ())),
                            preferred_element_type=f32)
        s = s + bias_ref[h].astype(f32)          # rel-pos bias in-window, -1e30 across windows/batches
        s = s - jnp.max(s, axis=-1, keepdims=True)
        p = jnp.exp(s)
        p = p * pl.reciprocal(jnp.sum(p, axis=-1, keepdims=True), approx=True)
        oh = jnp.dot(p.astype(bf16), vh.astype(bf16), preferred_element_type=f32)     # (BL, d)
        x1 = x1 + jnp.dot(oh.astype(bf16), wo_ref[h], preferred_element_type=f32)     # per-head proj

    # ---- depthwise 3x3 conv + BatchNorm(eval): 8 sublane rolls + 9 masked FMAs ----
    acc = x1 * mw_ref[TAPS.index((0, 0))]
    for ti, (di, dj) in enumerate(TAPS):
        if di == 0 and dj == 0:
            continue
        sh = (-(di * W + dj)) % BL               # result[t] = x1[t + di*W + dj]; masks kill wraps
        acc = acc + pltpu.roll(x1, sh, axis=0) * mw_ref[ti]
    x2 = acc + bn_shift

    # ---- MLP: LN2 -> fc1 -> GELU(tanh approx) -> fc2, + residual ----
    mu2 = jnp.mean(x2, axis=-1, keepdims=True)
    msq2 = jnp.mean(x2 * x2, axis=-1, keepdims=True)
    xn2 = (x2 - mu2) * lax.rsqrt(msq2 - mu2 * mu2 + LN_EPS) * ln2_g + ln2_b
    h1 = jnp.dot(xn2.astype(bf16), w1_ref[...], preferred_element_type=f32) + b1_ref[...]
    h1 = 0.5 * h1 * (1.0 + jnp.tanh(0.7978845608028654 * (h1 + 0.044715 * h1 * h1 * h1)))
    y = jnp.dot(h1.astype(bf16), w2_ref[...], preferred_element_type=f32) + b2

    o_ref[...] = (x2 + y).astype(o_ref.dtype)


def _full_spec(a):
    nd = a.ndim
    return pl.BlockSpec(a.shape, lambda i, _nd=nd: (0,) * _nd)


def tiny_vit_block(x, kparams):
    x2d = x.reshape(BL, DIM)                                 # free host-side reshape
    args = (x2d,) + tuple(kparams)
    out = pl.pallas_call(
        _block_kernel,
        out_shape=jax.ShapeDtypeStruct((BL, DIM), x.dtype),
        grid=(1,),
        in_specs=[_full_spec(a) for a in args],
        out_specs=pl.BlockSpec((BL, DIM), lambda i: (0, 0)),
        compiler_params=pltpu.CompilerParams(dimension_semantics=("arbitrary",)),
    )(*args)
    return out.reshape(B, L, DIM)


# ------------------------- host-side (one-time) parameter preparation -------------------------
def prepare_kernel_params(p):
    wqkv = np.asarray(p["wqkv"], np.float32)                 # (DIM, 3*DIM), per-head [q|k|v] blocks
    bqkv = np.asarray(p["bqkv"], np.float32)
    wproj = np.asarray(p["wproj"], np.float32)               # (DH, DIM)
    bproj = np.asarray(p["bproj"], np.float32)

    # per-head weight splits; softmax scale folded into q
    wq = np.stack([wqkv[:, h * QKV_STEP:h * QKV_STEP + HEAD_DIM] for h in range(NUM_HEADS)]) * SCALE
    wk = np.stack([wqkv[:, h * QKV_STEP + HEAD_DIM:h * QKV_STEP + 2 * HEAD_DIM]
                   for h in range(NUM_HEADS)])
    wv = np.stack([wqkv[:, h * QKV_STEP + 2 * HEAD_DIM:h * QKV_STEP + QKV_STEP]
                   for h in range(NUM_HEADS)])
    w_qkv = np.stack([wq, wk, wv])                           # (3, heads, DIM, HEAD_DIM)
    w_o = np.stack([wproj[h * ATTN_D:(h + 1) * ATTN_D, :] for h in range(NUM_HEADS)])  # (heads, d, DIM)

    b_q = np.stack([bqkv[h * QKV_STEP:h * QKV_STEP + HEAD_DIM]
                    for h in range(NUM_HEADS)])[:, None, :] * SCALE                    # (heads, 1, d)
    b_v = np.stack([bqkv[h * QKV_STEP + 2 * HEAD_DIM:h * QKV_STEP + QKV_STEP]
                    for h in range(NUM_HEADS)])                                        # (heads, d)
    bproj_fold = bproj + np.einsum("hd,hdc->c", b_v, w_o)    # softmax rows sum to 1 -> bv folds here
    # (bk contributes a per-row constant to the scores -> softmax-invariant -> dropped)

    # block-diagonal (batch x window) additive attention bias
    ab = np.asarray(p["attn_bias_win"], np.float32)          # (heads, N, N)
    t = np.arange(BL)
    bt, r, c = t // L, (t % L) // W, t % W
    win = (r // WINDOW) * (W // WINDOW) + (c // WINDOW)
    loc = (r % WINDOW) * WINDOW + (c % WINDOW)
    same = (bt[:, None] == bt[None, :]) & (win[:, None] == win[None, :])
    bias_full = np.where(same[None], ab[:, loc[:, None], loc[None, :]], NEG_INF).astype(np.float32)

    # per-tap boundary-mask * depthwise weight * BN(eval) scale, on the flattened (BL, DIM) slab
    w_dw = np.asarray(p["w_dw"], np.float32)                 # (3, 3, DIM)
    bn_scale = np.asarray(p["bn_scale"], np.float32)
    bn_shift = np.asarray(p["bn_shift"], np.float32)
    mw = np.zeros((len(TAPS), BL, DIM), np.float32)
    for ti, (di, dj) in enumerate(TAPS):
        valid = ((r + di >= 0) & (r + di < H) & (c + dj >= 0) & (c + dj < W)).astype(np.float32)
        mw[ti] = valid[:, None] * (w_dw[di + PAD, dj + PAD] * bn_scale)[None, :]

    vec = np.stack([
        np.asarray(p["ln1_g"], np.float32), np.asarray(p["ln1_b"], np.float32),
        bproj_fold, bn_shift,
        np.asarray(p["ln2_g"], np.float32), np.asarray(p["ln2_b"], np.float32),
        np.asarray(p["b2"], np.float32),
    ])                                                       # (7, DIM)

    return (
        jnp.asarray(w_qkv, jnp.bfloat16),                    # bf16 weights -> half the DMA
        jnp.asarray(w_o, jnp.bfloat16),
        jnp.asarray(b_q, jnp.float32),
        jnp.asarray(bias_full, jnp.bfloat16),                # (heads, BL, BL), cast to f32 in-kernel
        jnp.asarray(mw, jnp.float32),
        jnp.asarray(p["w1"], jnp.bfloat16),
        jnp.asarray(p["b1"], jnp.float32).reshape(1, MLP_HIDDEN),
        jnp.asarray(p["w2"], jnp.bfloat16),
        jnp.asarray(vec, jnp.float32),
    )


# ------------------------- pure-JAX reference (windowed, high precision, erf GELU) -------------------------
def window_partition(x):
    xr = x.reshape(B, H, W, DIM)
    nH, nW = H // WINDOW, W // WINDOW
    xw = (xr.reshape(B, nH, WINDOW, nW, WINDOW, DIM)
            .transpose(0, 1, 3, 2, 4, 5)
            .reshape(B * nH * nW, WINDOW * WINDOW, DIM))
    return xw, (nH, nW)


def window_unpartition(xw, meta):
    nH, nW = meta
    x = (xw.reshape(B, nH, nW, WINDOW, WINDOW, DIM)
           .transpose(0, 1, 3, 2, 4, 5)
           .reshape(B, H, W, DIM))
    return x.reshape(B, L, DIM)


def reference(x, p):
    with jax.default_matmul_precision("highest"):
        xw, meta = window_partition(x)
        mu = xw.mean(-1, keepdims=True)
        var = ((xw - mu) ** 2).mean(-1, keepdims=True)
        xn = (xw - mu) / jnp.sqrt(var + LN_EPS) * p["ln1_g"] + p["ln1_b"]
        qkv = xn @ p["wqkv"] + p["bqkv"]
        qkv = qkv.reshape(xw.shape[0], NWIN_TOK, NUM_HEADS, QKV_STEP)
        q, k, v = (qkv[..., :HEAD_DIM], qkv[..., HEAD_DIM:2 * HEAD_DIM], qkv[..., 2 * HEAD_DIM:])
        q, k, v = (t.transpose(0, 2, 1, 3) for t in (q, k, v))
        attn = jnp.einsum("whnd,whmd->whnm", q, k) * SCALE + p["attn_bias_win"][None]
        attn = jax.nn.softmax(attn, axis=-1)
        o = jnp.einsum("whnm,whmd->whnd", attn, v).transpose(0, 2, 1, 3).reshape(xw.shape[0], NWIN_TOK, DH)
        o = o @ p["wproj"] + p["bproj"]
        x1 = x + window_unpartition(o, meta)

        xc = x1.reshape(B, H, W, DIM)
        xp = jnp.pad(xc, ((0, 0), (1, 1), (1, 1), (0, 0)))
        conv = jnp.zeros_like(xc)
        for di in range(LOCAL_CONV):
            for dj in range(LOCAL_CONV):
                conv = conv + xp[:, di:di + H, dj:dj + W, :] * p["w_dw"][di, dj]
        conv = conv * p["bn_scale"] + p["bn_shift"]
        x2 = conv.reshape(B, L, DIM)

        mu = x2.mean(-1, keepdims=True)
        var = ((x2 - mu) ** 2).mean(-1, keepdims=True)
        xn = (x2 - mu) / jnp.sqrt(var + LN_EPS) * p["ln2_g"] + p["ln2_b"]
        h1 = xn @ p["w1"] + p["b1"]
        h1 = h1 * 0.5 * (1.0 + lax.erf(h1 / math.sqrt(2.0)))
        return x2 + (h1 @ p["w2"] + p["b2"])


# ------------------------- deterministic parameter init -------------------------
def make_params():
    key = jax.random.PRNGKey(0)
    ks = iter(jax.random.split(key, 16))

    def rnd(shape, s=0.05):
        return jax.random.normal(next(ks), shape, jnp.float32) * s

    # attention-bias relative-position table (window-local, as in the PyTorch module)
    points = list(itertools.product(range(WINDOW), range(WINDOW)))
    offsets, idxs = {}, []
    for p1 in points:
        for p2 in points:
            off = (abs(p1[0] - p2[0]), abs(p1[1] - p2[1]))
            if off not in offsets:
                offsets[off] = len(offsets)
            idxs.append(offsets[off])
    idxs = np.array(idxs, np.int32).reshape(NWIN_TOK, NWIN_TOK)
    attention_biases = rnd((NUM_HEADS, len(offsets)), 0.02)
    attn_bias_win = attention_biases[:, idxs]                # (heads, N, N)

    # BatchNorm2d eval: defaults weight=1, bias=0, running_mean=0, running_var=1
    bn_w = jnp.ones((DIM,), jnp.float32)
    bn_b = jnp.zeros((DIM,), jnp.float32)
    bn_rm = jnp.zeros((DIM,), jnp.float32)
    bn_rv = jnp.ones((DIM,), jnp.float32)
    bn_scale = bn_w / jnp.sqrt(bn_rv + BN_EPS)
    bn_shift = bn_b - bn_rm * bn_scale

    return {
        "ln1_g": jnp.ones((DIM,), jnp.float32), "ln1_b": jnp.zeros((DIM,), jnp.float32),
        "wqkv": rnd((DIM, 3 * DIM)), "bqkv": rnd((3 * DIM,), 0.01),
        "wproj": rnd((DIM, DIM)), "bproj": rnd((DIM,), 0.01),
        "attn_bias_win": attn_bias_win,
        "w_dw": rnd((LOCAL_CONV, LOCAL_CONV, DIM)),          # depthwise kernel, (kh, kw, C)
        "bn_scale": bn_scale, "bn_shift": bn_shift,
        "ln2_g": jnp.ones((DIM,), jnp.float32), "ln2_b": jnp.zeros((DIM,), jnp.float32),
        "w1": rnd((DIM, MLP_HIDDEN)), "b1": rnd((MLP_HIDDEN,), 0.01),
        "w2": rnd((MLP_HIDDEN, DIM)), "b2": rnd((DIM,), 0.01),
    }


if __name__ == "__main__":
    params = make_params()
    kparams = prepare_kernel_params(params)
    x = jax.random.normal(jax.random.PRNGKey(0), (B, L, DIM), jnp.float32)

    fwd = jax.jit(tiny_vit_block)
    out = jax.block_until_ready(fwd(x, kparams))
    ref = jax.block_until_ready(reference(x, params))

    assert out.shape == (B, L, DIM)
    np.testing.assert_allclose(np.asarray(out), np.asarray(ref), rtol=1e-2, atol=1e-2)
    print("KERNEL_OK")
</pallas_src>

<mosaic_0001>
module attributes {stable_mosaic.version = 11 : i64} {
  func.func @_block_kernel(%arg0: i32, %arg1: memref<128x32xf32, #tpu.memory_space<vmem>>, %arg2: memref<3x2x32x16xbf16, #tpu.memory_space<vmem>>, %arg3: memref<2x16x32xbf16, #tpu.memory_space<vmem>>, %arg4: memref<2x1x16xf32, #tpu.memory_space<vmem>>, %arg5: memref<2x128x128xbf16, #tpu.memory_space<vmem>>, %arg6: memref<9x128x32xf32, #tpu.memory_space<vmem>>, %arg7: memref<32x128xbf16, #tpu.memory_space<vmem>>, %arg8: memref<1x128xf32, #tpu.memory_space<vmem>>, %arg9: memref<128x32xbf16, #tpu.memory_space<vmem>>, %arg10: memref<7x32xf32, #tpu.memory_space<vmem>>, %arg11: memref<128x32xf32, #tpu.memory_space<vmem>>) attributes {dimension_semantics = [#tpu.dimension_semantics<arbitrary>], iteration_bounds = array<i64: 1>, scalar_prefetch = 0 : i64, scratch_operands = 0 : i64, tpu.core_type = #tpu.core_type<tc>, window_params = [{pipeline_mode = #tpu.pipeline_mode<synchronous>, transform_indices = @transform_0, window_bounds = array<i64: 128, 32>}, {pipeline_mode = #tpu.pipeline_mode<synchronous>, transform_indices = @transform_1, window_bounds = array<i64: 3, 2, 32, 16>}, {pipeline_mode = #tpu.pipeline_mode<synchronous>, transform_indices = @transform_2, window_bounds = array<i64: 2, 16, 32>}, {pipeline_mode = #tpu.pipeline_mode<synchronous>, transform_indices = @transform_3, window_bounds = array<i64: 2, 1, 16>}, {pipeline_mode = #tpu.pipeline_mode<synchronous>, transform_indices = @transform_4, window_bounds = array<i64: 2, 128, 128>}, {pipeline_mode = #tpu.pipeline_mode<synchronous>, transform_indices = @transform_5, window_bounds = array<i64: 9, 128, 32>}, {pipeline_mode = #tpu.pipeline_mode<synchronous>, transform_indices = @transform_6, window_bounds = array<i64: 32, 128>}, {pipeline_mode = #tpu.pipeline_mode<synchronous>, transform_indices = @transform_7, window_bounds = array<i64: 1, 128>}, {pipeline_mode = #tpu.pipeline_mode<synchronous>, transform_indices = @transform_8, window_bounds = array<i64: 128, 32>}, {pipeline_mode = #tpu.pipeline_mode<synchronous>, transform_indices = @transform_9, window_bounds = array<i64: 7, 32>}, {pipeline_mode = #tpu.pipeline_mode<synchronous>, transform_indices = @transform_10, window_bounds = array<i64: 128, 32>}]} {
    %c0 = arith.constant 0 : index
    %c0_0 = arith.constant 0 : index
    %0 = vector.load %arg1[%c0, %c0_0] : memref<128x32xf32, #tpu.memory_space<vmem>>, vector<128x32xf32>
    %c0_1 = arith.constant 0 : index
    %c0_2 = arith.constant 0 : index
    %1 = vector.load %arg10[%c0_1, %c0_2] : memref<7x32xf32, #tpu.memory_space<vmem>>, vector<7x32xf32>
    %2 = vector.extract_strided_slice %1 {offsets = [0, 0], sizes = [1, 32], strides = [1, 1]} : vector<7x32xf32> to vector<1x32xf32>
    %3 = vector.extract_strided_slice %1 {offsets = [1, 0], sizes = [1, 32], strides = [1, 1]} : vector<7x32xf32> to vector<1x32xf32>
    %4 = vector.extract_strided_slice %1 {offsets = [2, 0], sizes = [1, 32], strides = [1, 1]} : vector<7x32xf32> to vector<1x32xf32>
    %5 = vector.extract_strided_slice %1 {offsets = [3, 0], sizes = [1, 32], strides = [1, 1]} : vector<7x32xf32> to vector<1x32xf32>
    %6 = vector.extract_strided_slice %1 {offsets = [4, 0], sizes = [1, 32], strides = [1, 1]} : vector<7x32xf32> to vector<1x32xf32>
    %7 = vector.extract_strided_slice %1 {offsets = [5, 0], sizes = [1, 32], strides = [1, 1]} : vector<7x32xf32> to vector<1x32xf32>
    %8 = vector.extract_strided_slice %1 {offsets = [6, 0], sizes = [1, 32], strides = [1, 1]} : vector<7x32xf32> to vector<1x32xf32>
    %cst = arith.constant dense<0.000000e+00> : vector<128xf32>
    %9 = vector.multi_reduction <add>, %0, %cst [1] : vector<128x32xf32> to vector<128xf32>
    %10 = vector.shape_cast %9 : vector<128xf32> to vector<128x1xf32>
    %cst_3 = arith.constant 3.200000e+01 : f32
    %11 = vector.broadcast %cst_3 : f32 to vector<128x1xf32>
    %12 = arith.divf %10, %11 : vector<128x1xf32>
    %13 = arith.mulf %0, %0 : vector<128x32xf32>
    %cst_4 = arith.constant dense<0.000000e+00> : vector<128xf32>
    %14 = vector.multi_reduction <add>, %13, %cst_4 [1] : vector<128x32xf32> to vector<128xf32>
    %15 = vector.shape_cast %14 : vector<128xf32> to vector<128x1xf32>
    %cst_5 = arith.constant 3.200000e+01 : f32
    %16 = vector.broadcast %cst_5 : f32 to vector<128x1xf32>
    %17 = arith.divf %15, %16 : vector<128x1xf32>
    %18 = vector.broadcast %12 : vector<128x1xf32> to vector<128x32xf32>
    %19 = arith.subf %0, %18 : vector<128x32xf32>
    %20 = arith.mulf %12, %12 : vector<128x1xf32>
    %21 = arith.subf %17, %20 : vector<128x1xf32>
    %cst_6 = arith.constant 9.99999974E-6 : f32
    %22 = vector.broadcast %cst_6 : f32 to vector<128x1xf32>
    %23 = arith.addf %21, %22 : vector<128x1xf32>
    %24 = math.rsqrt %23 : vector<128x1xf32>
    %25 = vector.broadcast %24 : vector<128x1xf32> to vector<128x32xf32>
    %26 = arith.mulf %19, %25 : vector<128x32xf32>
    %27 = vector.broadcast %2 : vector<1x32xf32> to vector<128x32xf32>
    %28 = arith.mulf %26, %27 : vector<128x32xf32>
    %29 = vector.broadcast %3 : vector<1x32xf32> to vector<128x32xf32>
    %30 = arith.addf %28, %29 : vector<128x32xf32>
    %31 = arith.truncf %30 : vector<128x32xf32> to vector<128x32xbf16>
    %32 = vector.broadcast %4 : vector<1x32xf32> to vector<128x32xf32>
    %33 = arith.addf %0, %32 : vector<128x32xf32>
    %c0_7 = arith.constant 0 : index
    %c0_8 = arith.constant 0 : index
    %c0_9 = arith.constant 0 : index
    %c0_10 = arith.constant 0 : index
    %34 = vector.load %arg2[%c0_7, %c0_8, %c0_9, %c0_10] : memref<3x2x32x16xbf16, #tpu.memory_space<vmem>>, vector<1x1x32x16xbf16>
    %35 = vector.shape_cast %34 : vector<1x1x32x16xbf16> to vector<32x16xbf16>
    %cst_11 = arith.constant dense<0.000000e+00> : vector<128x16xf32>
    %36 = tpu.matmul %31, %35, %cst_11 {dimension_numbers = #tpu.dot_dimension_numbers<[1], [0], [0], [1], [0, 0, 1, 1], [], []>} : vector<128x32xbf16>, vector<32x16xbf16>, vector<128x16xf32> -> vector<128x16xf32>
    %c0_12 = arith.constant 0 : index
    %c0_13 = arith.constant 0 : index
    %c0_14 = arith.constant 0 : index
    %37 = vector.load %arg4[%c0_12, %c0_13, %c0_14] : memref<2x1x16xf32, #tpu.memory_space<vmem>>, vector<1x1x16xf32>
    %38 = vector.shape_cast %37 : vector<1x1x16xf32> to vector<1x16xf32>
    %39 = vector.broadcast %38 : vector<1x16xf32> to vector<128x16xf32>
    %40 = arith.addf %36, %39 : vector<128x16xf32>
    %c1 = arith.constant 1 : index
    %c0_15 = arith.constant 0 : index
    %c0_16 = arith.constant 0 : index
    %c0_17 = arith.constant 0 : index
    %41 = vector.load %arg2[%c1, %c0_15, %c0_16, %c0_17] : memref<3x2x32x16xbf16, #tpu.memory_space<vmem>>, vector<1x1x32x16xbf16>
    %42 = vector.shape_cast %41 : vector<1x1x32x16xbf16> to vector<32x16xbf16>
    %cst_18 = arith.constant dense<0.000000e+00> : vector<128x16xf32>
    %43 = tpu.matmul %31, %42, %cst_18 {dimension_numbers = #tpu.dot_dimension_numbers<[1], [0], [0], [1], [0, 0, 1, 1], [], []>} : vector<128x32xbf16>, vector<32x16xbf16>, vector<128x16xf32> -> vector<128x16xf32>
    %c2 = arith.constant 2 : index
    %c0_19 = arith.constant 0 : index
    %c0_20 = arith.constant 0 : index
    %c0_21 = arith.constant 0 : index
    %44 = vector.load %arg2[%c2, %c0_19, %c0_20, %c0_21] : memref<3x2x32x16xbf16, #tpu.memory_space<vmem>>, vector<1x1x32x16xbf16>
    %45 = vector.shape_cast %44 : vector<1x1x32x16xbf16> to vector<32x16xbf16>
    %cst_22 = arith.constant dense<0.000000e+00> : vector<128x16xf32>
    %46 = tpu.matmul %31, %45, %cst_22 {dimension_numbers = #tpu.dot_dimension_numbers<[1], [0], [0], [1], [0, 0, 1, 1], [], []>} : vector<128x32xbf16>, vector<32x16xbf16>, vector<128x16xf32> -> vector<128x16xf32>
    %47 = arith.truncf %40 : vector<128x16xf32> to vector<128x16xbf16>
    %48 = arith.truncf %43 : vector<128x16xf32> to vector<128x16xbf16>
    %cst_23 = arith.constant dense<0.000000e+00> : vector<128x128xf32>
    %49 = tpu.matmul %47, %48, %cst_23 {dimension_numbers = #tpu.dot_dimension_numbers<[1], [1], [0], [0], [0, 0, 1, 0], [], []>} : vector<128x16xbf16>, vector<128x16xbf16>, vector<128x128xf32> -> vector<128x128xf32>
    %c0_24 = arith.constant 0 : index
    %c0_25 = arith.constant 0 : index
    %c0_26 = arith.constant 0 : index
    %50 = vector.load %arg5[%c0_24, %c0_25, %c0_26] : memref<2x128x128xbf16, #tpu.memory_space<vmem>>, vector<1x128x128xbf16>
    %51 = vector.shape_cast %50 : vector<1x128x128xbf16> to vector<128x128xbf16>
    %52 = arith.extf %51 : vector<128x128xbf16> to vector<128x128xf32>
    %53 = arith.addf %49, %52 : vector<128x128xf32>
    %cst_27 = arith.constant dense<0xFF800000> : vector<128xf32>
    %54 = vector.multi_reduction <maximumf>, %53, %cst_27 [1] : vector<128x128xf32> to vector<128xf32>
    %55 = vector.shape_cast %54 : vector<128xf32> to vector<128x1xf32>
    %56 = vector.broadcast %55 : vector<128x1xf32> to vector<128x128xf32>
    %57 = arith.subf %53, %56 : vector<128x128xf32>
    %58 = math.exp %57 : vector<128x128xf32>
    %cst_28 = arith.constant dense<0.000000e+00> : vector<128xf32>
    %59 = vector.multi_reduction <add>, %58, %cst_28 [1] : vector<128x128xf32> to vector<128xf32>
    %60 = vector.shape_cast %59 : vector<128xf32> to vector<128x1xf32>
    %61 = tpu.reciprocal %60 {approx = true} : vector<128x1xf32> -> vector<128x1xf32>
    %62 = vector.broadcast %61 : vector<128x1xf32> to vector<128x128xf32>
    %63 = arith.mulf %58, %62 : vector<128x128xf32>
    %64 = arith.truncf %63 : vector<128x128xf32> to vector<128x128xbf16>
    %65 = arith.truncf %46 : vector<128x16xf32> to vector<128x16xbf16>
    %cst_29 = arith.constant dense<0.000000e+00> : vector<128x16xf32>
    %66 = tpu.matmul %64, %65, %cst_29 {dimension_numbers = #tpu.dot_dimension_numbers<[1], [0], [0], [1], [0, 0, 1, 1], [], []>} : vector<128x128xbf16>, vector<128x16xbf16>, vector<128x16xf32> -> vector<128x16xf32>
    %67 = arith.truncf %66 : vector<128x16xf32> to vector<128x16xbf16>
    %c0_30 = arith.constant 0 : index
    %c0_31 = arith.constant 0 : index
    %c0_32 = arith.constant 0 : index
    %68 = vector.load %arg3[%c0_30, %c0_31, %c0_32] : memref<2x16x32xbf16, #tpu.memory_space<vmem>>, vector<1x16x32xbf16>
    %69 = vector.shape_cast %68 : vector<1x16x32xbf16> to vector<16x32xbf16>
    %cst_33 = arith.constant dense<0.000000e+00> : vector<128x32xf32>
    %70 = tpu.matmul %67, %69, %cst_33 {dimension_numbers = #tpu.dot_dimension_numbers<[1], [0], [0], [1], [0, 0, 1, 1], [], []>} : vector<128x16xbf16>, vector<16x32xbf16>, vector<128x32xf32> -> vector<128x32xf32>
    %71 = arith.addf %33, %70 : vector<128x32xf32>
    %c0_34 = arith.constant 0 : index
    %c1_35 = arith.constant 1 : index
    %c0_36 = arith.constant 0 : index
    %c0_37 = arith.constant 0 : index
    %72 = vector.load %arg2[%c0_34, %c1_35, %c0_36, %c0_37] : memref<3x2x32x16xbf16, #tpu.memory_space<vmem>>, vector<1x1x32x16xbf16>
    %73 = vector.shape_cast %72 : vector<1x1x32x16xbf16> to vector<32x16xbf16>
    %cst_38 = arith.constant dense<0.000000e+00> : vector<128x16xf32>
    %74 = tpu.matmul %31, %73, %cst_38 {dimension_numbers = #tpu.dot_dimension_numbers<[1], [0], [0], [1], [0, 0, 1, 1], [], []>} : vector<128x32xbf16>, vector<32x16xbf16>, vector<128x16xf32> -> vector<128x16xf32>
    %c1_39 = arith.constant 1 : index
    %c0_40 = arith.constant 0 : index
    %c0_41 = arith.constant 0 : index
    %75 = vector.load %arg4[%c1_39, %c0_40, %c0_41] : memref<2x1x16xf32, #tpu.memory_space<vmem>>, vector<1x1x16xf32>
    %76 = vector.shape_cast %75 : vector<1x1x16xf32> to vector<1x16xf32>
    %77 = vector.broadcast %76 : vector<1x16xf32> to vector<128x16xf32>
    %78 = arith.addf %74, %77 : vector<128x16xf32>
    %c1_42 = arith.constant 1 : index
    %c1_43 = arith.constant 1 : index
    %c0_44 = arith.constant 0 : index
    %c0_45 = arith.constant 0 : index
    %79 = vector.load %arg2[%c1_42, %c1_43, %c0_44, %c0_45] : memref<3x2x32x16xbf16, #tpu.memory_space<vmem>>, vector<1x1x32x16xbf16>
    %80 = vector.shape_cast %79 : vector<1x1x32x16xbf16> to vector<32x16xbf16>
    %cst_46 = arith.constant dense<0.000000e+00> : vector<128x16xf32>
    %81 = tpu.matmul %31, %80, %cst_46 {dimension_numbers = #tpu.dot_dimension_numbers<[1], [0], [0], [1], [0, 0, 1, 1], [], []>} : vector<128x32xbf16>, vector<32x16xbf16>, vector<128x16xf32> -> vector<128x16xf32>
    %c2_47 = arith.constant 2 : index
    %c1_48 = arith.constant 1 : index
    %c0_49 = arith.constant 0 : index
    %c0_50 = arith.constant 0 : index
    %82 = vector.load %arg2[%c2_47, %c1_48, %c0_49, %c0_50] : memref<3x2x32x16xbf16, #tpu.memory_space<vmem>>, vector<1x1x32x16xbf16>
    %83 = vector.shape_cast %82 : vector<1x1x32x16xbf16> to vector<32x16xbf16>
    %cst_51 = arith.constant dense<0.000000e+00> : vector<128x16xf32>
    %84 = tpu.matmul %31, %83, %cst_51 {dimension_numbers = #tpu.dot_dimension_numbers<[1], [0], [0], [1], [0, 0, 1, 1], [], []>} : vector<128x32xbf16>, vector<32x16xbf16>, vector<128x16xf32> -> vector<128x16xf32>
    %85 = arith.truncf %78 : vector<128x16xf32> to vector<128x16xbf16>
    %86 = arith.truncf %81 : vector<128x16xf32> to vector<128x16xbf16>
    %cst_52 = arith.constant dense<0.000000e+00> : vector<128x128xf32>
    %87 = tpu.matmul %85, %86, %cst_52 {dimension_numbers = #tpu.dot_dimension_numbers<[1], [1], [0], [0], [0, 0, 1, 0], [], []>} : vector<128x16xbf16>, vector<128x16xbf16>, vector<128x128xf32> -> vector<128x128xf32>
    %c1_53 = arith.constant 1 : index
    %c0_54 = arith.constant 0 : index
    %c0_55 = arith.constant 0 : index
    %88 = vector.load %arg5[%c1_53, %c0_54, %c0_55] : memref<2x128x128xbf16, #tpu.memory_space<vmem>>, vector<1x128x128xbf16>
    %89 = vector.shape_cast %88 : vector<1x128x128xbf16> to vector<128x128xbf16>
    %90 = arith.extf %89 : vector<128x128xbf16> to vector<128x128xf32>
    %91 = arith.addf %87, %90 : vector<128x128xf32>
    %cst_56 = arith.constant dense<0xFF800000> : vector<128xf32>
    %92 = vector.multi_reduction <maximumf>, %91, %cst_56 [1] : vector<128x128xf32> to vector<128xf32>
    %93 = vector.shape_cast %92 : vector<128xf32> to vector<128x1xf32>
    %94 = vector.broadcast %93 : vector<128x1xf32> to vector<128x128xf32>
    %95 = arith.subf %91, %94 : vector<128x128xf32>
    %96 = math.exp %95 : vector<128x128xf32>
    %cst_57 = arith.constant dense<0.000000e+00> : vector<128xf32>
    %97 = vector.multi_reduction <add>, %96, %cst_57 [1] : vector<128x128xf32> to vector<128xf32>
    %98 = vector.shape_cast %97 : vector<128xf32> to vector<128x1xf32>
    %99 = tpu.reciprocal %98 {approx = true} : vector<128x1xf32> -> vector<128x1xf32>
    %100 = vector.broadcast %99 : vector<128x1xf32> to vector<128x128xf32>
    %101 = arith.mulf %96, %100 : vector<128x128xf32>
    %102 = arith.truncf %101 : vector<128x128xf32> to vector<128x128xbf16>
    %103 = arith.truncf %84 : vector<128x16xf32> to vector<128x16xbf16>
    %cst_58 = arith.constant dense<0.000000e+00> : vector<128x16xf32>
    %104 = tpu.matmul %102, %103, %cst_58 {dimension_numbers = #tpu.dot_dimension_numbers<[1], [0], [0], [1], [0, 0, 1, 1], [], []>} : vector<128x128xbf16>, vector<128x16xbf16>, vector<128x16xf32> -> vector<128x16xf32>
    %105 = arith.truncf %104 : vector<128x16xf32> to vector<128x16xbf16>
    %c1_59 = arith.constant 1 : index
    %c0_60 = arith.constant 0 : index
    %c0_61 = arith.constant 0 : index
    %106 = vector.load %arg3[%c1_59, %c0_60, %c0_61] : memref<2x16x32xbf16, #tpu.memory_space<vmem>>, vector<1x16x32xbf16>
    %107 = vector.shape_cast %106 : vector<1x16x32xbf16> to vector<16x32xbf16>
    %cst_62 = arith.constant dense<0.000000e+00> : vector<128x32xf32>
    %108 = tpu.matmul %105, %107, %cst_62 {dimension_numbers = #tpu.dot_dimension_numbers<[1], [0], [0], [1], [0, 0, 1, 1], [], []>} : vector<128x16xbf16>, vector<16x32xbf16>, vector<128x32xf32> -> vector<128x32xf32>
    %109 = arith.addf %71, %108 : vector<128x32xf32>
    %c4 = arith.constant 4 : index
    %c0_63 = arith.constant 0 : index
    %c0_64 = arith.constant 0 : index
    %110 = vector.load %arg6[%c4, %c0_63, %c0_64] : memref<9x128x32xf32, #tpu.memory_space<vmem>>, vector<1x128x32xf32>
    %111 = vector.shape_cast %110 : vector<1x128x32xf32> to vector<128x32xf32>
    %112 = arith.mulf %109, %111 : vector<128x32xf32>
    %c9_i32 = arith.constant 9 : i32
    %113 = tpu.dynamic_rotate %109 by %c9_i32 dim 0 : vector<128x32xf32>, i32 -> vector<128x32xf32>
    %c0_65 = arith.constant 0 : index
    %c0_66 = arith.constant 0 : index
    %c0_67 = arith.constant 0 : index
    %114 = vector.load %arg6[%c0_65, %c0_66, %c0_67] : memref<9x128x32xf32, #tpu.memory_space<vmem>>, vector<1x128x32xf32>
    %115 = vector.shape_cast %114 : vector<1x128x32xf32> to vector<128x32xf32>
    %116 = arith.mulf %113, %115 : vector<128x32xf32>
    %117 = arith.addf %112, %116 : vector<128x32xf32>
    %c8_i32 = arith.constant 8 : i32
    %118 = tpu.dynamic_rotate %109 by %c8_i32 dim 0 : vector<128x32xf32>, i32 -> vector<128x32xf32>
    %c1_68 = arith.constant 1 : index
    %c0_69 = arith.constant 0 : index
    %c0_70 = arith.constant 0 : index
    %119 = vector.load %arg6[%c1_68, %c0_69, %c0_70] : memref<9x128x32xf32, #tpu.memory_space<vmem>>, vector<1x128x32xf32>
    %120 = vector.shape_cast %119 : vector<1x128x32xf32> to vector<128x32xf32>
    %121 = arith.mulf %118, %120 : vector<128x32xf32>
    %122 = arith.addf %117, %121 : vector<128x32xf32>
    %c7_i32 = arith.constant 7 : i32
    %123 = tpu.dynamic_rotate %109 by %c7_i32 dim 0 : vector<128x32xf32>, i32 -> vector<128x32xf32>
    %c2_71 = arith.constant 2 : index
    %c0_72 = arith.constant 0 : index
    %c0_73 = arith.constant 0 : index
    %124 = vector.load %arg6[%c2_71, %c0_72, %c0_73] : memref<9x128x32xf32, #tpu.memory_space<vmem>>, vector<1x128x32xf32>
    %125 = vector.shape_cast %124 : vector<1x128x32xf32> to vector<128x32xf32>
    %126 = arith.mulf %123, %125 : vector<128x32xf32>
    %127 = arith.addf %122, %126 : vector<128x32xf32>
    %c1_i32 = arith.constant 1 : i32
    %128 = tpu.dynamic_rotate %109 by %c1_i32 dim 0 : vector<128x32xf32>, i32 -> vector<128x32xf32>
    %c3 = arith.constant 3 : index
    %c0_74 = arith.constant 0 : index
    %c0_75 = arith.constant 0 : index
    %129 = vector.load %arg6[%c3, %c0_74, %c0_75] : memref<9x128x32xf32, #tpu.memory_space<vmem>>, vector<1x128x32xf32>
    %130 = vector.shape_cast %129 : vector<1x128x32xf32> to vector<128x32xf32>
    %131 = arith.mulf %128, %130 : vector<128x32xf32>
    %132 = arith.addf %127, %131 : vector<128x32xf32>
    %c127_i32 = arith.constant 127 : i32
    %133 = tpu.dynamic_rotate %109 by %c127_i32 dim 0 : vector<128x32xf32>, i32 -> vector<128x32xf32>
    %c5 = arith.constant 5 : index
    %c0_76 = arith.constant 0 : index
    %c0_77 = arith.constant 0 : index
    %134 = vector.load %arg6[%c5, %c0_76, %c0_77] : memref<9x128x32xf32, #tpu.memory_space<vmem>>, vector<1x128x32xf32>
    %135 = vector.shape_cast %134 : vector<1x128x32xf32> to vector<128x32xf32>
    %136 = arith.mulf %133, %135 : vector<128x32xf32>
    %137 = arith.addf %132, %136 : vector<128x32xf32>
    %c121_i32 = arith.constant 121 : i32
    %138 = tpu.dynamic_rotate %109 by %c121_i32 dim 0 : vector<128x32xf32>, i32 -> vector<128x32xf32>
    %c6 = arith.constant 6 : index
    %c0_78 = arith.constant 0 : index
    %c0_79 = arith.constant 0 : index
    %139 = vector.load %arg6[%c6, %c0_78, %c0_79] : memref<9x128x32xf32, #tpu.memory_space<vmem>>, vector<1x128x32xf32>
    %140 = vector.shape_cast %139 : vector<1x128x32xf32> to vector<128x32xf32>
    %141 = arith.mulf %138, %140 : vector<128x32xf32>
    %142 = arith.addf %137, %141 : vector<128x32xf32>
    %c120_i32 = arith.constant 120 : i32
    %143 = tpu.dynamic_rotate %109 by %c120_i32 dim 0 : vector<128x32xf32>, i32 -> vector<128x32xf32>
    %c7 = arith.constant 7 : index
    %c0_80 = arith.constant 0 : index
    %c0_81 = arith.constant 0 : index
    %144 = vector.load %arg6[%c7, %c0_80, %c0_81] : memref<9x128x32xf32, #tpu.memory_space<vmem>>, vector<1x128x32xf32>
    %145 = vector.shape_cast %144 : vector<1x128x32xf32> to vector<128x32xf32>
    %146 = arith.mulf %143, %145 : vector<128x32xf32>
    %147 = arith.addf %142, %146 : vector<128x32xf32>
    %c119_i32 = arith.constant 119 : i32
    %148 = tpu.dynamic_rotate %109 by %c119_i32 dim 0 : vector<128x32xf32>, i32 -> vector<128x32xf32>
    %c8 = arith.constant 8 : index
    %c0_82 = arith.constant 0 : index
    %c0_83 = arith.constant 0 : index
    %149 = vector.load %arg6[%c8, %c0_82, %c0_83] : memref<9x128x32xf32, #tpu.memory_space<vmem>>, vector<1x128x32xf32>
    %150 = vector.shape_cast %149 : vector<1x128x32xf32> to vector<128x32xf32>
    %151 = arith.mulf %148, %150 : vector<128x32xf32>
    %152 = arith.addf %147, %151 : vector<128x32xf32>
    %153 = vector.broadcast %5 : vector<1x32xf32> to vector<128x32xf32>
    %154 = arith.addf %152, %153 : vector<128x32xf32>
    %cst_84 = arith.constant dense<0.000000e+00> : vector<128xf32>
    %155 = vector.multi_reduction <add>, %154, %cst_84 [1] : vector<128x32xf32> to vector<128xf32>
    %156 = vector.shape_cast %155 : vector<128xf32> to vector<128x1xf32>
    %cst_85 = arith.constant 3.200000e+01 : f32
    %157 = vector.broadcast %cst_85 : f32 to vector<128x1xf32>
    %158 = arith.divf %156, %157 : vector<128x1xf32>
    %159 = arith.mulf %154, %154 : vector<128x32xf32>
    %cst_86 = arith.constant dense<0.000000e+00> : vector<128xf32>
    %160 = vector.multi_reduction <add>, %159, %cst_86 [1] : vector<128x32xf32> to vector<128xf32>
    %161 = vector.shape_cast %160 : vector<128xf32> to vector<128x1xf32>
    %cst_87 = arith.constant 3.200000e+01 : f32
    %162 = vector.broadcast %cst_87 : f32 to vector<128x1xf32>
    %163 = arith.divf %161, %162 : vector<128x1xf32>
    %164 = vector.broadcast %158 : vector<128x1xf32> to vector<128x32xf32>
    %165 = arith.subf %154, %164 : vector<128x32xf32>
    %166 = arith.mulf %158, %158 : vector<128x1xf32>
    %167 = arith.subf %163, %166 : vector<128x1xf32>
    %cst_88 = arith.constant 9.99999974E-6 : f32
    %168 = vector.broadcast %cst_88 : f32 to vector<128x1xf32>
    %169 = arith.addf %167, %168 : vector<128x1xf32>
    %170 = math.rsqrt %169 : vector<128x1xf32>
    %171 = vector.broadcast %170 : vector<128x1xf32> to vector<128x32xf32>
    %172 = arith.mulf %165, %171 : vector<128x32xf32>
    %173 = vector.broadcast %6 : vector<1x32xf32> to vector<128x32xf32>
    %174 = arith.mulf %172, %173 : vector<128x32xf32>
    %175 = vector.broadcast %7 : vector<1x32xf32> to vector<128x32xf32>
    %176 = arith.addf %174, %175 : vector<128x32xf32>
    %177 = arith.truncf %176 : vector<128x32xf32> to vector<128x32xbf16>
    %c0_89 = arith.constant 0 : index
    %c0_90 = arith.constant 0 : index
    %178 = vector.load %arg7[%c0_89, %c0_90] : memref<32x128xbf16, #tpu.memory_space<vmem>>, vector<32x128xbf16>
    %cst_91 = arith.constant dense<0.000000e+00> : vector<128x128xf32>
    %179 = tpu.matmul %177, %178, %cst_91 {dimension_numbers = #tpu.dot_dimension_numbers<[1], [0], [0], [1], [0, 0, 1, 1], [], []>} : vector<128x32xbf16>, vector<32x128xbf16>, vector<128x128xf32> -> vector<128x128xf32>
    %c0_92 = arith.constant 0 : index
    %c0_93 = arith.constant 0 : index
    %180 = vector.load %arg8[%c0_92, %c0_93] : memref<1x128xf32, #tpu.memory_space<vmem>>, vector<1x128xf32>
    %181 = vector.broadcast %180 : vector<1x128xf32> to vector<128x128xf32>
    %182 = arith.addf %179, %181 : vector<128x128xf32>
    %cst_94 = arith.constant 5.000000e-01 : f32
    %183 = vector.broadcast %cst_94 : f32 to vector<128x128xf32>
    %184 = arith.mulf %183, %182 : vector<128x128xf32>
    %cst_95 = arith.constant 4.471500e-02 : f32
    %185 = vector.broadcast %cst_95 : f32 to vector<128x128xf32>
    %186 = arith.mulf %185, %182 : vector<128x128xf32>
    %187 = arith.mulf %186, %182 : vector<128x128xf32>
    %188 = arith.mulf %187, %182 : vector<128x128xf32>
    %189 = arith.addf %182, %188 : vector<128x128xf32>
    %cst_96 = arith.constant 0.797884583 : f32
    %190 = vector.broadcast %cst_96 : f32 to vector<128x128xf32>
    %191 = arith.mulf %190, %189 : vector<128x128xf32>
    %192 = math.tanh %191 : vector<128x128xf32>
    %cst_97 = arith.constant 1.000000e+00 : f32
    %193 = vector.broadcast %cst_97 : f32 to vector<128x128xf32>
    %194 = arith.addf %193, %192 : vector<128x128xf32>
    %195 = arith.mulf %184, %194 : vector<128x128xf32>
    %196 = arith.truncf %195 : vector<128x128xf32> to vector<128x128xbf16>
    %c0_98 = arith.constant 0 : index
    %c0_99 = arith.constant 0 : index
    %197 = vector.load %arg9[%c0_98, %c0_99] : memref<128x32xbf16, #tpu.memory_space<vmem>>, vector<128x32xbf16>
    %cst_100 = arith.constant dense<0.000000e+00> : vector<128x32xf32>
    %198 = tpu.matmul %196, %197, %cst_100 {dimension_numbers = #tpu.dot_dimension_numbers<[1], [0], [0], [1], [0, 0, 1, 1], [], []>} : vector<128x128xbf16>, vector<128x32xbf16>, vector<128x32xf32> -> vector<128x32xf32>
    %199 = vector.broadcast %8 : vector<1x32xf32> to vector<128x32xf32>
    %200 = arith.addf %198, %199 : vector<128x32xf32>
    %201 = arith.addf %154, %200 : vector<128x32xf32>
    %c0_101 = arith.constant 0 : index
    %c0_102 = arith.constant 0 : index
    %202 = vector.load %arg11[%c0_101, %c0_102] : memref<128x32xf32, #tpu.memory_space<vmem>>, vector<128x32xf32>
    tpu.vector_store %arg11[%c0_101, %c0_102], %201 {strides = array<i32>} : memref<128x32xf32, #tpu.memory_space<vmem>>, vector<128x32xf32>,
    return
  }
  func.func @transform_0(%arg0: i32) -> (i32, i32) {
    %c0_i32 = arith.constant 0 : i32
    %c0_i32_0 = arith.constant 0 : i32
    %c0_i32_1 = arith.constant 0 : i32
    return %c0_i32, %c0_i32_0 : i32, i32
  }
  func.func @transform_1(%arg0: i32) -> (i32, i32, i32, i32) {
    %c0_i32 = arith.constant 0 : i32
    %c0_i32_0 = arith.constant 0 : i32
    %c0_i32_1 = arith.constant 0 : i32
    %c0_i32_2 = arith.constant 0 : i32
    %c0_i32_3 = arith.constant 0 : i32
    return %c0_i32, %c0_i32_0, %c0_i32_1, %c0_i32_2 : i32, i32, i32, i32
  }
  func.func @transform_2(%arg0: i32) -> (i32, i32, i32) {
    %c0_i32 = arith.constant 0 : i32
    %c0_i32_0 = arith.constant 0 : i32
    %c0_i32_1 = arith.constant 0 : i32
    %c0_i32_2 = arith.constant 0 : i32
    return %c0_i32, %c0_i32_0, %c0_i32_1 : i32, i32, i32
  }
  func.func @transform_3(%arg0: i32) -> (i32, i32, i32) {
    %c0_i32 = arith.constant 0 : i32
    %c0_i32_0 = arith.constant 0 : i32
    %c0_i32_1 = arith.constant 0 : i32
    %c0_i32_2 = arith.constant 0 : i32
    return %c0_i32, %c0_i32_0, %c0_i32_1 : i32, i32, i32
  }
  func.func @transform_4(%arg0: i32) -> (i32, i32, i32) {
    %c0_i32 = arith.constant 0 : i32
    %c0_i32_0 = arith.constant 0 : i32
    %c0_i32_1 = arith.constant 0 : i32
    %c0_i32_2 = arith.constant 0 : i32
    return %c0_i32, %c0_i32_0, %c0_i32_1 : i32, i32, i32
  }
  func.func @transform_5(%arg0: i32) -> (i32, i32, i32) {
    %c0_i32 = arith.constant 0 : i32
    %c0_i32_0 = arith.constant 0 : i32
    %c0_i32_1 = arith.constant 0 : i32
    %c0_i32_2 = arith.constant 0 : i32
    return %c0_i32, %c0_i32_0, %c0_i32_1 : i32, i32, i32
  }
  func.func @transform_6(%arg0: i32) -> (i32, i32) {
    %c0_i32 = arith.constant 0 : i32
    %c0_i32_0 = arith.constant 0 : i32
    %c0_i32_1 = arith.constant 0 : i32
    return %c0_i32, %c0_i32_0 : i32, i32
  }
  func.func @transform_7(%arg0: i32) -> (i32, i32) {
    %c0_i32 = arith.constant 0 : i32
    %c0_i32_0 = arith.constant 0 : i32
    %c0_i32_1 = arith.constant 0 : i32
    return %c0_i32, %c0_i32_0 : i32, i32
  }
  func.func @transform_8(%arg0: i32) -> (i32, i32) {
    %c0_i32 = arith.constant 0 : i32
    %c0_i32_0 = arith.constant 0 : i32
    %c0_i32_1 = arith.constant 0 : i32
    return %c0_i32, %c0_i32_0 : i32, i32
  }
  func.func @transform_9(%arg0: i32) -> (i32, i32) {
    %c0_i32 = arith.constant 0 : i32
    %c0_i32_0 = arith.constant 0 : i32
    %c0_i32_1 = arith.constant 0 : i32
    return %c0_i32, %c0_i32_0 : i32, i32
  }
  func.func @transform_10(%arg0: i32) -> (i32, i32) {
    %c0_i32 = arith.constant 0 : i32
    %c0_i32_0 = arith.constant 0 : i32
    %c0_i32_1 = arith.constant 0 : i32
    return %c0_i32, %c0_i32_0 : i32, i32
  }
}

</mosaic_0001>

<bundles_post_ra>
// kernel: tiny_vit_block.1
= control target key start
LH: loop header
LB: loop body
LE: loop exit
PB: predicated region body
PF: predicated region fallthrough
CT: control target
= control target key end

     0   :  { %vm53_vm0 = vcmask 261120   ;;  %s6279_s0 = inlined_call_operand.vmem [shape: f32[128,32], index: 0, kind: input, shape index: {}]   ;;  %s6280_s1 = inlined_call_operand.vmem [shape: bf16[3,2,32,16], index: 1, kind: input, shape index: {}]   ;;  %s6281_s9 = inlined_call_operand.vmem [shape: f32[7,32], index: 9, kind: input, shape index: {}]   ;;  %s6282_s3 = inlined_call_operand.vmem [shape: f32[2,1,16], index: 3, kind: input, shape index: {}]   ;;  %s6283_s4 = inlined_call_operand.vmem [shape: bf16[2,128,128], index: 4, kind: input, shape index: {}]   ;;  %s6284_s2 = inlined_call_operand.vmem [shape: bf16[2,16,32], index: 2, kind: input, shape index: {}]   ;;  %s6285_s5 = inlined_call_operand.vmem [shape: f32[9,128,32], index: 5, kind: input, shape index: {}]   ;;  %s6286_s6 = inlined_call_operand.vmem [shape: bf16[32,128], index: 6, kind: input, shape index: {}]   ;;  %s6287_s7 = inlined_call_operand.vmem [shape: f32[1,128], index: 7, kind: input, shape index: {}]   ;;  %s6288_s8 = inlined_call_operand.vmem [shape: bf16[128,32], index: 8, kind: input, shape index: {}]   ;;  %s6289_s10 = inlined_call_operand.vmem [shape: f32[128,32], index: 10, kind: output, shape index: {}]  }
   0x1   :  { %v3949_v0 = vld [vmem:[%s6279_s0 + $0x50] sm:$0xff]  ;;  %v3954_v1 = vld [vmem:[%s6279_s0] sm:$0xff]  ;;  %v3965_v5 = vld [vmem:[%s6279_s0 + $0x8] sm:$0xff] }
   0x2   :  { %v84_v2 = vsel %vm53_vm0, %v3949_v0, 0.0  ;;  %v54_v3 = vsel %vm53_vm0, %v3954_v1, 0.0  ;;  %v125_v4 = vmul.f32 %v3954_v1, %v3954_v1  ;;  %v3971_v7 = vld [vmem:[%s6279_s0 + $0x58] sm:$0xff]  ;;  %v126_v8 = vmul.f32 %v3965_v5, %v3965_v5  ;;  %v3987_v14 = vld [vmem:[%s6279_s0 + $0x10] sm:$0xff]  ;;  %v3996_v18 = vld [vmem:[%s6279_s0 + $0x60] sm:$0xff] }
   0x3   :  { %85 = vadd.xlane.f32.xlu1 %v84_v2  ;;  %55 = vadd.xlane.f32.xlu0 %v54_v3  ;;  %v87_v9 = vsel %vm53_vm0, %v3971_v7, 0.0  ;;  %v57_v10 = vsel %vm53_vm0, %v3965_v5, 0.0  ;;  %v136_v12 = vmul.f32 %v3971_v7, %v3971_v7  ;;  %v135_v13 = vmul.f32 %v3949_v0, %v3949_v0  ;;  %v4001_v19 = vld [vmem:[%s6279_s0 + $0x18] sm:$0xff]  ;;  %v4006_v20 = vld [vmem:[%s6279_s0 + $0x68] sm:$0xff]  ;;  %v4028_v31 = vld [vmem:[%s6279_s0 + $0x20] sm:$0xff] }
   0x4   :  { %v141_v6 = vsel %vm53_vm0, %v125_v4, 0.0  ;;  %v144_v11 = vsel %vm53_vm0, %v126_v8, 0.0  ;;  %v60_v17 = vsel %vm53_vm0, %v3987_v14, 0.0  ;;  %v90_v21 = vsel %vm53_vm0, %v3996_v18, 0.0  ;;  %v4033_v32 = vld [vmem:[%s6279_s0 + $0x28] sm:$0xff]  ;;  %v4043_v36 = vld [vmem:[%s6279_s0 + $0x78] sm:$0xff] }
   0x5   :  { %142 = vadd.xlane.f32.xlu2 %v141_v6  ;;  %v174_v15 = vsel %vm53_vm0, %v136_v12, 0.0  ;;  %v171_v16 = vsel %vm53_vm0, %v135_v13, 0.0  ;;  %v63_v22 = vsel %vm53_vm0, %v4001_v19, 0.0  ;;  %v93_v23 = vsel %vm53_vm0, %v4006_v20, 0.0  ;;  %v4048_v37 = vld [vmem:[%s6279_s0 + $0x70] sm:$0xff]  ;;  %v4074_v49 = vld [vmem:[%s6279_s0 + $0x38] sm:$0xff] }
   0x6   :  { %v128_v24 = vmul.f32 %v4001_v19, %v4001_v19  ;;  %v127_v25 = vmul.f32 %v3987_v14, %v3987_v14  ;;  %v137_v26 = vmul.f32 %v3996_v18, %v3996_v18  ;;  %v138_v30 = vmul.f32 %v4006_v20, %v4006_v20  ;;  %v4069_v48 = vld [vmem:[%s6279_s0 + $0x30] sm:$0xff]  ;;  %v4088_v55 = vld [vmem:[%s6279_s0 + $0x40] sm:$0xff]  ;;  %v4093_v56 = vld [vmem:[%s6279_s0 + $0x48] sm:$0xff] }
   0x7   :  { %v66_v33 = vsel %vm53_vm0, %v4028_v31, 0.0  ;;  %v69_v35 = vsel %vm53_vm0, %v4033_v32, 0.0  ;;  %v129_v38 = vmul.f32 %v4028_v31, %v4028_v31  ;;  %v99_v39 = vsel %vm53_vm0, %v4043_v36, 0.0 }
   0x8   :  { %v150_v27 = vsel %vm53_vm0, %v128_v24, 0.0  ;;  %v147_v28 = vsel %vm53_vm0, %v127_v25, 0.0  ;;  %v177_v29 = vsel %vm53_vm0, %v137_v26, 0.0  ;;  %v180_v34 = vsel %vm53_vm0, %v138_v30, 0.0 }
   0x9   :  { %v96_v40 = vsel %vm53_vm0, %v4048_v37, 0.0  ;;  %v153_v41 = vsel %vm53_vm0, %v129_v38, 0.0  ;;  %v139_v42 = vmul.f32 %v4048_v37, %v4048_v37  ;;  %v130_v43 = vmul.f32 %v4033_v32, %v4033_v32 }
   0xa   :  { %v140_v44 = vmul.f32 %v4043_v36, %v4043_v36  ;;  %v131_v50 = vmul.f32 %v4069_v48, %v4069_v48  ;;  %v75_v51 = vsel %vm53_vm0, %v4074_v49, 0.0  ;;  %v72_v52 = vsel %vm53_vm0, %v4069_v48, 0.0 }
   0xb   :  { %88 = vadd.xlane.f32.xlu1 %v87_v9  ;;  %58 = vadd.xlane.f32.xlu0 %v57_v10  ;;  %v183_v45 = vsel %vm53_vm0, %v139_v42, 0.0  ;;  %v156_v46 = vsel %vm53_vm0, %v130_v43, 0.0  ;;  %v132_v54 = vmul.f32 %v4074_v49, %v4074_v49  ;;  %v78_v57 = vsel %vm53_vm0, %v4088_v55, 0.0 }
   0xc   :  { %v186_v47 = vsel %vm53_vm0, %v140_v44, 0.0  ;;  %v159_v53 = vsel %vm53_vm0, %v131_v50, 0.0  ;;  %v81_v59 = vsel %vm53_vm0, %v4093_v56, 0.0  ;;  %v134_v60 = vmul.f32 %v4093_v56, %v4093_v56 }
   0xd   :  { %145 = vadd.xlane.f32.xlu2 %v144_v11  ;;  %v162_v58 = vsel %vm53_vm0, %v132_v54, 0.0  ;;  %v133_v61 = vmul.f32 %v4088_v55, %v4088_v55  ;;  %v3890_v2 = vmov 32.0  }
   0xe   :  { %v168_v62 = vsel %vm53_vm0, %v134_v60, 0.0  ;;  %3645 = vrcp.f32 %v3890_v2  ;;  %v52_v2 = vld [vmem:[%s6281_s9] sm:$0x7f] }
   0xf   :  { %v165_v63 = vsel %vm53_vm0, %v133_v61, 0.0 }
  0x13   :  { %175 = vadd.xlane.f32.xlu1 %v174_v15  ;;  %172 = vadd.xlane.f32.xlu0 %v171_v16 }
  0x14   :  { %v3646_v3 = vpop.eup %3645 }
  0x15   :  { %61 = vadd.xlane.f32.xlu2 %v60_v17  ;;  %v103_v4 = vmul.f32 32.0, %v3646_v3  ;;  %vm107_vm1 = vweird.f32 %v3646_v3 }
  0x17   :  { %v104_v6 = vsub.f32 1.0, %v103_v4 }
  0x19   :  { %v105_v8 = vmul.f32 %v3646_v3, %v104_v6 }
  0x1b   :  { %91 = vadd.xlane.f32.xlu1 %v90_v21  ;;  %64 = vadd.xlane.f32.xlu0 %v63_v22  ;;  %v106_v9 = vadd.f32 %v3646_v3, %v105_v8  ;;  %v3535_v21 = vld [vmem:[%s6280_s1 + $0x8] sm:$0xff] }
  0x1c   :  { %v3537_v22 = vld [vmem:[%s6280_s1 + $0x28] sm:$0xff]  ;;  %554 = vmatpush.bf16.msra.mxu0 %v3535_v21  ;;  %3637 = vmatpush.bf16.msra.mxu3 %v3535_v21 }
  0x1d   :  { %94 = vadd.xlane.f32.xlu2 %v93_v23  ;;  %v4106_v10 = vsel %vm107_vm1, %v3646_v3, %v106_v9  ;;  %620 = vmatpush.bf16.msra.mxu1 %v3537_v22 }
  0x1e   :  { %3639 = vmatpush.bf16.msra.mxu2 %v3537_v22  ;;  %v4165_v22 = vperm.slane %v52_v2, 1 }
  0x23   :  { %151 = vadd.xlane.f32.xlu1 %v150_v27  ;;  %148 = vadd.xlane.f32.xlu0 %v147_v28  ;;  %v3534_v27 = vld [vmem:[%s6280_s1] sm:$0xff] }
  0x24   :  { %v3536_v28 = vld [vmem:[%s6280_s1 + $0x20] sm:$0xff]  ;;  %555 = vmatpush.bf16.msra.mxu0 %v3534_v27  ;;  %3638 = vmatpush.bf16.msra.mxu3 %v3534_v27 }
  0x25   :  { %178 = vadd.xlane.f32.xlu2 %v177_v29  ;;  %621 = vmatpush.bf16.msra.mxu1 %v3536_v28 }
  0x26   :  { %3640 = vmatpush.bf16.msra.mxu2 %v3536_v28 }
  0x2b   :  { %67 = vadd.xlane.f32.xlu1 %v66_v33  ;;  %181 = vadd.xlane.f32.xlu0 %v180_v34 }
  0x2d   :  { %70 = vadd.xlane.f32.xlu2 %v69_v35 }
  0x33   :  { %100 = vadd.xlane.f32.xlu1 %v99_v39  ;;  %97 = vadd.xlane.f32.xlu0 %v96_v40 }
  0x35   :  { %154 = vadd.xlane.f32.xlu2 %v153_v41 }
  0x3b   :  { %184 = vadd.xlane.f32.xlu1 %v183_v45  ;;  %157 = vadd.xlane.f32.xlu0 %v156_v46 }
  0x3d   :  { %187 = vadd.xlane.f32.xlu2 %v186_v47 }
  0x43   :  { %76 = vadd.xlane.f32.xlu1 %v75_v51  ;;  %73 = vadd.xlane.f32.xlu0 %v72_v52 }
  0x45   :  { %160 = vadd.xlane.f32.xlu2 %v159_v53 }
  0x4b   :  { %79 = vadd.xlane.f32.xlu1 %v78_v57  ;;  %163 = vadd.xlane.f32.xlu0 %v162_v58 }
  0x4d   :  { %82 = vadd.xlane.f32.xlu2 %v81_v59 }
  0x53   :  { %169 = vadd.xlane.f32.xlu1 %v168_v62  ;;  %166 = vadd.xlane.f32.xlu0 %v165_v63 }
  0x76   :  { %v86_v11 = vpop.xlane.xlu1 %85  ;;  %v56_v12 = vpop.xlane.xlu0 %55 }
  0x77   :  { %v4109_v13 = vmul.f32 %v4106_v10, %v56_v12  ;;  %v4132_v34 = vmul.f32 %v4106_v10, %v86_v11  ;;  %v4155_v12 = vperm.slane %v52_v2, 0 }
  0x78   :  { %v143_v15 = vpop.xlane.xlu2 %142 }
  0x79   :  { %v221_v16 = vmul.f32 %v4109_v13, %v4109_v13  ;;  %v189_v17 = vmul.f32 %v143_v15, %v4106_v10  ;;  %v231_v41 = vmul.f32 %v4132_v34, %v4132_v34  ;;  %v205_v11 = vsub.f32 %v3954_v1, %v4109_v13 }
  0x7a   :  { %v215_v21 = vsub.f32 %v3949_v0, %v4132_v34 }
  0x7b   :  { %v237_v23 = vsub.f32 %v189_v17, %v221_v16 }
  0x7d   :  { %v253_v24 = vadd.f32 1e-05, %v237_v23 }
  0x7e   :  { %v89_v25 = vpop.xlane.xlu1 %88  ;;  %v59_v26 = vpop.xlane.xlu0 %58 }
  0x7f   :  { %v4127_v29 = vmul.f32 %v4106_v10, %v59_v26  ;;  %3647 = vrsqrt.f32 %v253_v24  ;;  %v4136_v38 = vmul.f32 %v4106_v10, %v89_v25  ;;  %vm275_vm3 = vweird.f32 %v253_v24 }
  0x80   :  { %v146_v30 = vpop.xlane.xlu2 %145 }
  0x81   :  { %v222_v33 = vmul.f32 %v4127_v29, %v4127_v29  ;;  %v190_v35 = vmul.f32 %v146_v30, %v4106_v10  ;;  %v232_v46 = vmul.f32 %v4136_v38, %v4136_v38  ;;  %v216_v1 = vsub.f32 %v3971_v7, %v4136_v38 }
  0x82   :  { %v206_v27 = vsub.f32 %v3965_v5, %v4127_v29 }
  0x83   :  { %v238_v39 = vsub.f32 %v190_v35, %v222_v33 }
  0x85   :  { %v3648_v40 = vpop.eup %3647  ;;  %v254_v42 = vadd.f32 1e-05, %v238_v39 }
  0x86   :  { %v176_v43 = vpop.xlane.xlu1 %175  ;;  %v173_v44 = vpop.xlane.xlu0 %172  ;;  %v270_v45 = vmul.f32 %v3648_v40, %v253_v24  ;;  %vm276_vm2 = vweird.f32 %v3648_v40 }
  0x87   :  { %v200_v47 = vmul.f32 %v176_v43, %v4106_v10  ;;  %v199_v50 = vmul.f32 %v173_v44, %v4106_v10  ;;  %3649 = vrsqrt.f32 %v254_v42  ;;  %vm277_vm4 = vmor %vm275_vm3, %vm276_vm2  ;;  %vm285_vm6 = vweird.f32 %v254_v42 }
  0x88   :  { %v62_v51 = vpop.xlane.xlu2 %61  ;;  %v271_v52 = vmul.f32 %v3648_v40, %v270_v45 }
  0x89   :  { %v248_v53 = vsub.f32 %v200_v47, %v232_v46  ;;  %v247_v54 = vsub.f32 %v199_v50, %v231_v41  ;;  %v4158_v15 = vmul.f32 %v4106_v10, %v62_v51 }
  0x8a   :  { %v272_v57 = vmul.f32 0.5, %v271_v52 }
  0x8b   :  { %v4144_v58 = vadd.f32 1e-05, %v248_v53  ;;  %v4146_v59 = vadd.f32 1e-05, %v247_v54  ;;  %v223_v33 = vmul.f32 %v4158_v15, %v4158_v15 }
  0x8c   :  { %v273_v60 = vsub.f32 1.5, %v272_v57 }
  0x8d   :  { %3651 = vrsqrt.f32 %v4144_v58  ;;  %v3650_v61 = vpop.eup %3649  ;;  %vm385_vm10 = vweird.f32 %v4144_v58  ;;  %vm375_vm12 = vweird.f32 %v4146_v59 }
  0x8e   :  { %3653 = vrsqrt.f32 %v4146_v59  ;;  %v92_v62 = vpop.xlane.xlu1 %91  ;;  %v65_v63 = vpop.xlane.xlu0 %64  ;;  %v274_v3 = vmul.f32 %v3648_v40, %v273_v60  ;;  %v280_v4 = vmul.f32 %v3650_v61, %v254_v42  ;;  %vm286_vm5 = vweird.f32 %v3650_v61 }
  0x8f   :  { %v4161_v16 = vmul.f32 %v4106_v10, %v65_v63  ;;  %v4171_v26 = vmul.f32 %v4106_v10, %v92_v62  ;;  %vm287_vm7 = vmor %vm285_vm6, %vm286_vm5 }
  0x90   :  { %v95_v6 = vpop.xlane.xlu2 %94  ;;  %v278_v8 = vsel %vm277_vm4, %v3648_v40, %v274_v3  ;;  %v281_v9 = vmul.f32 %v3650_v61, %v280_v4 }
  0x91   :  { %v429_v25 = vmul.f32 %v278_v8, %v205_v11  ;;  %v224_v7 = vmul.f32 %v4161_v16, %v4161_v16  ;;  %v233_v42 = vmul.f32 %v4171_v26, %v4171_v26  ;;  %v4186_v43 = vmul.f32 %v4106_v10, %v95_v6 }
  0x92   :  { %v282_v23 = vmul.f32 0.5, %v281_v9 }
  0x93   :  { %v3652_v17 = vpop.eup %3651  ;;  %v446_v29 = vmul.f32 %v4155_v12, %v429_v25  ;;  %v234_v25 = vmul.f32 %v4186_v43, %v4186_v43 }
  0x94   :  { %v3654_v24 = vpop.eup %3653  ;;  %v380_v13 = vmul.f32 %v3652_v17, %v4144_v58  ;;  %v283_v28 = vsub.f32 1.5, %v282_v23  ;;  %vm386_vm8 = vweird.f32 %v3652_v17 }
  0x95   :  { %v370_v0 = vmul.f32 %v3654_v24, %v4146_v59  ;;  %vm376_vm9 = vweird.f32 %v3654_v24  ;;  %v463_v2 = vadd.f32 %v4165_v22, %v446_v29  ;;  %vm387_vm11 = vmor %vm385_vm10, %vm386_vm8 }
  0x96   :  { %v381_v30 = vmul.f32 %v3652_v17, %v380_v13  ;;  %v152_v34 = vpop.xlane.xlu1 %151  ;;  %v149_v35 = vpop.xlane.xlu0 %148  ;;  %v284_v38 = vmul.f32 %v3650_v61, %v283_v28  ;;  %vm377_vm13 = vmor %vm375_vm12, %vm376_vm9 }
  0x97   :  { %v371_v39 = vmul.f32 %v3654_v24, %v370_v0  ;;  %v192_v40 = vmul.f32 %v152_v34, %v4106_v10  ;;  %v191_v5 = vmul.f32 %v149_v35, %v4106_v10 }
  0x98   :  { %v382_v41 = vmul.f32 0.5, %v381_v30  ;;  %v179_v44 = vpop.xlane.xlu2 %178  ;;  %v288_v45 = vsel %vm287_vm7, %v3650_v61, %v284_v38 }
  0x99   :  { %v372_v46 = vmul.f32 0.5, %v371_v39  ;;  %v240_v47 = vsub.f32 %v192_v40, %v224_v7  ;;  %v239_v50 = vsub.f32 %v191_v5, %v223_v33  ;;  %v430_v51 = vmul.f32 %v288_v45, %v206_v27 }
  0x9a   :  { %v383_v52 = vsub.f32 1.5, %v382_v41  ;;  %v201_v53 = vmul.f32 %v179_v44, %v4106_v10  ;;  %v207_v40 = vsub.f32 %v3987_v14, %v4158_v15  ;;  %v217_v44 = vsub.f32 %v3996_v18, %v4171_v26 }
  0x9b   :  { %v373_v54 = vsub.f32 1.5, %v372_v46  ;;  %v4189_v57 = vadd.f32 1e-05, %v240_v47  ;;  %v4191_v60 = vadd.f32 1e-05, %v239_v50  ;;  %v447_v62 = vmul.f32 %v4155_v12, %v430_v51 }
  0x9c   :  { %v384_v63 = vmul.f32 %v3652_v17, %v383_v52  ;;  %v249_v61 = vsub.f32 %v201_v53, %v233_v42  ;;  %v208_v45 = vsub.f32 %v4001_v19, %v4161_v16 }
  0x9d   :  { %v374_v3 = vmul.f32 %v3654_v24, %v373_v54  ;;  %3655 = vrsqrt.f32 %v4189_v57  ;;  %v464_v4 = vadd.f32 %v4165_v22, %v447_v62  ;;  %vm305_vm14 = vweird.f32 %v4189_v57 }
  0x9e   :  { %v388_v6 = vsel %vm387_vm11, %v3652_v17, %v384_v63  ;;  %3657 = vrsqrt.f32 %v4191_v60  ;;  %v4200_v8 = vadd.f32 1e-05, %v249_v61  ;;  %v68_v9 = vpop.xlane.xlu1 %67  ;;  %v182_v11 = vpop.xlane.xlu0 %181  ;;  %vm295_vm15 = vweird.f32 %v4191_v60 }
  0x9f   :  { %v440_v58 = vmul.f32 %v388_v6, %v216_v1  ;;  %v378_v23 = vsel %vm377_vm13, %v3654_v24, %v374_v3  ;;  %v202_v13 = vmul.f32 %v182_v11, %v4106_v10  ;;  %v4206_v28 = vpack.c.bf16 %v464_v4, %v463_v2 }
  0xa0   :  { %v439_v59 = vmul.f32 %v378_v23, %v215_v21  ;;  %3659 = vrsqrt.f32 %v4200_v8  ;;  %v71_v27 = vpop.xlane.xlu2 %70  ;;  %v4221_v38 = vmul.f32 %v4106_v10, %v68_v9  ;;  %vm395_vm3 = vweird.f32 %v4200_v8 }
  0xa1   :  { %v457_v17 = vmul.f32 %v4155_v12, %v440_v58  ;;  %v250_v0 = vsub.f32 %v202_v13, %v234_v25  ;;  %3191 = vmatmul.msk.bf16.vlgmr.msra.gmra.mxu0 %vm53_vm0, %v4206_v28  ;;  %3211 = vmatmul.msk.bf16.vlgmr.msra.gmra.mxu1 %vm53_vm0, %v4206_v28  ;;  %v4236_v14 = vmul.f32 %v4106_v10, %v71_v27 }
  0xa2   :  { %v456_v30 = vmul.f32 %v4155_v12, %v439_v59  ;;  %v225_v16 = vmul.f32 %v4221_v38, %v4221_v38 }
  0xa3   :  { %v3656_v24 = vpop.eup %3655  ;;  %v474_v1 = vadd.f32 %v4165_v22, %v457_v17  ;;  %v4215_v21 = vadd.f32 1e-05, %v250_v0  ;;  %v226_v3 = vmul.f32 %v4236_v14, %v4236_v14 }
  0xa4   :  { %v3658_v33 = vpop.eup %3657  ;;  %v473_v7 = vadd.f32 %v4165_v22, %v456_v30  ;;  %v300_v34 = vmul.f32 %v3656_v24, %v4189_v57  ;;  %vm306_vm1 = vweird.f32 %v3656_v24 }
  0xa5   :  { %v290_v35 = vmul.f32 %v3658_v33, %v4191_v60  ;;  %3661 = vrsqrt.f32 %v4215_v21  ;;  %vm296_vm2 = vweird.f32 %v3658_v33  ;;  %vm307_vm4 = vmor %vm305_vm14, %vm306_vm1  ;;  %vm405_vm9 = vweird.f32 %v4215_v21 }
  0xa6   :  { %v3660_v39 = vpop.eup %3659  ;;  %v301_v5 = vmul.f32 %v3656_v24, %v300_v34  ;;  %v101_v29 = vpop.xlane.xlu1 %100  ;;  %v4226_v42 = vpack.c.bf16 %v474_v1, %v473_v7  ;;  %vm297_vm6 = vmor %vm295_vm15, %vm296_vm2 }
  0xa7   :  { %v98_v41 = vpop.xlane.xlu0 %97  ;;  %v291_v46 = vmul.f32 %v3658_v33, %v290_v35  ;;  %v390_v47 = vmul.f32 %v3660_v39, %v4200_v8  ;;  %v4245_v26 = vmul.f32 %v4106_v10, %v101_v29  ;;  %vm396_vm5 = vweird.f32 %v3660_v39 }
  0xa8   :  { %v302_v50 = vmul.f32 0.5, %v301_v5  ;;  %3196 = vmatmul.msk.bf16.vlgmr.msra.gmra.mxu3 %vm53_vm0, %v4226_v42  ;;  %3216 = vmatmul.msk.bf16.vlgmr.msra.gmra.mxu2 %vm53_vm0, %v4226_v42  ;;  %v155_v18 = vpop.xlane.xlu2 %154  ;;  %v4248_v52 = vmul.f32 %v4106_v10, %v98_v41  ;;  %vm397_vm7 = vmor %vm395_vm3, %vm396_vm5 }
  0xa9   :  { %v292_v15 = vmul.f32 0.5, %v291_v46  ;;  %v391_v19 = vmul.f32 %v3660_v39, %v390_v47  ;;  %v193_v53 = vmul.f32 %v155_v18, %v4106_v10  ;;  %v236_v11 = vmul.f32 %v4245_v26, %v4245_v26 }
  0xaa   :  { %v303_v51 = vsub.f32 1.5, %v302_v50  ;;  %v235_v25 = vmul.f32 %v4248_v52, %v4248_v52  ;;  %v218_v18 = vsub.f32 %v4006_v20, %v4186_v43 }
  0xab   :  { %v3662_v54 = vpop.eup %3661  ;;  %v293_v62 = vsub.f32 1.5, %v292_v15  ;;  %v392_v63 = vmul.f32 0.5, %v391_v19  ;;  %v241_v4 = vsub.f32 %v193_v53, %v225_v16 }
  0xac   :  { %v304_v61 = vmul.f32 %v3656_v24, %v303_v51  ;;  %v400_v2 = vmul.f32 %v3662_v54, %v4215_v21  ;;  %vm406_vm8 = vweird.f32 %v3662_v54 }
  0xad   :  { %v294_v6 = vmul.f32 %v3658_v33, %v293_v62  ;;  %v393_v9 = vsub.f32 1.5, %v392_v63  ;;  %v4263_v13 = vadd.f32 1e-05, %v241_v4  ;;  %vm407_vm10 = vmor %vm405_vm9, %vm406_vm8 }
  0xae   :  { %v308_v58 = vsel %vm307_vm4, %v3656_v24, %v304_v61  ;;  %v401_v23 = vmul.f32 %v3662_v54, %v400_v2  ;;  %v185_v59 = vpop.xlane.xlu1 %184 }
  0xaf   :  { %v158_v27 = vpop.xlane.xlu0 %157  ;;  %v432_v57 = vmul.f32 %v308_v58, %v208_v45  ;;  %v298_v17 = vsel %vm297_vm6, %v3658_v33, %v294_v6  ;;  %v394_v0 = vmul.f32 %v3660_v39, %v393_v9  ;;  %v203_v30 = vmul.f32 %v185_v59, %v4106_v10 }
  0xb0   :  { %v431_v1 = vmul.f32 %v298_v17, %v207_v40  ;;  %v402_v24 = vmul.f32 0.5, %v401_v23  ;;  %3663 = vrsqrt.f32 %v4263_v13  ;;  %v188_v60 = vpop.xlane.xlu2 %187  ;;  %v194_v5 = vmul.f32 %v158_v27, %v4106_v10 }
  0xb1   :  { %v449_v7 = vmul.f32 %v4155_v12, %v432_v57  ;;  %v398_v34 = vsel %vm397_vm7, %v3660_v39, %v394_v0  ;;  %v251_v35 = vsub.f32 %v203_v30, %v235_v25  ;;  %v204_v40 = vmul.f32 %v188_v60, %v4106_v10  ;;  %v3539_v25 = vld [vmem:[%s6280_s1 + $0x48] sm:$0xff] }
  0xb2   :  { %v448_v33 = vmul.f32 %v4155_v12, %v431_v1  ;;  %v441_v29 = vmul.f32 %v398_v34, %v217_v44  ;;  %v403_v41 = vsub.f32 1.5, %v402_v24  ;;  %v242_v46 = vsub.f32 %v194_v5, %v226_v3  ;;  %686 = vmatpush.bf16.msrb.mxu2 %v3539_v25 }
  0xb3   :  { %v466_v8 = vadd.f32 %v4165_v22, %v449_v7  ;;  %v4274_v45 = vadd.f32 1e-05, %v251_v35  ;;  %v252_v39 = vsub.f32 %v204_v40, %v236_v11  ;;  %v209_v57 = vsub.f32 %v4028_v31, %v4221_v38 }
  0xb4   :  { %v465_v47 = vadd.f32 %v4165_v22, %v448_v33  ;;  %v404_v50 = vmul.f32 %v3662_v54, %v403_v41  ;;  %v4282_v44 = vadd.f32 1e-05, %v242_v46  ;;  %v458_v19 = vmul.f32 %v4155_v12, %v441_v29 }
  0xb5   :  { %3665 = vrsqrt.f32 %v4274_v45  ;;  %v4287_v51 = vadd.f32 1e-05, %v252_v39  ;;  %v210_v24 = vsub.f32 %v4033_v32, %v4236_v14  ;;  %v3538_v32 = vld [vmem:[%s6280_s1 + $0x40] sm:$0xff]  ;;  %vm315_vm12 = vweird.f32 %v4263_v13 }
  0xb6   :  { %v4284_v15 = vpop.eup %3663  ;;  %v408_v16 = vsel %vm407_vm10, %v3662_v54, %v404_v50  ;;  %v77_v53 = vpop.xlane.xlu1 %76  ;;  %v4289_v21 = vpack.c.bf16 %v466_v8, %v465_v47  ;;  %3667 = vrsqrt.f32 %v4282_v44  ;;  %v475_v4 = vadd.f32 %v4165_v22, %v458_v19  ;;  %687 = vmatpush.bf16.msrb.mxu2 %v3538_v32 }
  0xb7   :  { %v74_v62 = vpop.xlane.xlu0 %73  ;;  %v442_v63 = vmul.f32 %v408_v16, %v218_v18  ;;  %v310_v20 = vmul.f32 %v4284_v15, %v4263_v13  ;;  %3669 = vrsqrt.f32 %v4287_v51  ;;  %v4310_v58 = vmul.f32 %v4106_v10, %v77_v53 }
  0xb8   :  { %3192 = vmatmul.msk.bf16.gmra.mxu0 %vm53_vm0, %v4289_v21  ;;  %3212 = vmatmul.msk.bf16.gmra.mxu1 %vm53_vm0, %v4289_v21  ;;  %v161_v43 = vpop.xlane.xlu2 %160  ;;  %v4302_v2 = vmul.f32 %v4106_v10, %v74_v62  ;;  %vm316_vm11 = vweird.f32 %v4284_v15  ;;  %v219_v8 = vsub.f32 %v4048_v37, %v4248_v52  ;;  %vm415_vm14 = vweird.f32 %v4274_v45 }
  0xb9   :  { %v459_v54 = vmul.f32 %v4155_v12, %v442_v63  ;;  %v311_v61 = vmul.f32 %v4284_v15, %v310_v20  ;;  %v195_v3 = vmul.f32 %v161_v43, %v4106_v10  ;;  %v228_v5 = vmul.f32 %v4310_v58, %v4310_v58  ;;  %vm4354_vm13 = vmor %vm315_vm12, %vm316_vm11 }
  0xba   :  { %v227_v23 = vmul.f32 %v4302_v2, %v4302_v2  ;;  %vm325_vm1 = vweird.f32 %v4282_v44  ;;  %vm425_vm5 = vweird.f32 %v4287_v51 }
  0xbb   :  { %v4306_v6 = vpop.eup %3665  ;;  %v476_v9 = vadd.f32 %v4165_v22, %v459_v54  ;;  %v312_v11 = vmul.f32 0.5, %v311_v61 }
  0xbc   :  { %v410_v59 = vmul.f32 %v4306_v6, %v4274_v45  ;;  %v4319_v27 = vpop.eup %3667  ;;  %v243_v0 = vsub.f32 %v195_v3, %v227_v23  ;;  %vm416_vm15 = vweird.f32 %v4306_v6 }
  0xbd   :  { %v313_v17 = vsub.f32 1.5, %v312_v11  ;;  %v4323_v30 = vpack.c.bf16 %v476_v9, %v475_v4  ;;  %v4325_v1 = vpop.eup %3669  ;;  %v320_v7 = vmul.f32 %v4319_v27, %v4282_v44  ;;  %vm326_vm2 = vweird.f32 %v4319_v27  ;;  %vm417_vm3 = vmor %vm415_vm14, %vm416_vm15 }
  0xbe   :  { %v411_v60 = vmul.f32 %v4306_v6, %v410_v59  ;;  %v80_v34 = vpop.xlane.xlu1 %79  ;;  %v420_v38 = vmul.f32 %v4325_v1, %v4287_v51  ;;  %v4338_v33 = vadd.f32 1e-05, %v243_v0  ;;  %vm426_vm4 = vweird.f32 %v4325_v1  ;;  %vm327_vm6 = vmor %vm325_vm1, %vm326_vm2 }
  0xbf   :  { %v164_v35 = vpop.xlane.xlu0 %163  ;;  %v314_v31 = vmul.f32 %v4284_v15, %v313_v17  ;;  %3197 = vmatmul.msk.bf16.gmra.mxu3 %vm53_vm0, %v4323_v30  ;;  %3217 = vmatmul.msk.bf16.gmra.mxu2 %vm53_vm0, %v4323_v30  ;;  %v321_v29 = vmul.f32 %v4319_v27, %v320_v7  ;;  %v4366_v39 = vmul.f32 %v4106_v10, %v80_v34  ;;  %vm427_vm7 = vmor %vm425_vm5, %vm426_vm4  ;;  %vm777_vm5 = vcmask 130048  }
  0xc0   :  { %v412_v14 = vmul.f32 0.5, %v411_v60  ;;  %v196_v41 = vmul.f32 %v164_v35, %v4106_v10  ;;  %v83_v40 = vpop.xlane.xlu2 %82  ;;  %v421_v47 = vmul.f32 %v4325_v1, %v420_v38  ;;  %3671 = vrsqrt.f32 %v4338_v33 }
  0xc1   :  { %v318_v13 = vsel %vm4354_vm13, %v4284_v15, %v314_v31  ;;  %v322_v37 = vmul.f32 0.5, %v321_v29  ;;  %v4369_v19 = vmul.f32 %v4106_v10, %v83_v40  ;;  %v229_v11 = vmul.f32 %v4366_v39, %v4366_v39 }
  0xc2   :  { %v413_v50 = vsub.f32 1.5, %v412_v14  ;;  %v422_v52 = vmul.f32 0.5, %v421_v47  ;;  %v244_v18 = vsub.f32 %v196_v41, %v228_v5  ;;  %v433_v15 = vmul.f32 %v318_v13, %v209_v57 }
  0xc3   :  { %v323_v53 = vsub.f32 1.5, %v322_v37  ;;  %v230_v54 = vmul.f32 %v4369_v19, %v4369_v19  ;;  %v220_v51 = vsub.f32 %v4043_v36, %v4245_v26  ;;  %vm335_vm9 = vweird.f32 %v4338_v33 }
  0xc4   :  { %v414_v16 = vmul.f32 %v4306_v6, %v413_v50  ;;  %v423_v62 = vsub.f32 1.5, %v422_v52  ;;  %v4377_v63 = vadd.f32 1e-05, %v244_v18  ;;  %v450_v25 = vmul.f32 %v4155_v12, %v433_v15 }
  0xc5   :  { %v324_v43 = vmul.f32 %v4319_v27, %v323_v53 }
  0xc6   :  { %v418_v20 = vsel %vm417_vm3, %v4306_v6, %v414_v16  ;;  %v170_v61 = vpop.xlane.xlu1 %169  ;;  %v3672_v4 = vpop.eup %3671  ;;  %v424_v45 = vmul.f32 %v4325_v1, %v423_v62  ;;  %3673 = vrsqrt.f32 %v4377_v63  ;;  %v467_v5 = vadd.f32 %v4165_v22, %v450_v25 }
  0xc7   :  { %v167_v3 = vpop.xlane.xlu0 %166  ;;  %v443_v9 = vmul.f32 %v418_v20, %v219_v8  ;;  %v328_v6 = vsel %vm327_vm6, %v4319_v27, %v324_v43  ;;  %v330_v23 = vmul.f32 %v3672_v4, %v4338_v33  ;;  %v198_v44 = vmul.f32 %v170_v61, %v4106_v10 }
  0xc8   :  { %v434_v59 = vmul.f32 %v328_v6, %v210_v24  ;;  %v428_v57 = vsel %vm427_vm7, %v4325_v1, %v424_v45  ;;  %v197_v17 = vmul.f32 %v167_v3, %v4106_v10  ;;  %vm336_vm8 = vweird.f32 %v3672_v4 }
  0xc9   :  { %v460_v0 = vmul.f32 %v4155_v12, %v443_v9  ;;  %v444_v60 = vmul.f32 %v428_v57, %v220_v51  ;;  %v331_v36 = vmul.f32 %v3672_v4, %v330_v23  ;;  %v246_v26 = vsub.f32 %v198_v44, %v230_v54  ;;  %vm337_vm10 = vmor %vm335_vm9, %vm336_vm8 }
  0xca   :  { %v451_v27 = vmul.f32 %v4155_v12, %v434_v59  ;;  %v245_v7 = vsub.f32 %v197_v17, %v229_v11  ;;  %v211_v33 = vsub.f32 %v4069_v48, %v4302_v2  ;;  %vm345_vm12 = vweird.f32 %v4377_v63 }
  0xcb   :  { %v461_v34 = vmul.f32 %v4155_v12, %v444_v60  ;;  %v332_v35 = vmul.f32 0.5, %v331_v36  ;;  %v262_v31 = vadd.f32 1e-05, %v246_v26  ;;  %v477_v32 = vadd.f32 %v4165_v22, %v460_v0  ;;  %v3542_v36 = vld [vmem:[%s6280_s1 + $0x18] sm:$0xff] }
  0xcc   :  { %v3674_v38 = vpop.eup %3673  ;;  %v468_v24 = vadd.f32 %v4165_v22, %v451_v27  ;;  %v261_v1 = vadd.f32 1e-05, %v245_v7  ;;  %v212_v62 = vsub.f32 %v4074_v49, %v4310_v58  ;;  %v213_v44 = vsub.f32 %v4088_v55, %v4366_v39  ;;  %1217 = vmatpush.bf16.msra.mxu2 %v3542_v36  ;;  %v3541_v7 = vld [vmem:[%s6280_s1 + $0x10] sm:$0xff] }
  0xcd   :  { %v478_v14 = vadd.f32 %v4165_v22, %v461_v34  ;;  %v333_v29 = vsub.f32 1.5, %v332_v35  ;;  %v340_v41 = vmul.f32 %v3674_v38, %v4377_v63  ;;  %3675 = vrsqrt.f32 %v262_v31 }
  0xce   :  { %v4409_v40 = vpack.c.bf16 %v468_v24, %v467_v5  ;;  %3677 = vrsqrt.f32 %v261_v1  ;;  %vm346_vm11 = vweird.f32 %v3674_v38  ;;  %vm365_vm14 = vweird.f32 %v262_v31 }
  0xcf   :  { %v334_v8 = vmul.f32 %v3672_v4, %v333_v29  ;;  %v341_v46 = vmul.f32 %v3674_v38, %v340_v41  ;;  %v4411_v47 = vpack.c.bf16 %v478_v14, %v477_v32  ;;  %vm347_vm13 = vmor %vm345_vm12, %vm346_vm11  ;;  %vm355_vm3 = vweird.f32 %v261_v1 }
  0xd0   :  { %3193 = vmatmul.msk.bf16.gmra.mxu0 %vm53_vm0, %v4409_v40  ;;  %3213 = vmatmul.msk.bf16.gmra.mxu1 %vm53_vm0, %v4409_v40  ;;  %v214_v25 = vsub.f32 %v4093_v56, %v4369_v19 }
  0xd1   :  { %v338_v13 = vsel %vm337_vm10, %v3672_v4, %v334_v8  ;;  %v342_v50 = vmul.f32 0.5, %v341_v46  ;;  %3198 = vmatmul.msk.bf16.gmra.mxu3 %vm53_vm0, %v4411_v47  ;;  %3218 = vmatmul.msk.bf16.gmra.mxu2 %vm53_vm0, %v4411_v47 }
  0xd2   :  { %v435_v18 = vmul.f32 %v338_v13, %v211_v33  ;;  %1218 = vmatpush.bf16.msra.mxu2 %v3541_v7 }
  0xd3   :  { %v343_v37 = vsub.f32 1.5, %v342_v50  ;;  %v3676_v52 = vpop.eup %3675 }
  0xd4   :  { %v3678_v16 = vpop.eup %3677  ;;  %v360_v15 = vmul.f32 %v3676_v52, %v262_v31  ;;  %v452_v61 = vmul.f32 %v4155_v12, %v435_v18  ;;  %vm366_vm15 = vweird.f32 %v3676_v52 }
  0xd5   :  { %v344_v53 = vmul.f32 %v3674_v38, %v343_v37  ;;  %v350_v20 = vmul.f32 %v3678_v16, %v261_v1  ;;  %vm356_vm1 = vweird.f32 %v3678_v16  ;;  %vm367_vm2 = vmor %vm365_vm14, %vm366_vm15 }
  0xd6   :  { %v361_v54 = vmul.f32 %v3676_v52, %v360_v15  ;;  %v469_v63 = vadd.f32 %v4165_v22, %v452_v61  ;;  %vm357_vm4 = vmor %vm355_vm3, %vm356_vm1 }
  0xd7   :  { %v348_v43 = vsel %vm347_vm13, %v3674_v38, %v344_v53  ;;  %v351_v48 = vmul.f32 %v3678_v16, %v350_v20 }
  0xd8   :  { %v436_v3 = vmul.f32 %v348_v43, %v212_v62  ;;  %v362_v2 = vmul.f32 0.5, %v361_v54 }
  0xd9   :  { %v352_v9 = vmul.f32 0.5, %v351_v48 }
  0xda   :  { %v453_v4 = vmul.f32 %v4155_v12, %v436_v3  ;;  %v363_v45 = vsub.f32 1.5, %v362_v2 }
  0xdb   :  { %v353_v49 = vsub.f32 1.5, %v352_v9 }
  0xdc   :  { %v470_v11 = vadd.f32 %v4165_v22, %v453_v4  ;;  %v364_v58 = vmul.f32 %v3676_v52, %v363_v45 }
  0xdd   :  { %v354_v51 = vmul.f32 %v3678_v16, %v353_v49 }
  0xde   :  { %v4430_v6 = vpack.c.bf16 %v470_v11, %v469_v63  ;;  %v368_v23 = vsel %vm367_vm2, %v3676_v52, %v364_v58 }
  0xdf   :  { %v358_v59 = vsel %vm357_vm4, %v3678_v16, %v354_v51  ;;  %v438_v57 = vmul.f32 %v368_v23, %v214_v25 }
  0xe0   :  { %3194 = vmatmul.msk.bf16.gmra.mxu0 %vm53_vm0, %v4430_v6  ;;  %3214 = vmatmul.msk.bf16.gmra.mxu1 %vm53_vm0, %v4430_v6  ;;  %v437_v17 = vmul.f32 %v358_v59, %v213_v44  ;;  %v4511_v44 = vld [vmem:[%s6282_s3] ss:$0 sm:$0xff] }
  0xe1   :  { %3231 = vmatmul.msk.bf16.vlgmr.msrb.gmra.mxu2 %vm53_vm0, %v4206_v28  ;;  %v455_v0 = vmul.f32 %v4155_v12, %v438_v57 }
  0xe2   :  { %v454_v60 = vmul.f32 %v4155_v12, %v437_v17 }
  0xe3   :  { %v472_v55 = vadd.f32 %v4165_v22, %v455_v0 }
  0xe4   :  { %v471_v56 = vadd.f32 %v4165_v22, %v454_v60 }
  0xe6   :  { %v4446_v39 = vpack.c.bf16 %v472_v55, %v471_v56 }
  0xf0   :  { %3195 = vmatmul.msk.bf16.gmra.mxu0 %vm53_vm0, %v4446_v39  ;;  %3215 = vmatmul.msk.bf16.gmra.mxu1 %vm53_vm0, %v4446_v39 }
  0xf1   :  { %3232 = vmatmul.msk.bf16.gmra.mxu2 %vm53_vm0, %v4289_v21 }
 0x101   :  { %3233 = vmatmul.msk.bf16.gmra.mxu2 %vm53_vm0, %v4409_v40 }
 0x111   :  { %3234 = vmatmul.msk.bf16.gmra.mxu2 %vm53_vm0, %v4430_v6 }
 0x11e   :  { %v4460_v12 = vpop.f32.mrf.mxu1  ;;  %v557_v3 = vpop.f32.mrf.mxu0 }
 0x11f   :  { %v558_v57 = vadd.f32 %v4511_v44, %v557_v3 }
 0x121   :  { %3235 = vmatmul.msk.bf16.gmra.mxu2 %vm53_vm0, %v4446_v39 }
 0x126   :  { %v625_v19 = vpop.f32.mrf.mxu1  ;;  %v559_v9 = vpop.f32.mrf.mxu0 }
 0x127   :  { %v737_v51 = vpack.c.bf16 %v625_v19, %v4460_v12  ;;  %v560_v59 = vadd.f32 %v4511_v44, %v559_v9 }
 0x129   :  { %v803_v25 = vsel %vm777_vm5, %v737_v51, 0  ;;  %v729_v55 = vpack.c.bf16 %v560_v59, %v558_v57 }
 0x12b   :  { %v648_v22 = vpop.f32.mrf.mxu2 }
 0x131   :  { %3236 = vmatmul.msk.bf16.gmra.mxu2 %vm53_vm0, %v4226_v42 }
 0x133   :  { %v650_v26 = vpop.f32.mrf.mxu2 }
 0x134   :  { %v742_v50 = vpack.c.bf16 %v650_v26, %v648_v22 }
 0x135   :  { %v628_v27 = vpop.f32.mrf.mxu1  ;;  %v562_v58 = vpop.f32.mrf.mxu0 }
 0x136   :  { %v818_v18 = vsel %vm777_vm5, %v742_v50, 0  ;;  %v563_v19 = vadd.f32 %v4511_v44, %v562_v58 }
 0x13d   :  { %v630_v35 = vpop.f32.mrf.mxu1  ;;  %v564_v0 = vpop.f32.mrf.mxu0 }
 0x13e   :  { %v738_v45 = vpack.c.bf16 %v630_v35, %v628_v27  ;;  %v565_v22 = vadd.f32 %v4511_v44, %v564_v0 }
 0x140   :  { %v806_v49 = vsel %vm777_vm5, %v738_v45, 0  ;;  %v730_v26 = vpack.c.bf16 %v565_v22, %v563_v19 }
 0x141   :  { %3237 = vmatmul.msk.bf16.gmra.mxu2 %vm53_vm0, %v4323_v30 }
 0x142   :  { %v653_v34 = vpop.f32.mrf.mxu2 }
 0x14a   :  { %v655_v31 = vpop.f32.mrf.mxu2 }
 0x14b   :  { %v743_v41 = vpack.c.bf16 %v655_v31, %v653_v34 }
 0x14d   :  { %v633_v38 = vpop.f32.mrf.mxu1  ;;  %v821_v13 = vsel %vm777_vm5, %v743_v41, 0  ;;  %v567_v12 = vpop.f32.mrf.mxu0 }
 0x14e   :  { %v568_v31 = vadd.f32 %v4511_v44, %v567_v12 }
 0x151   :  { %3238 = vmatmul.msk.bf16.gmra.mxu2 %vm53_vm0, %v4411_v47 }
 0x154   :  { %v658_v5 = vpop.f32.mrf.mxu2 }
 0x155   :  { %v635_v24 = vpop.f32.mrf.mxu1  ;;  %v569_v27 = vpop.f32.mrf.mxu0 }
 0x156   :  { %v739_v48 = vpack.c.bf16 %v635_v24, %v633_v38  ;;  %v570_v35 = vadd.f32 %v4511_v44, %v569_v27  ;;  %v3623_v27 = vld [vmem:[%s6283_s4 + $0x10] sm:$0xff]  }
 0x158   :  { %v809_v4 = vsel %vm777_vm5, %v739_v48, 0 }
 0x15c   :  { %v660_v1 = vpop.f32.mrf.mxu2 }
 0x15d   :  { %v638_v32 = vpop.f32.mrf.mxu1  ;;  %v744_v14 = vpack.c.bf16 %v660_v1, %v658_v5  ;;  %v572_v34 = vpop.f32.mrf.mxu0  ;;  %v731_v5 = vpack.c.bf16 %v570_v35, %v568_v31  ;;  %v3569_v31 = vunpack.c.h.bf16 %v3623_v27 }
 0x15f   :  { %v824_v29 = vsel %vm777_vm5, %v744_v14, 0  ;;  %v573_v14 = vadd.f32 %v4511_v44, %v572_v34 }
 0x160   :  { %826 = vmatpush.bf16.xpose.msrb.mxu3 %v824_v29 }
 0x161   :  { %3272 = vmatmul.msk.bf16.vlgmr.msra.gmra.mxu2 %vm53_vm0, %v4206_v28 }
 0x164   :  { %v4477_v8 = vpop.f32.mrf.mxu2 }
 0x165   :  { %v640_v46 = vpop.f32.mrf.mxu1  ;;  %v574_v24 = vpop.f32.mrf.mxu0 }
 0x166   :  { %v740_v20 = vpack.c.bf16 %v640_v46, %v638_v32  ;;  %v575_v32 = vadd.f32 %v4511_v44, %v574_v24  ;;  %v3624_v24 = vld [vmem:[%s6283_s4 + $0x18] sm:$0xff]  }
 0x168   :  { %827 = vmatpush.bf16.xpose.msrb.mxu3 %v821_v13  ;;  %v812_v61 = vsel %vm777_vm5, %v740_v20, 0  ;;  %v732_v46 = vpack.c.bf16 %v575_v32, %v573_v14 }
 0x16c   :  { %v4480_v33 = vpop.f32.mrf.mxu2 }
 0x16d   :  { %v643_v37 = vpop.f32.mrf.mxu1  ;;  %v1027_v52 = vpack.c.bf16 %v4480_v33, %v4477_v8  ;;  %v577_v41 = vpop.f32.mrf.mxu0  ;;  %v3559_v8 = vld [vmem:[%s6283_s4] sm:$0xff]  }
 0x16e   :  { %v3560_v33 = vunpack.c.l.bf16 %v3559_v8  ;;  %v3561_v0 = vunpack.c.h.bf16 %v3559_v8 }
 0x170   :  { %828 = vmatpush.bf16.xpose.msrb.mxu3 %v818_v18 }
 0x171   :  { %3273 = vmatmul.msk.bf16.gmra.mxu2 %vm53_vm0, %v4289_v21 }
 0x174   :  { %v4487_v16 = vpop.f32.mrf.mxu2 }
 0x175   :  { %v645_v53 = vpop.f32.mrf.mxu1  ;;  %v579_v50 = vpop.f32.mrf.mxu0 }
 0x176   :  { %v741_v15 = vpack.c.bf16 %v645_v53, %v643_v37  ;;  %v582_v37 = vpop.f32.mrf.mxu3  ;;  %v580_v18 = vadd.f32 %v4511_v44, %v579_v50  ;;  %v578_v53 = vadd.f32 %v4511_v44, %v577_v41 }
 0x178   :  { %v815_v62 = vsel %vm777_vm5, %v741_v15, 0  ;;  %v733_v20 = vpack.c.bf16 %v580_v18, %v578_v53 }
 0x179   :  { %829 = vmatpush.bf16.xpose.msrb.mxu3 %v815_v62 }
 0x17c   :  { %v4490_v43 = vpop.f32.mrf.mxu2 }
 0x17d   :  { %v1028_v54 = vpack.c.bf16 %v4490_v43, %v4487_v16 }
 0x17e   :  { %v584_v3 = vpop.f32.mrf.mxu3 }
 0x17f   :  { %v585_v9 = vadd.f32 %v4511_v44, %v584_v3 }
 0x181   :  { %830 = vmatpush.bf16.xpose.msrb.mxu3 %v812_v61  ;;  %3274 = vmatmul.msk.bf16.gmra.mxu2 %vm53_vm0, %v4409_v40 }
 0x184   :  { %v4497_v2 = vpop.f32.mrf.mxu2 }
 0x186   :  { %v587_v45 = vpop.f32.mrf.mxu3 }
 0x187   :  { %v588_v59 = vadd.f32 %v4511_v44, %v587_v45 }
 0x189   :  { %831 = vmatpush.bf16.xpose.msrb.mxu3 %v809_v4 }
 0x18c   :  { %v4500_v63 = vpop.f32.mrf.mxu2 }
 0x18d   :  { %v1029_v11 = vpack.c.bf16 %v4500_v63, %v4497_v2  ;;  %v3543_v2 = vld [vmem:[%s6280_s1 + $0x30] sm:$0xff] }
 0x18e   :  { %v589_v51 = vpop.f32.mrf.mxu3 }
 0x191   :  { %832 = vmatpush.bf16.xpose.msrb.mxu3 %v806_v49  ;;  %3275 = vmatmul.msk.bf16.gmra.mxu2 %vm53_vm0, %v4430_v6  ;;  %v583_v49 = vadd.f32 %v4511_v44, %v582_v37 }
 0x193   :  { %v734_v58 = vpack.c.bf16 %v585_v9, %v583_v49 }
 0x194   :  { %v704_v23 = vpop.f32.mrf.mxu2 }
 0x196   :  { %v592_v63 = vpop.f32.mrf.mxu3 }
 0x199   :  { %833 = vmatpush.bf16.xpose.msrb.mxu3 %v803_v25  ;;  %v590_v25 = vadd.f32 %v4511_v44, %v589_v51 }
 0x19c   :  { %v706_v17 = vpop.f32.mrf.mxu2 }
 0x19d   :  { %v1030_v60 = vpack.c.bf16 %v706_v17, %v704_v23  ;;  %v3544_v23 = vld [vmem:[%s6280_s1 + $0x38] sm:$0xff] }
 0x19e   :  { %v594_v16 = vpop.f32.mrf.mxu3 }
 0x19f   :  { %v595_v43 = vadd.f32 %v4511_v44, %v594_v16 }
 0x1a0   :  { %3239 = vmatmul.msk.bf16.vlgmr.msrb.gmra.mxu3 %vm777_vm5, %v729_v55 }
 0x1a1   :  { %3276 = vmatmul.msk.bf16.gmra.mxu2 %vm53_vm0, %v4446_v39  ;;  %1283 = vmatpush.bf16.msra.mxu3 %v3544_v23 }
 0x1a4   :  { %v709_v56 = vpop.f32.mrf.mxu2 }
 0x1a5   :  { %1284 = vmatpush.bf16.msra.mxu3 %v3543_v2 }
 0x1ac   :  { %v711_v36 = vpop.f32.mrf.mxu2 }
 0x1ad   :  { %v1031_v4 = vpack.c.bf16 %v711_v36, %v709_v56 }
 0x1b0   :  { %3240 = vmatmul.msk.bf16.gmra.mxu3 %vm777_vm5, %v730_v26 }
 0x1b1   :  { %3277 = vmatmul.msk.bf16.gmra.mxu2 %vm53_vm0, %v4226_v42 }
 0x1b4   :  { %v714_v7 = vpop.f32.mrf.mxu2 }
 0x1bc   :  { %v716_v38 = vpop.f32.mrf.mxu2 }
 0x1bd   :  { %v1032_v48 = vpack.c.bf16 %v716_v38, %v714_v7  ;;  %v3568_v7 = vunpack.c.l.bf16 %v3623_v27 }
 0x1c0   :  { %3241 = vmatmul.msk.bf16.gmra.mxu3 %vm777_vm5, %v731_v5 }
 0x1c1   :  { %3278 = vmatmul.msk.bf16.gmra.mxu2 %vm53_vm0, %v4323_v30 }
 0x1c4   :  { %v719_v1 = vpop.f32.mrf.mxu2 }
 0x1cc   :  { %v721_v29 = vpop.f32.mrf.mxu2 }
 0x1cd   :  { %v1033_v61 = vpack.c.bf16 %v721_v29, %v719_v1  ;;  %v3572_v1 = vunpack.c.l.bf16 %v3624_v24  ;;  %v3573_v29 = vunpack.c.h.bf16 %v3624_v24 }
 0x1d0   :  { %3242 = vmatmul.msk.bf16.gmra.mxu3 %vm777_vm5, %v732_v46 }
 0x1d1   :  { %3279 = vmatmul.msk.bf16.gmra.mxu2 %vm53_vm0, %v4411_v47 }
 0x1d4   :  { %v724_v13 = vpop.f32.mrf.mxu2 }
 0x1dc   :  { %v726_v15 = vpop.f32.mrf.mxu2 }
 0x1dd   :  { %v1034_v62 = vpack.c.bf16 %v726_v15, %v724_v13  ;;  %v3625_v13 = vld [vmem:[%s6283_s4 + $0x20] sm:$0xff]  }
 0x1de   :  { %v3576_v50 = vunpack.c.l.bf16 %v3625_v13 }
 0x1df   :  { %1035 = vmatpush.bf16.msrb.mxu0 %v1034_v62 }
 0x1e0   :  { %3243 = vmatmul.msk.bf16.gmra.mxu3 %vm777_vm5, %v733_v20 }
 0x1e3   :  { %1036 = vmatpush.bf16.msrb.mxu0 %v1033_v61 }
 0x1e7   :  { %1037 = vmatpush.bf16.msrb.mxu0 %v1032_v48 }
 0x1eb   :  { %1038 = vmatpush.bf16.msrb.mxu0 %v1031_v4 }
 0x1ef   :  { %1039 = vmatpush.bf16.msrb.mxu0 %v1030_v60 }
 0x1f0   :  { %3244 = vmatmul.msk.bf16.gmra.mxu3 %vm777_vm5, %v734_v58 }
 0x1f3   :  { %1040 = vmatpush.bf16.msrb.mxu0 %v1029_v11  ;;  %v735_v11 = vpack.c.bf16 %v590_v25, %v588_v59  ;;  %v3577_v59 = vunpack.c.h.bf16 %v3625_v13 }
 0x1f7   :  { %1041 = vmatpush.bf16.msrb.mxu0 %v1028_v54  ;;  %v593_v54 = vadd.f32 %v4511_v44, %v592_v63  ;;  %v3622_v44 = vld [vmem:[%s6283_s4 + $0x8] sm:$0xff]  }
 0x1f8   :  { %v3564_v56 = vunpack.c.l.bf16 %v3622_v44  ;;  %v3565_v19 = vunpack.c.h.bf16 %v3622_v44 }
 0x1f9   :  { %v736_v57 = vpack.c.bf16 %v595_v43, %v593_v54  ;;  %v3626_v54 = vld [vmem:[%s6283_s4 + $0x28] sm:$0xff]  }
 0x1fa   :  { %v3580_v8 = vunpack.c.l.bf16 %v3626_v54  ;;  %v3581_v44 = vunpack.c.h.bf16 %v3626_v54 }
 0x1fb   :  { %1042 = vmatpush.bf16.msrb.mxu0 %v1027_v52 }
 0x200   :  { %3245 = vmatmul.msk.bf16.gmra.mxu3 %vm777_vm5, %v735_v11 }
 0x210   :  { %3246 = vmatmul.msk.bf16.gmra.mxu3 %vm777_vm5, %v736_v57 }
 0x220   :  { %3292 = vmatmul.msk.bf16.vlgmr.msra.gmra.mxu3 %vm53_vm0, %v4206_v28 }
 0x223   :  { %v835_v52 = vpop.f32.mrf.mxu3 }
 0x224   :  { %v836_v17 = vadd.f32 %v3560_v33, %v835_v52 }
 0x226   :  { %875 = vmax.xlane.f32.xlu2 %v836_v17 }
 0x22b   :  { %v837_v60 = vpop.f32.mrf.mxu3 }
 0x22c   :  { %v838_v55 = vadd.f32 %v3561_v0, %v837_v60 }
 0x22e   :  { %877 = vmax.xlane.f32.xlu0 %v838_v55 }
 0x230   :  { %3293 = vmatmul.msk.bf16.gmra.mxu3 %vm53_vm0, %v4289_v21 }
 0x233   :  { %v840_v12 = vpop.f32.mrf.mxu3 }
 0x234   :  { %v841_v22 = vadd.f32 %v3564_v56, %v840_v12 }
 0x236   :  { %879 = vmax.xlane.f32.xlu1 %v841_v22 }
 0x23b   :  { %v842_v36 = vpop.f32.mrf.mxu3 }
 0x23c   :  { %v4571_v26 = vadd.f32 %v3565_v19, %v842_v36 }
 0x23e   :  { %881 = vmax.xlane.f32.xlu2 %v4571_v26 }
 0x240   :  { %3294 = vmatmul.msk.bf16.gmra.mxu3 %vm53_vm0, %v4409_v40 }
 0x243   :  { %v845_v34 = vpop.f32.mrf.mxu3 }
 0x244   :  { %v4579_v35 = vadd.f32 %v3568_v7, %v845_v34 }
 0x246   :  { %883 = vmax.xlane.f32.xlu0 %v4579_v35 }
 0x24b   :  { %v847_v38 = vpop.f32.mrf.mxu3 }
 0x24c   :  { %v4582_v5 = vadd.f32 %v3569_v31, %v847_v38 }
 0x24e   :  { %885 = vmax.xlane.f32.xlu1 %v4582_v5 }
 0x250   :  { %3295 = vmatmul.msk.bf16.gmra.mxu3 %vm53_vm0, %v4430_v6 }
 0x253   :  { %v850_v32 = vpop.f32.mrf.mxu3 }
 0x254   :  { %v4590_v14 = vadd.f32 %v3572_v1, %v850_v32 }
 0x256   :  { %887 = vmax.xlane.f32.xlu2 %v4590_v14 }
 0x25b   :  { %v852_v41 = vpop.f32.mrf.mxu3 }
 0x25c   :  { %v4593_v46 = vadd.f32 %v3573_v29, %v852_v41 }
 0x25e   :  { %889 = vmax.xlane.f32.xlu0 %v4593_v46 }
 0x260   :  { %3296 = vmatmul.msk.bf16.gmra.mxu3 %vm53_vm0, %v4446_v39 }
 0x263   :  { %v855_v37 = vpop.f32.mrf.mxu3 }
 0x264   :  { %v4601_v18 = vadd.f32 %v3576_v50, %v855_v37  ;;  %v3628_v37 = vld [vmem:[%s6283_s4 + $0x38] sm:$0xff]  }
 0x266   :  { %891 = vmax.xlane.f32.xlu0 %v4601_v18 }
 0x26b   :  { %v857_v53 = vpop.f32.mrf.mxu3 }
 0x26c   :  { %v4621_v16 = vadd.f32 %v3577_v59, %v857_v53 }
 0x270   :  { %3297 = vmatmul.msk.bf16.gmra.mxu3 %vm53_vm0, %v4226_v42 }
 0x273   :  { %v860_v15 = vpop.f32.mrf.mxu3 }
 0x27b   :  { %v862_v62 = vpop.f32.mrf.mxu3 }
 0x27c   :  { %v4642_v19 = vadd.f32 %v3581_v44, %v862_v62 }
 0x280   :  { %3298 = vmatmul.msk.bf16.gmra.mxu3 %vm53_vm0, %v4323_v30 }
 0x283   :  { %v865_v20 = vpop.f32.mrf.mxu3 }
 0x28b   :  { %v867_v61 = vpop.f32.mrf.mxu3 }
 0x290   :  { %3299 = vmatmul.msk.bf16.gmra.mxu3 %vm53_vm0, %v4411_v47 }
 0x293   :  { %v4610_v3 = vpop.f32.mrf.mxu3 }
 0x299   :  { %v876_v48 = vpop.xlane.xlu2 %875 }
 0x29a   :  { %v907_v4 = vsub.f32 %v836_v17, %v876_v48  ;;  %v4631_v17 = vadd.f32 %v3580_v8, %v860_v15  ;;  %v3588_v15 = vunpack.c.l.bf16 %v3628_v37 }
 0x29b   :  { %v4612_v9 = vpop.f32.mrf.mxu3 }
 0x29c   :  { %v923_v45 = vmul.f32 1.442695, %v907_v4 }
 0x29e   :  { %3679 = vpow2.f32 %v923_v45  ;;  %v3589_v45 = vunpack.c.h.bf16 %v3628_v37 }
 0x2a1   :  { %v878_v49 = vpop.xlane.xlu0 %877 }
 0x2a2   :  { %v908_v58 = vsub.f32 %v838_v55, %v878_v49 }
 0x2a3   :  { %v4614_v51 = vpop.f32.mrf.mxu3 }
 0x2a4   :  { %v4616_v23 = vpop.eup %3679  ;;  %v925_v25 = vmul.f32 1.442695, %v908_v58 }
 0x2a5   :  { %955 = vadd.xlane.f32.xlu1 %v4616_v23 }
 0x2a6   :  { %3681 = vpow2.f32 %v925_v25 }
 0x2a9   :  { %v880_v2 = vpop.xlane.xlu1 %879 }
 0x2aa   :  { %v909_v63 = vsub.f32 %v841_v22, %v880_v2 }
 0x2ab   :  { %v4619_v11 = vpop.f32.mrf.mxu3 }
 0x2ac   :  { %v4623_v43 = vpop.eup %3681  ;;  %v927_v57 = vmul.f32 1.442695, %v909_v63 }
 0x2ad   :  { %957 = vadd.xlane.f32.xlu2 %v4623_v43  ;;  %893 = vmax.xlane.f32.xlu1 %v4621_v16 }
 0x2ae   :  { %3683 = vpow2.f32 %v927_v57 }
 0x2b1   :  { %v882_v33 = vpop.xlane.xlu2 %881 }
 0x2b2   :  { %v910_v52 = vsub.f32 %v4571_v26, %v882_v33  ;;  %v3627_v26 = vld [vmem:[%s6283_s4 + $0x30] sm:$0xff]  }
 0x2b3   :  { %v4633_v0 = vpop.f32.mrf.mxu3  ;;  %v3584_v7 = vunpack.c.l.bf16 %v3627_v26  ;;  %v3585_v32 = vunpack.c.h.bf16 %v3627_v26 }
 0x2b4   :  { %v4635_v60 = vpop.eup %3683  ;;  %v929_v55 = vmul.f32 1.442695, %v910_v52 }
 0x2b5   :  { %959 = vadd.xlane.f32.xlu2 %v4635_v60  ;;  %895 = vmax.xlane.f32.xlu1 %v4631_v17  ;;  %v4652_v31 = vadd.f32 %v3584_v7, %v865_v20  ;;  %v4663_v50 = vadd.f32 %v3585_v32, %v867_v61  ;;  %v4674_v20 = vadd.f32 %v3588_v15, %v4610_v3 }
 0x2b6   :  { %3685 = vpow2.f32 %v929_v55 }
 0x2b9   :  { %v884_v56 = vpop.xlane.xlu0 %883 }
 0x2ba   :  { %v911_v12 = vsub.f32 %v4579_v35, %v884_v56 }
 0x2bb   :  { %v4640_v22 = vpop.f32.mrf.mxu3 }
 0x2bc   :  { %v4644_v36 = vpop.eup %3685  ;;  %v931_v27 = vmul.f32 1.442695, %v911_v12 }
 0x2bd   :  { %897 = vmax.xlane.f32.xlu2 %v4642_v19  ;;  %961 = vadd.xlane.f32.xlu0 %v4644_v36 }
 0x2be   :  { %3687 = vpow2.f32 %v931_v27 }
 0x2c1   :  { %v886_v34 = vpop.xlane.xlu1 %885 }
 0x2c2   :  { %v912_v35 = vsub.f32 %v4582_v5, %v886_v34 }
 0x2c3   :  { %v4654_v38 = vpop.f32.mrf.mxu3 }
 0x2c4   :  { %v4656_v24 = vpop.eup %3687  ;;  %v933_v1 = vmul.f32 1.442695, %v912_v35 }
 0x2c5   :  { %899 = vmax.xlane.f32.xlu2 %v4652_v31  ;;  %963 = vadd.xlane.f32.xlu0 %v4656_v24 }
 0x2c6   :  { %3689 = vpow2.f32 %v933_v1 }
 0x2c9   :  { %v888_v29 = vpop.xlane.xlu2 %887 }
 0x2ca   :  { %v913_v41 = vsub.f32 %v4590_v14, %v888_v29 }
 0x2cb   :  { %v4661_v13 = vpop.f32.mrf.mxu3 }
 0x2cc   :  { %v4665_v5 = vpop.eup %3689  ;;  %v935_v53 = vmul.f32 1.442695, %v913_v41 }
 0x2cd   :  { %965 = vadd.xlane.f32.xlu1 %v4665_v5  ;;  %901 = vmax.xlane.f32.xlu0 %v4663_v50 }
 0x2ce   :  { %3691 = vpow2.f32 %v935_v53 }
 0x2d1   :  { %v890_v62 = vpop.xlane.xlu0 %889 }
 0x2d2   :  { %v914_v14 = vsub.f32 %v4593_v46, %v890_v62  ;;  %v4686_v46 = vadd.f32 %v3589_v45, %v4612_v9  ;;  %v3540_v9 = vld [vmem:[%s6284_s2] sm:$0xff] }
 0x2d3   :  { %v4676_v61 = vpop.f32.mrf.mxu3  ;;  %1131 = vmatpush.bf16.msrb.mxu1 %v3540_v9 }
 0x2d4   :  { %v4678_v48 = vpop.eup %3691  ;;  %v937_v4 = vmul.f32 1.442695, %v914_v14 }
 0x2d5   :  { %967 = vadd.xlane.f32.xlu1 %v4678_v48  ;;  %903 = vmax.xlane.f32.xlu0 %v4674_v20 }
 0x2d6   :  { %3693 = vpow2.f32 %v937_v4 }
 0x2d9   :  { %v892_v49 = vpop.xlane.xlu0 %891 }
 0x2da   :  { %v915_v58 = vsub.f32 %v4601_v18, %v892_v49 }
 0x2db   :  { %v4683_v25 = vpop.f32.mrf.mxu3 }
 0x2dc   :  { %v4688_v3 = vpop.eup %3693  ;;  %v939_v59 = vmul.f32 1.442695, %v915_v58 }
 0x2dd   :  { %969 = vadd.xlane.f32.xlu2 %v4688_v3  ;;  %905 = vmax.xlane.f32.xlu1 %v4686_v46 }
 0x2de   :  { %3695 = vpow2.f32 %v939_v59 }
 0x2e3   :  { %v1306_v2 = vpop.f32.mrf.mxu3 }
 0x2e4   :  { %v4692_v63 = vpop.eup %3695 }
 0x2e5   :  { %971 = vadd.xlane.f32.xlu2 %v4692_v63 }
 0x2eb   :  { %v1308_v54 = vpop.f32.mrf.mxu3 }
 0x2ec   :  { %v1404_v18 = vpack.c.bf16 %v1308_v54, %v1306_v2 }
 0x2f3   :  { %v1311_v57 = vpop.f32.mrf.mxu3 }
 0x2fb   :  { %v1313_v8 = vpop.f32.mrf.mxu3 }
 0x2fc   :  { %v1405_v4 = vpack.c.bf16 %v1313_v8, %v1311_v57  ;;  %v1478_v57 = vsel %vm777_vm5, %v1404_v18, 0 }
 0x2fe   :  { %v1481_v58 = vsel %vm777_vm5, %v1405_v4, 0 }
 0x303   :  { %v1316_v33 = vpop.f32.mrf.mxu3 }
 0x30b   :  { %v1318_v52 = vpop.f32.mrf.mxu3 }
 0x30c   :  { %v1406_v35 = vpack.c.bf16 %v1318_v52, %v1316_v33 }
 0x30e   :  { %v1484_v29 = vsel %vm777_vm5, %v1406_v35, 0 }
 0x313   :  { %v1321_v55 = vpop.f32.mrf.mxu3 }
 0x318   :  { %v956_v44 = vpop.xlane.xlu1 %955 }
 0x319   :  { %3697 = vrcp.f32 %v956_v44  ;;  %v1403_v44 = vpack.c.bf16 %v4683_v25, %v4676_v61 }
 0x31b   :  { %v1323_v56 = vpop.f32.mrf.mxu3  ;;  %v1475_v18 = vsel %vm777_vm5, %v1403_v44, 0 }
 0x31c   :  { %v1407_v12 = vpack.c.bf16 %v1323_v56, %v1321_v55 }
 0x31e   :  { %v1487_v26 = vsel %vm777_vm5, %v1407_v12, 0 }
 0x31f   :  { %1489 = vmatpush.bf16.xpose.msra.mxu1 %v1487_v26  ;;  %v3698_v32 = vpop.eup %3697 }
 0x320   :  { %v958_v27 = vpop.xlane.xlu2 %957  ;;  %v894_v7 = vpop.xlane.xlu1 %893  ;;  %v1003_v15 = vmul.f32 %v3698_v32, %v4616_v23 }
 0x321   :  { %3699 = vrcp.f32 %v958_v27  ;;  %v916_v34 = vsub.f32 %v4621_v16, %v894_v7 }
 0x323   :  { %v941_v1 = vmul.f32 1.442695, %v916_v34 }
 0x325   :  { %3701 = vpow2.f32 %v941_v1 }
 0x327   :  { %v3700_v41 = vpop.eup %3699  ;;  %1490 = vmatpush.bf16.xpose.msra.mxu1 %v1484_v29 }
 0x328   :  { %v960_v37 = vpop.xlane.xlu2 %959  ;;  %v896_v53 = vpop.xlane.xlu1 %895  ;;  %v1004_v62 = vmul.f32 %v3700_v41, %v4623_v43 }
 0x329   :  { %v917_v14 = vsub.f32 %v4631_v17, %v896_v53 }
 0x32a   :  { %v1019_v45 = vpack.c.bf16 %v1004_v62, %v1003_v15 }
 0x32b   :  { %v4704_v49 = vpop.eup %3701  ;;  %v943_v16 = vmul.f32 1.442695, %v917_v14 }
 0x32c   :  { %1043 = vmatmul.bf16.vlgmr.msrb.gmra.mxu0 %v1019_v45  ;;  %973 = vadd.xlane.f32.xlu0 %v4704_v49 }
 0x32d   :  { %3703 = vpow2.f32 %v943_v16 }
 0x32e   :  { %3705 = vrcp.f32 %v960_v37 }
 0x32f   :  { %1491 = vmatpush.bf16.xpose.msra.mxu1 %v1481_v58 }
 0x330   :  { %v898_v59 = vpop.xlane.xlu2 %897  ;;  %v962_v2 = vpop.xlane.xlu0 %961 }
 0x331   :  { %v918_v23 = vsub.f32 %v4642_v19, %v898_v59  ;;  %3707 = vrcp.f32 %v962_v2 }
 0x333   :  { %v4709_v43 = vpop.eup %3703  ;;  %v945_v17 = vmul.f32 1.442695, %v918_v23 }
 0x334   :  { %975 = vadd.xlane.f32.xlu1 %v4709_v43  ;;  %v3706_v54 = vpop.eup %3705 }
 0x335   :  { %3709 = vpow2.f32 %v945_v17  ;;  %v1005_v52 = vmul.f32 %v3706_v54, %v4635_v60 }
 0x337   :  { %v3708_v8 = vpop.eup %3707  ;;  %1492 = vmatpush.bf16.xpose.msra.mxu1 %v1478_v57 }
 0x338   :  { %v900_v9 = vpop.xlane.xlu2 %899  ;;  %v964_v33 = vpop.xlane.xlu0 %963  ;;  %v1006_v55 = vmul.f32 %v3708_v8, %v4644_v36 }
 0x339   :  { %v919_v19 = vsub.f32 %v4652_v31, %v900_v9  ;;  %v1402_v31 = vpack.c.bf16 %v4661_v13, %v4654_v38  ;;  %v1401_v38 = vpack.c.bf16 %v4640_v22, %v4633_v0  ;;  %v1400_v0 = vpack.c.bf16 %v4619_v11, %v4614_v51 }
 0x33a   :  { %v1020_v56 = vpack.c.bf16 %v1006_v55, %v1005_v52 }
 0x33b   :  { %v4718_v12 = vpop.eup %3709  ;;  %v947_v26 = vmul.f32 1.442695, %v919_v19  ;;  %v1472_v34 = vsel %vm777_vm5, %v1402_v31, 0  ;;  %v1469_v15 = vsel %vm777_vm5, %v1401_v38, 0  ;;  %v1466_v4 = vsel %vm777_vm5, %v1400_v0, 0 }
 0x33c   :  { %977 = vadd.xlane.f32.xlu2 %v4718_v12  ;;  %1048 = vmatmul.bf16.gmra.mxu0 %v1020_v56 }
 0x33d   :  { %3711 = vpow2.f32 %v947_v26 }
 0x33e   :  { %3713 = vrcp.f32 %v964_v33 }
 0x33f   :  { %1493 = vmatpush.bf16.xpose.msra.mxu1 %v1475_v18 }
 0x340   :  { %v966_v60 = vpop.xlane.xlu1 %965  ;;  %v902_v27 = vpop.xlane.xlu0 %901 }
 0x341   :  { %3715 = vrcp.f32 %v966_v60  ;;  %v920_v36 = vsub.f32 %v4663_v50, %v902_v27  ;;  %v3546_v27 = vld [vmem:[%s6280_s1 + $0x58] sm:$0xff] }
 0x342   :  { %1349 = vmatpush.bf16.msra.mxu0 %v3546_v27 }
 0x343   :  { %v4725_v61 = vpop.eup %3711  ;;  %v949_v25 = vmul.f32 1.442695, %v920_v36 }
 0x344   :  { %979 = vadd.xlane.f32.xlu0 %v4725_v61  ;;  %v3714_v7 = vpop.eup %3713 }
 0x345   :  { %3717 = vpow2.f32 %v949_v25  ;;  %v1007_v29 = vmul.f32 %v3714_v7, %v4656_v24 }
 0x347   :  { %v3716_v35 = vpop.eup %3715  ;;  %1494 = vmatpush.bf16.xpose.msra.mxu1 %v1472_v34 }
 0x348   :  { %v968_v1 = vpop.xlane.xlu1 %967  ;;  %v904_v32 = vpop.xlane.xlu0 %903  ;;  %v1008_v50 = vmul.f32 %v3716_v35, %v4665_v5 }
 0x349   :  { %v921_v41 = vsub.f32 %v4674_v20, %v904_v32 }
 0x34a   :  { %v1021_v13 = vpack.c.bf16 %v1008_v50, %v1007_v29 }
 0x34b   :  { %v4734_v37 = vpop.eup %3717  ;;  %v951_v53 = vmul.f32 1.442695, %v921_v41 }
 0x34c   :  { %1053 = vmatmul.bf16.gmra.mxu0 %v1021_v13  ;;  %981 = vadd.xlane.f32.xlu1 %v4734_v37 }
 0x34d   :  { %3719 = vpow2.f32 %v951_v53 }
 0x34e   :  { %3721 = vrcp.f32 %v968_v1 }
 0x34f   :  { %1495 = vmatpush.bf16.xpose.msra.mxu1 %v1469_v15 }
 0x350   :  { %v970_v24 = vpop.xlane.xlu2 %969  ;;  %v906_v62 = vpop.xlane.xlu1 %905 }
 0x351   :  { %3723 = vrcp.f32 %v970_v24  ;;  %v922_v5 = vsub.f32 %v4686_v46, %v906_v62 }
 0x353   :  { %v4741_v22 = vpop.eup %3719  ;;  %v953_v20 = vmul.f32 1.442695, %v922_v5 }
 0x354   :  { %983 = vadd.xlane.f32.xlu2 %v4741_v22  ;;  %v3722_v14 = vpop.eup %3721 }
 0x355   :  { %3725 = vpow2.f32 %v953_v20  ;;  %v1009_v16 = vmul.f32 %v3722_v14, %v4678_v48 }
 0x357   :  { %v3724_v45 = vpop.eup %3723  ;;  %1496 = vmatpush.bf16.xpose.msra.mxu1 %v1466_v4 }
 0x358   :  { %v1010_v58 = vmul.f32 %v3724_v45, %v4688_v3  ;;  %v972_v51 = vpop.xlane.xlu2 %971 }
 0x359   :  { %3727 = vrcp.f32 %v972_v51 }
 0x35a   :  { %v1022_v59 = vpack.c.bf16 %v1010_v58, %v1009_v16 }
 0x35b   :  { %v3726_v46 = vpop.eup %3725 }
 0x35c   :  { %985 = vadd.xlane.f32.xlu0 %v3726_v46  ;;  %1058 = vmatmul.bf16.gmra.mxu0 %v1022_v59 }
 0x35f   :  { %v3728_v2 = vpop.eup %3727 }
 0x360   :  { %v1011_v17 = vmul.f32 %v3728_v2, %v4692_v63 }
 0x39f   :  { %v974_v11 = vpop.xlane.xlu0 %973 }
 0x3a0   :  { %3729 = vrcp.f32 %v974_v11 }
 0x3a6   :  { %v3730_v23 = vpop.eup %3729 }
 0x3a7   :  { %v1012_v54 = vmul.f32 %v3730_v23, %v4704_v49  ;;  %v976_v9 = vpop.xlane.xlu1 %975 }
 0x3a8   :  { %3731 = vrcp.f32 %v976_v9 }
 0x3a9   :  { %v1044_v57 = vpop.f32.mrf.mxu0  ;;  %v1023_v8 = vpack.c.bf16 %v1012_v54, %v1011_v17 }
 0x3ab   :  { %1063 = vmatmul.bf16.gmra.mxu0 %v1023_v8 }
 0x3ae   :  { %v3732_v52 = vpop.eup %3731 }
 0x3af   :  { %v978_v48 = vpop.xlane.xlu2 %977  ;;  %v1013_v19 = vmul.f32 %v3732_v52, %v4709_v43  ;;  %v3545_v43 = vld [vmem:[%s6280_s1 + $0x50] sm:$0xff] }
 0x3b0   :  { %3733 = vrcp.f32 %v978_v48  ;;  %1350 = vmatpush.bf16.msra.mxu0 %v3545_v43 }
 0x3b1   :  { %v1046_v3 = vpop.f32.mrf.mxu0 }
 0x3b2   :  { %v1084_v33 = vpack.c.bf16 %v1046_v3, %v1044_v57 }
 0x3b4   :  { %3251 = vmatmul.msk.bf16.vlgmr.msrb.gmra.mxu1 %vm777_vm5, %v1084_v33 }
 0x3b6   :  { %v3734_v55 = vpop.eup %3733 }
 0x3b7   :  { %v1014_v44 = vmul.f32 %v3734_v55, %v4718_v12  ;;  %v980_v49 = vpop.xlane.xlu0 %979 }
 0x3b8   :  { %3735 = vrcp.f32 %v980_v49 }
 0x3b9   :  { %v1049_v63 = vpop.f32.mrf.mxu0  ;;  %v1024_v56 = vpack.c.bf16 %v1014_v44, %v1013_v19 }
 0x3bb   :  { %1068 = vmatmul.bf16.gmra.mxu0 %v1024_v56 }
 0x3be   :  { %v3736_v36 = vpop.eup %3735 }
 0x3bf   :  { %v982_v26 = vpop.xlane.xlu1 %981  ;;  %v1015_v31 = vmul.f32 %v3736_v36, %v4725_v61 }
 0x3c0   :  { %3737 = vrcp.f32 %v982_v26 }
 0x3c1   :  { %v1051_v18 = vpop.f32.mrf.mxu0 }
 0x3c2   :  { %v1085_v60 = vpack.c.bf16 %v1051_v18, %v1049_v63 }
 0x3c4   :  { %3252 = vmatmul.msk.bf16.gmra.mxu1 %vm777_vm5, %v1085_v60 }
 0x3c6   :  { %v3738_v12 = vpop.eup %3737 }
 0x3c7   :  { %v1016_v25 = vmul.f32 %v3738_v12, %v4734_v37  ;;  %v984_v35 = vpop.xlane.xlu2 %983 }
 0x3c8   :  { %3739 = vrcp.f32 %v984_v35 }
 0x3c9   :  { %v1054_v7 = vpop.f32.mrf.mxu0  ;;  %v1025_v34 = vpack.c.bf16 %v1016_v25, %v1015_v31 }
 0x3cb   :  { %1073 = vmatmul.bf16.gmra.mxu0 %v1025_v34 }
 0x3ce   :  { %v3740_v50 = vpop.eup %3739 }
 0x3cf   :  { %v986_v1 = vpop.xlane.xlu0 %985  ;;  %v1017_v38 = vmul.f32 %v3740_v50, %v4741_v22  ;;  %v1220_v22 = vpop.f32.mrf.mxu2 }
 0x3d0   :  { %3741 = vrcp.f32 %v986_v1 }
 0x3d1   :  { %v1056_v32 = vpop.f32.mrf.mxu0 }
 0x3d2   :  { %v1086_v29 = vpack.c.bf16 %v1056_v32, %v1054_v7 }
 0x3d4   :  { %3253 = vmatmul.msk.bf16.gmra.mxu1 %vm777_vm5, %v1086_v29 }
 0x3d6   :  { %v3742_v41 = vpop.eup %3741 }
 0x3d7   :  { %v1018_v13 = vmul.f32 %v3742_v41, %v3726_v46 }
 0x3d9   :  { %v1059_v61 = vpop.f32.mrf.mxu0  ;;  %v1026_v53 = vpack.c.bf16 %v1018_v13, %v1017_v38 }
 0x3db   :  { %1078 = vmatmul.bf16.gmra.mxu0 %v1026_v53 }
 0x3e1   :  { %v1061_v37 = vpop.f32.mrf.mxu0 }
 0x3e2   :  { %v1087_v15 = vpack.c.bf16 %v1061_v37, %v1059_v61 }
 0x3e4   :  { %3254 = vmatmul.msk.bf16.gmra.mxu1 %vm777_vm5, %v1087_v15 }
 0x3eb   :  { %3312 = vmatmul.msk.bf16.vlgmr.msra.gmra.mxu0 %vm53_vm0, %v4206_v28 }
 0x3fb   :  { %3313 = vmatmul.msk.bf16.gmra.mxu0 %vm53_vm0, %v4289_v21 }
 0x40b   :  { %3314 = vmatmul.msk.bf16.gmra.mxu0 %vm53_vm0, %v4409_v40 }
 0x41b   :  { %3315 = vmatmul.msk.bf16.gmra.mxu0 %vm53_vm0, %v4430_v6  ;;  %v1222_v6 = vpop.f32.mrf.mxu2 }
 0x423   :  { %v1225_v14 = vpop.f32.mrf.mxu2 }
 0x428   :  { %v1064_v24 = vpop.f32.mrf.mxu0 }
 0x42b   :  { %3316 = vmatmul.msk.bf16.gmra.mxu0 %vm53_vm0, %v4446_v39  ;;  %v1227_v45 = vpop.f32.mrf.mxu2 }
 0x430   :  { %v1066_v62 = vpop.f32.mrf.mxu0 }
 0x431   :  { %v1088_v5 = vpack.c.bf16 %v1066_v62, %v1064_v24  ;;  %v4783_v58 = vpop.f32.mrf.mxu1 }
 0x433   :  { %3255 = vmatmul.msk.bf16.gmra.mxu1 %vm777_vm5, %v1088_v5  ;;  %v1230_v46 = vpop.f32.mrf.mxu2 }
 0x438   :  { %v1069_v0 = vpop.f32.mrf.mxu0 }
 0x439   :  { %v4793_v51 = vpop.f32.mrf.mxu1 }
 0x43b   :  { %3317 = vmatmul.msk.bf16.gmra.mxu0 %vm53_vm0, %v4226_v42  ;;  %v1232_v17 = vpop.f32.mrf.mxu2 }
 0x440   :  { %v1071_v28 = vpop.f32.mrf.mxu0 }
 0x441   :  { %v1089_v21 = vpack.c.bf16 %v1071_v28, %v1069_v0  ;;  %v4800_v54 = vpop.f32.mrf.mxu1 }
 0x443   :  { %3256 = vmatmul.msk.bf16.gmra.mxu1 %vm777_vm5, %v1089_v21  ;;  %v1235_v48 = vpop.f32.mrf.mxu2 }
 0x448   :  { %v1074_v40 = vpop.f32.mrf.mxu0 }
 0x449   :  { %v4806_v3 = vpop.f32.mrf.mxu1 }
 0x44b   :  { %3318 = vmatmul.msk.bf16.gmra.mxu0 %vm53_vm0, %v4323_v30  ;;  %v4791_v30 = vld [vmem:[%s6282_s3 + $0x1] ss:$0 sm:$0xff]  ;;  %v1237_v19 = vpop.f32.mrf.mxu2 }
 0x44c   :  { %v1223_v11 = vadd.f32 %v4791_v30, %v1222_v6  ;;  %v1228_v8 = vadd.f32 %v4791_v30, %v1227_v45  ;;  %v1226_v9 = vadd.f32 %v4791_v30, %v1225_v14  ;;  %v1233_v63 = vadd.f32 %v4791_v30, %v1232_v17 }
 0x44d   :  { %v1231_v56 = vadd.f32 %v4791_v30, %v1230_v46  ;;  %v1238_v36 = vadd.f32 %v4791_v30, %v1237_v19  ;;  %v1236_v31 = vadd.f32 %v4791_v30, %v1235_v48  ;;  %v3629_v19 = vld [vmem:[%s6283_s4 + $0x40] sm:$0xff]  }
 0x44e   :  { %v1393_v52 = vpack.c.bf16 %v1228_v8, %v1226_v9 }
 0x44f   :  { %v1394_v26 = vpack.c.bf16 %v1233_v63, %v1231_v56  ;;  %v1395_v7 = vpack.c.bf16 %v1238_v36, %v1236_v31 }
 0x450   :  { %v1076_v20 = vpop.f32.mrf.mxu0 }
 0x451   :  { %v1090_v39 = vpack.c.bf16 %v1076_v20, %v1074_v40  ;;  %v4813_v44 = vpop.f32.mrf.mxu1 }
 0x453   :  { %3257 = vmatmul.msk.bf16.gmra.mxu1 %vm777_vm5, %v1090_v39  ;;  %v1240_v18 = vpop.f32.mrf.mxu2 }
 0x454   :  { %v1241_v29 = vadd.f32 %v4791_v30, %v1240_v18 }
 0x458   :  { %v1079_v4 = vpop.f32.mrf.mxu0 }
 0x459   :  { %v4820_v60 = vpop.f32.mrf.mxu1 }
 0x45b   :  { %3319 = vmatmul.msk.bf16.gmra.mxu0 %vm53_vm0, %v4411_v47  ;;  %v1221_v47 = vadd.f32 %v4791_v30, %v1220_v22  ;;  %v1242_v43 = vpop.f32.mrf.mxu2 }
 0x45c   :  { %v1243_v32 = vadd.f32 %v4791_v30, %v1242_v43  ;;  %v3593_v43 = vunpack.c.h.bf16 %v3629_v19 }
 0x45d   :  { %v1392_v23 = vpack.c.bf16 %v1223_v11, %v1221_v47 }
 0x45e   :  { %v1396_v38 = vpack.c.bf16 %v1243_v32, %v1241_v29 }
 0x460   :  { %v1081_v42 = vpop.f32.mrf.mxu0 }
 0x461   :  { %v1091_v16 = vpack.c.bf16 %v1081_v42, %v1079_v4  ;;  %v4823_v12 = vpop.f32.mrf.mxu1 }
 0x463   :  { %3258 = vmatmul.msk.bf16.gmra.mxu1 %vm777_vm5, %v1091_v16  ;;  %v1245_v34 = vpop.f32.mrf.mxu2 }
 0x464   :  { %v1246_v24 = vadd.f32 %v4791_v30, %v1245_v34 }
 0x468   :  { %v4786_v59 = vpop.f32.mrf.mxu0 }
 0x469   :  { %v4827_v35 = vpop.f32.mrf.mxu1 }
 0x46b   :  { %v1247_v13 = vpop.f32.mrf.mxu2 }
 0x46c   :  { %v1248_v15 = vadd.f32 %v4791_v30, %v1247_v13 }
 0x46e   :  { %v1397_v0 = vpack.c.bf16 %v1248_v15, %v1246_v24 }
 0x470   :  { %v4797_v2 = vpop.f32.mrf.mxu0 }
 0x473   :  { %3336 = vmatmul.msk.bf16.vlgmr.msra.gmra.mxu1 %vm777_vm5, %v1392_v23  ;;  %v1250_v37 = vpop.f32.mrf.mxu2 }
 0x474   :  { %v1251_v6 = vadd.f32 %v4791_v30, %v1250_v37 }
 0x478   :  { %v4802_v57 = vpop.f32.mrf.mxu0 }
 0x47b   :  { %v1252_v28 = vpop.f32.mrf.mxu2 }
 0x47c   :  { %v1253_v40 = vadd.f32 %v4791_v30, %v1252_v28 }
 0x47e   :  { %v1398_v4 = vpack.c.bf16 %v1253_v40, %v1251_v6  ;;  %v3633_v40 = vld [vmem:[%s6283_s4 + $0x60] sm:$0xff]  }
 0x47f   :  { %v3608_v6 = vunpack.c.l.bf16 %v3633_v40 }
 0x480   :  { %v4808_v33 = vpop.f32.mrf.mxu0 }
 0x483   :  { %3337 = vmatmul.msk.bf16.gmra.mxu1 %vm777_vm5, %v1393_v52  ;;  %v1255_v20 = vpop.f32.mrf.mxu2 }
 0x484   :  { %v1256_v11 = vadd.f32 %v4791_v30, %v1255_v20 }
 0x488   :  { %v4811_v55 = vpop.f32.mrf.mxu0 }
 0x48b   :  { %v1257_v16 = vpop.f32.mrf.mxu2 }
 0x48c   :  { %v1258_v46 = vadd.f32 %v4791_v30, %v1257_v16  ;;  %v3592_v30 = vunpack.c.l.bf16 %v3629_v19 }
 0x48e   :  { %v1399_v17 = vpack.c.bf16 %v1258_v46, %v1256_v11 }
 0x490   :  { %v4817_v49 = vpop.f32.mrf.mxu0 }
 0x491   :  { %v1692_v36 = vpack.c.bf16 %v4817_v49, %v4811_v55 }
 0x493   :  { %3338 = vmatmul.msk.bf16.gmra.mxu1 %vm777_vm5, %v1394_v26 }
 0x498   :  { %v1367_v27 = vpop.f32.mrf.mxu0 }
 0x4a0   :  { %v1369_v25 = vpop.f32.mrf.mxu0 }
 0x4a1   :  { %v1693_v26 = vpack.c.bf16 %v1369_v25, %v1367_v27  ;;  %v1690_v27 = vpack.c.bf16 %v4797_v2, %v4786_v59  ;;  %v3632_v2 = vld [vmem:[%s6283_s4 + $0x58] sm:$0xff]  }
 0x4a2   :  { %v3604_v15 = vunpack.c.l.bf16 %v3632_v2 }
 0x4a3   :  { %3339 = vmatmul.msk.bf16.gmra.mxu1 %vm777_vm5, %v1395_v7  ;;  %v1691_v7 = vpack.c.bf16 %v4808_v33, %v4802_v57  ;;  %v3631_v57 = vld [vmem:[%s6283_s4 + $0x50] sm:$0xff]  }
 0x4a4   :  { %v3600_v33 = vunpack.c.l.bf16 %v3631_v57 }
 0x4a8   :  { %v1372_v1 = vpop.f32.mrf.mxu0 }
 0x4b0   :  { %v4831_v50 = vpop.f32.mrf.mxu1  ;;  %v1374_v41 = vpop.f32.mrf.mxu0 }
 0x4b1   :  { %v1694_v63 = vpack.c.bf16 %v1374_v41, %v1372_v1  ;;  %v3630_v1 = vld [vmem:[%s6283_s4 + $0x48] sm:$0xff]  }
 0x4b2   :  { %v3596_v25 = vunpack.c.l.bf16 %v3630_v1  ;;  %v3597_v49 = vunpack.c.h.bf16 %v3630_v1 }
 0x4b3   :  { %3340 = vmatmul.msk.bf16.gmra.mxu1 %vm777_vm5, %v1396_v38 }
 0x4b8   :  { %v4834_v61 = vpop.f32.mrf.mxu1  ;;  %v1377_v53 = vpop.f32.mrf.mxu0 }
 0x4c0   :  { %v4838_v62 = vpop.f32.mrf.mxu1  ;;  %v1379_v5 = vpop.f32.mrf.mxu0 }
 0x4c1   :  { %v1695_v52 = vpack.c.bf16 %v1379_v5, %v1377_v53  ;;  %v3601_v53 = vunpack.c.h.bf16 %v3631_v57 }
 0x4c3   :  { %3341 = vmatmul.msk.bf16.gmra.mxu1 %vm777_vm5, %v1397_v0  ;;  %v3605_v0 = vunpack.c.h.bf16 %v3632_v2 }
 0x4c8   :  { %v4841_v21 = vpop.f32.mrf.mxu1  ;;  %v1382_v22 = vpop.f32.mrf.mxu0 }
 0x4d0   :  { %v4845_v39 = vpop.f32.mrf.mxu1  ;;  %v1384_v14 = vpop.f32.mrf.mxu0 }
 0x4d1   :  { %v1696_v9 = vpack.c.bf16 %v1384_v14, %v1382_v22 }
 0x4d3   :  { %3342 = vmatmul.msk.bf16.gmra.mxu1 %vm777_vm5, %v1398_v4 }
 0x4d8   :  { %v4848_v42 = vpop.f32.mrf.mxu1  ;;  %v1387_v45 = vpop.f32.mrf.mxu0 }
 0x4e0   :  { %v4852_v47 = vpop.f32.mrf.mxu1  ;;  %v1389_v23 = vpop.f32.mrf.mxu0 }
 0x4e1   :  { %v1697_v8 = vpack.c.bf16 %v1389_v23, %v1387_v45 }
 0x4e3   :  { %3343 = vmatmul.msk.bf16.gmra.mxu1 %vm777_vm5, %v1399_v17  ;;  %1698 = vmatpush.bf16.msrb.mxu2 %v1697_v8 }
 0x4e7   :  { %1699 = vmatpush.bf16.msrb.mxu2 %v1696_v9 }
 0x4e8   :  { %v4855_v48 = vpop.f32.mrf.mxu1 }
 0x4eb   :  { %1700 = vmatpush.bf16.msrb.mxu2 %v1695_v52  ;;  %v3609_v52 = vunpack.c.h.bf16 %v3633_v40 }
 0x4ef   :  { %1701 = vmatpush.bf16.msrb.mxu2 %v1694_v63 }
 0x4f0   :  { %v1498_v56 = vpop.f32.mrf.mxu1 }
 0x4f1   :  { %v1499_v18 = vadd.f32 %v3592_v30, %v1498_v56 }
 0x4f3   :  { %1702 = vmatpush.bf16.msrb.mxu2 %v1693_v26  ;;  %1538 = vmax.xlane.f32.xlu1 %v1499_v18  ;;  %v3634_v26 = vld [vmem:[%s6283_s4 + $0x68] sm:$0xff]  }
 0x4f7   :  { %1703 = vmatpush.bf16.msrb.mxu2 %v1692_v36  ;;  %v3612_v36 = vunpack.c.l.bf16 %v3634_v26 }
 0x4f8   :  { %v1500_v31 = vpop.f32.mrf.mxu1 }
 0x4f9   :  { %v1501_v34 = vadd.f32 %v3593_v43, %v1500_v31 }
 0x4fb   :  { %1704 = vmatpush.bf16.msrb.mxu2 %v1691_v7  ;;  %1540 = vmax.xlane.f32.xlu2 %v1501_v34 }
 0x4ff   :  { %1705 = vmatpush.bf16.msrb.mxu2 %v1690_v27 }
 0x500   :  { %v1503_v32 = vpop.f32.mrf.mxu1 }
 0x501   :  { %v1504_v55 = vadd.f32 %v3596_v25, %v1503_v32  ;;  %v3613_v25 = vunpack.c.h.bf16 %v3634_v26 }
 0x503   :  { %1542 = vmax.xlane.f32.xlu0 %v1504_v55 }
 0x508   :  { %v1505_v29 = vpop.f32.mrf.mxu1 }
 0x509   :  { %v1506_v41 = vadd.f32 %v3597_v49, %v1505_v29 }
 0x50b   :  { %1544 = vmax.xlane.f32.xlu1 %v1506_v41 }
 0x510   :  { %v1508_v38 = vpop.f32.mrf.mxu1 }
 0x511   :  { %v1509_v13 = vadd.f32 %v3600_v33, %v1508_v38 }
 0x513   :  { %1546 = vmax.xlane.f32.xlu2 %v1509_v13 }
 0x518   :  { %v1510_v37 = vpop.f32.mrf.mxu1 }
 0x519   :  { %v4872_v59 = vadd.f32 %v3601_v53, %v1510_v37 }
 0x51b   :  { %1548 = vmax.xlane.f32.xlu0 %v4872_v59 }
 0x520   :  { %v1513_v24 = vpop.f32.mrf.mxu1 }
 0x521   :  { %v4878_v5 = vadd.f32 %v3604_v15, %v1513_v24 }
 0x523   :  { %1550 = vmax.xlane.f32.xlu1 %v4878_v5 }
 0x528   :  { %v1515_v28 = vpop.f32.mrf.mxu1 }
 0x529   :  { %v4881_v22 = vadd.f32 %v3605_v0, %v1515_v28 }
 0x52b   :  { %1552 = vmax.xlane.f32.xlu2 %v4881_v22 }
 0x530   :  { %v1518_v20 = vpop.f32.mrf.mxu1 }
 0x531   :  { %v4887_v14 = vadd.f32 %v3608_v6, %v1518_v20 }
 0x533   :  { %1554 = vmax.xlane.f32.xlu2 %v4887_v14 }
 0x538   :  { %v1520_v16 = vpop.f32.mrf.mxu1 }
 0x539   :  { %v4893_v30 = vadd.f32 %v3609_v52, %v1520_v16 }
 0x540   :  { %v1523_v9 = vpop.f32.mrf.mxu1 }
 0x548   :  { %v1525_v43 = vpop.f32.mrf.mxu1 }
 0x549   :  { %v4908_v29 = vadd.f32 %v3613_v25, %v1525_v43 }
 0x566   :  { %v1539_v4 = vpop.xlane.xlu1 %1538 }
 0x567   :  { %v1570_v45 = vsub.f32 %v1499_v18, %v1539_v4 }
 0x569   :  { %v1586_v46 = vmul.f32 1.442695, %v1570_v45 }
 0x56b   :  { %3743 = vpow2.f32 %v1586_v46 }
 0x56e   :  { %v1541_v11 = vpop.xlane.xlu2 %1540 }
 0x56f   :  { %v1571_v23 = vsub.f32 %v1501_v34, %v1541_v11  ;;  %v4902_v34 = vadd.f32 %v3612_v36, %v1523_v9 }
 0x571   :  { %v4890_v17 = vpop.eup %3743  ;;  %v1588_v8 = vmul.f32 1.442695, %v1571_v23 }
 0x572   :  { %1618 = vadd.xlane.f32.xlu0 %v4890_v17 }
 0x573   :  { %3745 = vpow2.f32 %v1588_v8 }
 0x576   :  { %v1543_v19 = vpop.xlane.xlu0 %1542 }
 0x577   :  { %v1572_v63 = vsub.f32 %v1504_v55, %v1543_v19  ;;  %v1528_v55 = vpop.f32.mrf.mxu1 }
 0x579   :  { %v4895_v56 = vpop.eup %3745  ;;  %v1590_v18 = vmul.f32 1.442695, %v1572_v63 }
 0x57a   :  { %1620 = vadd.xlane.f32.xlu1 %v4895_v56  ;;  %1556 = vmax.xlane.f32.xlu0 %v4893_v30 }
 0x57b   :  { %3747 = vpow2.f32 %v1590_v18 }
 0x57e   :  { %v1545_v31 = vpop.xlane.xlu1 %1544 }
 0x57f   :  { %v1573_v7 = vsub.f32 %v1506_v41, %v1545_v31  ;;  %v3635_v41 = vld [vmem:[%s6283_s4 + $0x70] sm:$0xff]   ;;  %v1530_v15 = vpop.f32.mrf.mxu1 }
 0x580   :  { %v3616_v38 = vunpack.c.l.bf16 %v3635_v41  ;;  %v3617_v0 = vunpack.c.h.bf16 %v3635_v41 }
 0x581   :  { %v4904_v1 = vpop.eup %3747  ;;  %v1592_v27 = vmul.f32 1.442695, %v1573_v7 }
 0x582   :  { %1622 = vadd.xlane.f32.xlu1 %v4904_v1  ;;  %1558 = vmax.xlane.f32.xlu0 %v4902_v34  ;;  %v4918_v2 = vadd.f32 %v3616_v38, %v1528_v55  ;;  %v4925_v6 = vadd.f32 %v3617_v0, %v1530_v15 }
 0x583   :  { %3749 = vpow2.f32 %v1592_v27 }
 0x586   :  { %v1547_v32 = vpop.xlane.xlu2 %1546 }
 0x587   :  { %v1574_v49 = vsub.f32 %v1509_v13, %v1547_v32  ;;  %v1533_v45 = vpop.f32.mrf.mxu1 }
 0x589   :  { %v4910_v57 = vpop.eup %3749  ;;  %v1594_v33 = vmul.f32 1.442695, %v1574_v49 }
 0x58a   :  { %1560 = vmax.xlane.f32.xlu1 %v4908_v29  ;;  %1624 = vadd.xlane.f32.xlu2 %v4910_v57 }
 0x58b   :  { %3751 = vpow2.f32 %v1594_v33 }
 0x58e   :  { %v1549_v53 = vpop.xlane.xlu0 %1548 }
 0x58f   :  { %v1575_v37 = vsub.f32 %v4872_v59, %v1549_v53  ;;  %v3636_v59 = vld [vmem:[%s6283_s4 + $0x78] sm:$0xff]   ;;  %v1535_v52 = vpop.f32.mrf.mxu1 }
 0x590   :  { %v3620_v16 = vunpack.c.l.bf16 %v3636_v59  ;;  %v3621_v9 = vunpack.c.h.bf16 %v3636_v59 }
 0x591   :  { %v4920_v13 = vpop.eup %3751  ;;  %v1596_v24 = vmul.f32 1.442695, %v1575_v37 }
 0x592   :  { %1562 = vmax.xlane.f32.xlu1 %v4918_v2  ;;  %1626 = vadd.xlane.f32.xlu2 %v4920_v13  ;;  %v4942_v26 = vadd.f32 %v3621_v9, %v1535_v52 }
 0x593   :  { %3753 = vpow2.f32 %v1596_v24 }
 0x596   :  { %v1551_v28 = vpop.xlane.xlu1 %1550 }
 0x597   :  { %v1576_v40 = vsub.f32 %v4878_v5, %v1551_v28  ;;  %v4935_v5 = vadd.f32 %v3620_v16, %v1533_v45 }
 0x599   :  { %v4927_v20 = vpop.eup %3753  ;;  %v1598_v4 = vmul.f32 1.442695, %v1576_v40 }
 0x59a   :  { %1628 = vadd.xlane.f32.xlu0 %v4927_v20  ;;  %1564 = vmax.xlane.f32.xlu2 %v4925_v6 }
 0x59b   :  { %3755 = vpow2.f32 %v1598_v4 }
 0x59e   :  { %v1553_v46 = vpop.xlane.xlu2 %1552 }
 0x59f   :  { %v1577_v11 = vsub.f32 %v4881_v22, %v1553_v46 }
 0x5a1   :  { %v4937_v23 = vpop.eup %3755  ;;  %v1600_v8 = vmul.f32 1.442695, %v1577_v11 }
 0x5a2   :  { %1566 = vmax.xlane.f32.xlu2 %v4935_v5  ;;  %1630 = vadd.xlane.f32.xlu0 %v4937_v23 }
 0x5a3   :  { %3757 = vpow2.f32 %v1600_v8  ;;  %v3547_v8 = vld [vmem:[%s6284_s2 + $0x8] sm:$0xff] }
 0x5a4   :  { %1795 = vmatpush.bf16.msrb.mxu3 %v3547_v8 }
 0x5a6   :  { %v1555_v19 = vpop.xlane.xlu2 %1554 }
 0x5a7   :  { %v1578_v63 = vsub.f32 %v4887_v14, %v1555_v19 }
 0x5a9   :  { %v4944_v18 = vpop.eup %3757  ;;  %v1602_v22 = vmul.f32 1.442695, %v1578_v63 }
 0x5aa   :  { %1632 = vadd.xlane.f32.xlu1 %v4944_v18  ;;  %1568 = vmax.xlane.f32.xlu0 %v4942_v26 }
 0x5ab   :  { %3759 = vpow2.f32 %v1602_v22 }
 0x5b1   :  { %v4948_v36 = vpop.eup %3759 }
 0x5b2   :  { %1634 = vadd.xlane.f32.xlu1 %v4948_v36 }
 0x5e5   :  { %v1619_v43 = vpop.xlane.xlu0 %1618 }
 0x5e6   :  { %3761 = vrcp.f32 %v1619_v43 }
 0x5ec   :  { %v3762_v25 = vpop.eup %3761 }
 0x5ed   :  { %v1557_v31 = vpop.xlane.xlu0 %1556  ;;  %v1621_v7 = vpop.xlane.xlu1 %1620  ;;  %v1666_v55 = vmul.f32 %v3762_v25, %v4890_v17 }
 0x5ee   :  { %v1579_v14 = vsub.f32 %v4893_v30, %v1557_v31  ;;  %3763 = vrcp.f32 %v1621_v7 }
 0x5f0   :  { %v1604_v27 = vmul.f32 1.442695, %v1579_v14 }
 0x5f2   :  { %3765 = vpow2.f32 %v1604_v27 }
 0x5f4   :  { %v3764_v32 = vpop.eup %3763 }
 0x5f5   :  { %v1667_v49 = vmul.f32 %v3764_v32, %v4895_v56  ;;  %v1559_v41 = vpop.xlane.xlu0 %1558  ;;  %v1623_v33 = vpop.xlane.xlu1 %1622 }
 0x5f6   :  { %v1580_v38 = vsub.f32 %v4902_v34, %v1559_v41 }
 0x5f7   :  { %v1682_v53 = vpack.c.bf16 %v1667_v49, %v1666_v55 }
 0x5f8   :  { %v4955_v37 = vpop.eup %3765  ;;  %v1606_v15 = vmul.f32 1.442695, %v1580_v38 }
 0x5f9   :  { %1636 = vadd.xlane.f32.xlu2 %v4955_v37  ;;  %1706 = vmatmul.bf16.vlgmr.msrb.gmra.mxu2 %v1682_v53 }
 0x5fa   :  { %3767 = vpow2.f32 %v1606_v15 }
 0x5fb   :  { %3769 = vrcp.f32 %v1623_v33 }
 0x5fd   :  { %v1625_v30 = vpop.xlane.xlu2 %1624  ;;  %v1561_v24 = vpop.xlane.xlu1 %1560 }
 0x5fe   :  { %3771 = vrcp.f32 %v1625_v30  ;;  %v1581_v17 = vsub.f32 %v4908_v29, %v1561_v24 }
 0x600   :  { %v4959_v0 = vpop.eup %3767  ;;  %v1608_v56 = vmul.f32 1.442695, %v1581_v17 }
 0x601   :  { %1638 = vadd.xlane.f32.xlu0 %v4959_v0  ;;  %v3770_v34 = vpop.eup %3769 }
 0x602   :  { %3773 = vpow2.f32 %v1608_v56  ;;  %v1668_v4 = vmul.f32 %v3770_v34, %v4904_v1 }
 0x604   :  { %v3772_v28 = vpop.eup %3771 }
 0x605   :  { %v1627_v40 = vpop.xlane.xlu2 %1626  ;;  %v1563_v59 = vpop.xlane.xlu1 %1562  ;;  %v1669_v45 = vmul.f32 %v3772_v28, %v4910_v57 }
 0x606   :  { %v1582_v16 = vsub.f32 %v4918_v2, %v1563_v59 }
 0x607   :  { %v1683_v46 = vpack.c.bf16 %v1669_v45, %v1668_v4 }
 0x608   :  { %v4965_v11 = vpop.eup %3773  ;;  %v1610_v29 = vmul.f32 1.442695, %v1582_v16 }
 0x609   :  { %1711 = vmatmul.bf16.gmra.mxu2 %v1683_v46  ;;  %1640 = vadd.xlane.f32.xlu1 %v4965_v11 }
 0x60a   :  { %3775 = vpow2.f32 %v1610_v29 }
 0x60b   :  { %3777 = vrcp.f32 %v1627_v40 }
 0x60d   :  { %v1629_v9 = vpop.xlane.xlu0 %1628  ;;  %v1565_v1 = vpop.xlane.xlu2 %1564 }
 0x60e   :  { %3779 = vrcp.f32 %v1629_v9  ;;  %v1583_v57 = vsub.f32 %v4925_v6, %v1565_v1 }
 0x610   :  { %v4972_v2 = vpop.eup %3775  ;;  %v1612_v52 = vmul.f32 1.442695, %v1583_v57 }
 0x611   :  { %1642 = vadd.xlane.f32.xlu2 %v4972_v2  ;;  %v3778_v19 = vpop.eup %3777 }
 0x612   :  { %3781 = vpow2.f32 %v1612_v52  ;;  %v1670_v31 = vmul.f32 %v3778_v19, %v4920_v13 }
 0x614   :  { %v3780_v63 = vpop.eup %3779 }
 0x615   :  { %v1567_v22 = vpop.xlane.xlu2 %1566  ;;  %v1631_v43 = vpop.xlane.xlu0 %1630  ;;  %v1671_v7 = vmul.f32 %v3780_v63, %v4927_v20 }
 0x616   :  { %v1584_v14 = vsub.f32 %v4935_v5, %v1567_v22 }
 0x617   :  { %v1684_v27 = vpack.c.bf16 %v1671_v7, %v1670_v31 }
 0x618   :  { %v3782_v25 = vpop.eup %3781  ;;  %v1614_v32 = vmul.f32 1.442695, %v1584_v14 }
 0x619   :  { %1644 = vadd.xlane.f32.xlu0 %v3782_v25  ;;  %1716 = vmatmul.bf16.gmra.mxu2 %v1684_v27 }
 0x61a   :  { %3783 = vpow2.f32 %v1614_v32 }
 0x61b   :  { %3785 = vrcp.f32 %v1631_v43 }
 0x61d   :  { %v1569_v6 = vpop.xlane.xlu0 %1568  ;;  %v1633_v55 = vpop.xlane.xlu1 %1632 }
 0x61e   :  { %v1585_v49 = vsub.f32 %v4942_v26, %v1569_v6  ;;  %3787 = vrcp.f32 %v1633_v55 }
 0x620   :  { %v3784_v41 = vpop.eup %3783  ;;  %v1616_v33 = vmul.f32 1.442695, %v1585_v49 }
 0x621   :  { %1646 = vadd.xlane.f32.xlu1 %v3784_v41  ;;  %v3786_v13 = vpop.eup %3785 }
 0x622   :  { %3789 = vpow2.f32 %v1616_v33  ;;  %v1672_v5 = vmul.f32 %v3786_v13, %v4937_v23 }
 0x624   :  { %v3788_v20 = vpop.eup %3787 }
 0x625   :  { %v1673_v38 = vmul.f32 %v3788_v20, %v4944_v18  ;;  %v1635_v30 = vpop.xlane.xlu1 %1634  ;;  %v3871_v20 = vld [vmem:[%s6281_s9] sm:$0x7f] }
 0x626   :  { %3791 = vrcp.f32 %v1635_v30 }
 0x627   :  { %v1685_v53 = vpack.c.bf16 %v1673_v38, %v1672_v5  ;;  %v4993_v5 = vperm.slane %v3871_v20, 2  ;;  %v3361_v20 = vld [vmem:[%s6285_s5 + $0x218] sm:$0xff] }
 0x628   :  { %v3790_v15 = vpop.eup %3789 }
 0x629   :  { %1648 = vadd.xlane.f32.xlu2 %v3790_v15  ;;  %1721 = vmatmul.bf16.gmra.mxu2 %v1685_v53  ;;  %v3872_v53 = vld [vmem:[%s6279_s0] sm:$0xff] }
 0x62c   :  { %v3792_v26 = vpop.eup %3791 }
 0x62d   :  { %v1674_v56 = vmul.f32 %v3792_v26, %v4948_v36 }
 0x66c   :  { %v1637_v24 = vpop.xlane.xlu2 %1636 }
 0x66d   :  { %3793 = vrcp.f32 %v1637_v24 }
 0x673   :  { %v3794_v17 = vpop.eup %3793 }
 0x674   :  { %v1675_v34 = vmul.f32 %v3794_v17, %v4955_v37  ;;  %v1639_v40 = vpop.xlane.xlu0 %1638 }
 0x675   :  { %3795 = vrcp.f32 %v1639_v40 }
 0x676   :  { %v1686_v28 = vpack.c.bf16 %v1675_v34, %v1674_v56  ;;  %v1902_v56 = vlaneseq  ;;  %v3873_v34 = vld [vmem:[%s6279_s0 + $0x8] sm:$0xff] }
 0x678   :  { %1726 = vmatmul.bf16.gmra.mxu2 %v1686_v28  ;;  %v489_v28 = vadd.f32 %v3873_v34, %v4993_v5  ;;  %v5007_v40 = vshrl.u32 %v1902_v56, 7 }
 0x67a   :  { %vm1904_vm6 = vcmp.lt.s32.totalorder %v5007_v40, 1  ;;  %vm2034_vm7 = vcmp.lt.s32.totalorder %v5007_v40, 7 }
 0x67b   :  { %v3796_v59 = vpop.eup %3795 }
 0x67c   :  { %v1707_v23 = vpop.f32.mrf.mxu2  ;;  %v1641_v18 = vpop.xlane.xlu1 %1640  ;;  %v1676_v16 = vmul.f32 %v3796_v59, %v4959_v0 }
 0x67d   :  { %3797 = vrcp.f32 %v1641_v18 }
 0x683   :  { %v3798_v4 = vpop.eup %3797 }
 0x684   :  { %v1709_v45 = vpop.f32.mrf.mxu2  ;;  %v1677_v46 = vmul.f32 %v3798_v4, %v4965_v11  ;;  %v1643_v36 = vpop.xlane.xlu2 %1642 }
 0x685   :  { %v1747_v29 = vpack.c.bf16 %v1709_v45, %v1707_v23  ;;  %3799 = vrcp.f32 %v1643_v36  ;;  %v1174_v23 = vadd.f32 %v4793_v51, %v489_v28 }
 0x686   :  { %v1687_v8 = vpack.c.bf16 %v1677_v46, %v1676_v16 }
 0x687   :  { %3350 = vmatmul.msk.bf16.vlgmr.msrb.gmra.mxu3 %vm777_vm5, %v1747_v29 }
 0x688   :  { %1731 = vmatmul.bf16.gmra.mxu2 %v1687_v8 }
 0x68b   :  { %v3800_v1 = vpop.eup %3799 }
 0x68c   :  { %v1645_v37 = vpop.xlane.xlu0 %1644  ;;  %v1712_v9 = vpop.f32.mrf.mxu2  ;;  %v1678_v19 = vmul.f32 %v3800_v1, %v4972_v2 }
 0x68d   :  { %3801 = vrcp.f32 %v1645_v37 }
 0x693   :  { %v3802_v57 = vpop.eup %3801 }
 0x694   :  { %v1714_v52 = vpop.f32.mrf.mxu2  ;;  %v1679_v63 = vmul.f32 %v3802_v57, %v3782_v25  ;;  %v1647_v11 = vpop.xlane.xlu1 %1646  ;;  %v3360_v57 = vld [vmem:[%s6285_s5 + $0x210] sm:$0xff] }
 0x695   :  { %v1748_v22 = vpack.c.bf16 %v1714_v52, %v1712_v9  ;;  %3803 = vrcp.f32 %v1647_v11  ;;  %v1923_v52 = vld [vmem:[%s6285_s5 + $0x10] sm:$0xff] }
 0x696   :  { %v1688_v0 = vpack.c.bf16 %v1679_v63, %v1678_v19 }
 0x697   :  { %3351 = vmatmul.msk.bf16.gmra.mxu3 %vm777_vm5, %v1748_v22  ;;  %v3875_v22 = vld [vmem:[%s6279_s0 + $0x18] sm:$0xff] }
 0x698   :  { %1736 = vmatmul.bf16.gmra.mxu2 %v1688_v0  ;;  %v491_v0 = vadd.f32 %v3875_v22, %v4993_v5 }
 0x69b   :  { %v3804_v7 = vpop.eup %3803 }
 0x69c   :  { %v1717_v43 = vpop.f32.mrf.mxu2  ;;  %v1649_v31 = vpop.xlane.xlu2 %1648  ;;  %v1680_v32 = vmul.f32 %v3804_v7, %v3784_v41 }
 0x69d   :  { %3805 = vrcp.f32 %v1649_v31 }
 0x6a3   :  { %v3806_v14 = vpop.eup %3805 }
 0x6a4   :  { %v1719_v27 = vpop.f32.mrf.mxu2  ;;  %v1681_v6 = vmul.f32 %v3806_v14, %v3790_v15  ;;  %v488_v15 = vadd.f32 %v3872_v53, %v4993_v5  ;;  %v3392_v14 = vld [vmem:[%s6285_s5 + $0x110] sm:$0xff] }
 0x6a5   :  { %v1749_v55 = vpack.c.bf16 %v1719_v27, %v1717_v43 }
 0x6a6   :  { %v1689_v49 = vpack.c.bf16 %v1681_v6, %v1680_v32  ;;  %v1173_v30 = vadd.f32 %v4783_v58, %v488_v15  ;;  %v3874_v58 = vld [vmem:[%s6279_s0 + $0x10] sm:$0xff] }
 0x6a7   :  { %3352 = vmatmul.msk.bf16.gmra.mxu3 %vm777_vm5, %v1749_v55  ;;  %v490_v45 = vadd.f32 %v3874_v58, %v4993_v5  ;;  %v3424_v58 = vld [vmem:[%s6285_s5 + $0x290] sm:$0xff] }
 0x6a8   :  { %1741 = vmatmul.bf16.gmra.mxu2 %v1689_v49 }
 0x6a9   :  { %v1175_v9 = vadd.f32 %v4800_v54, %v490_v45  ;;  %v3376_v54 = vld [vmem:[%s6285_s5 + $0x90] sm:$0xff] }
 0x6ac   :  { %v1722_v2 = vpop.f32.mrf.mxu2 }
 0x6b4   :  { %v1724_v25 = vpop.f32.mrf.mxu2 }
 0x6b5   :  { %v1750_v33 = vpack.c.bf16 %v1724_v25, %v1722_v2  ;;  %v1176_v2 = vadd.f32 %v4806_v3, %v491_v0  ;;  %v3876_v3 = vld [vmem:[%s6279_s0 + $0x20] sm:$0xff]  ;;  %v3409_v0 = vld [vmem:[%s6285_s5 + $0x198] sm:$0xff] }
 0x6b7   :  { %3353 = vmatmul.msk.bf16.gmra.mxu3 %vm777_vm5, %v1750_v33  ;;  %v3408_v33 = vld [vmem:[%s6285_s5 + $0x190] sm:$0xff] }
 0x6fb   :  { %v1727_v13 = vpop.f32.mrf.mxu2 }
 0x703   :  { %v1729_v38 = vpop.f32.mrf.mxu2 }
 0x704   :  { %v1751_v41 = vpack.c.bf16 %v1729_v38, %v1727_v13  ;;  %v1924_v38 = vld [vmem:[%s6285_s5 + $0x18] sm:$0xff] }
 0x706   :  { %3354 = vmatmul.msk.bf16.gmra.mxu3 %vm777_vm5, %v1751_v41 }
 0x70a   :  { %v1797_v24 = vpop.f32.mrf.mxu3 }
 0x70b   :  { %v5001_v26 = vadd.f32 %v1797_v24, %v1173_v30  ;;  %v1732_v17 = vpop.f32.mrf.mxu2  ;;  %v492_v30 = vadd.f32 %v3876_v3, %v4993_v5  ;;  %v3377_v24 = vld [vmem:[%s6285_s5 + $0x98] sm:$0xff] }
 0x70d   :  { %v1886_v46 = vrot.slane %v5001_v26, 7  ;;  %v2018_v29 = vrot.slane %v5001_v26, 1 }
 0x712   :  { %v1799_v18 = vpop.f32.mrf.mxu3 }
 0x713   :  { %v5010_v59 = vadd.f32 %v1799_v18, %v1174_v23  ;;  %v1734_v4 = vpop.f32.mrf.mxu2 }
 0x714   :  { %v1752_v16 = vpack.c.bf16 %v1734_v4, %v1732_v17  ;;  %v3393_v4 = vld [vmem:[%s6285_s5 + $0x118] sm:$0xff] }
 0x715   :  { %v1887_v51 = vrot.slane %v5010_v59, 7  ;;  %v2019_v8 = vrot.slane %v5010_v59, 1  ;;  %v1988_v27 = vmul.f32 %v3376_v54, %v5010_v59  ;;  %v3456_v54 = vld [vmem:[%s6285_s5 + $0x390] sm:$0xff] }
 0x716   :  { %3355 = vmatmul.msk.bf16.gmra.mxu3 %vm777_vm5, %v1752_v16 }
 0x717   :  { %v5027_v36 = vsel %vm1904_vm6, %v1886_v46, %v1887_v51  ;;  %v5033_v37 = vsel %vm2034_vm7, %v2018_v29, %v2019_v8 }
 0x718   :  { %v1939_v31 = vmul.f32 %v1923_v52, %v5027_v36 }
 0x71a   :  { %v1802_v1 = vpop.f32.mrf.mxu3 }
 0x71b   :  { %v5042_v19 = vadd.f32 %v1802_v1, %v1175_v9  ;;  %v1737_v63 = vpop.f32.mrf.mxu2  ;;  %v3440_v1 = vld [vmem:[%s6285_s5 + $0x310] sm:$0xff] }
 0x71d   :  { %v1872_v11 = vmul.f32 %v3360_v57, %v5042_v19  ;;  %v1888_v43 = vrot.slane %v5042_v19, 7  ;;  %v2020_v7 = vrot.slane %v5042_v19, 1  ;;  %v1989_v16 = vmul.f32 %v3377_v24, %v5042_v19  ;;  %v3425_v24 = vld [vmem:[%s6285_s5 + $0x298] sm:$0xff] }
 0x71f   :  { %v5061_v32 = vsel %vm1904_vm6, %v1887_v51, %v1888_v43  ;;  %v1955_v6 = vadd.f32 %v1939_v31, %v1872_v11  ;;  %v5065_v55 = vsel %vm2034_vm7, %v2019_v8, %v2020_v7  ;;  %v1925_v31 = vld [vmem:[%s6285_s5 + $0x20] sm:$0xff] }
 0x720   :  { %v2070_v49 = vmul.f32 %v3392_v14, %v5065_v55  ;;  %v2119_v17 = vmul.f32 %v3408_v33, %v5061_v32  ;;  %v1940_v23 = vmul.f32 %v1924_v38, %v5061_v32 }
 0x721   :  { %v2004_v25 = vadd.f32 %v1988_v27, %v1955_v6 }
 0x722   :  { %v1804_v13 = vpop.f32.mrf.mxu3 }
 0x723   :  { %v2086_v41 = vadd.f32 %v2070_v49, %v2004_v25  ;;  %v1840_v53 = vadd.f32 %v1804_v13, %v1176_v2  ;;  %v1739_v15 = vpop.f32.mrf.mxu2  ;;  %v3877_v49 = vld [vmem:[%s6279_s0 + $0x28] sm:$0xff]  ;;  %v3378_v25 = vld [vmem:[%s6285_s5 + $0xa0] sm:$0xff] }
 0x724   :  { %v1753_v56 = vpack.c.bf16 %v1739_v15, %v1737_v63  ;;  %v1177_v63 = vadd.f32 %v4813_v44, %v492_v30  ;;  %v493_v2 = vadd.f32 %v3877_v49, %v4993_v5  ;;  %v3394_v30 = vld [vmem:[%s6285_s5 + $0x120] sm:$0xff] }
 0x725   :  { %v1873_v34 = vmul.f32 %v3361_v20, %v1840_v53  ;;  %v1889_v28 = vrot.slane %v1840_v53, 7  ;;  %v2021_v18 = vrot.slane %v1840_v53, 1  ;;  %v2135_v45 = vadd.f32 %v2119_v17, %v2086_v41 }
 0x726   :  { %3356 = vmatmul.msk.bf16.gmra.mxu3 %vm777_vm5, %v1753_v56  ;;  %v2266_v13 = vmul.f32 %v3456_v54, %v1840_v53  ;;  %v3472_v56 = vld [vmem:[%s6285_s5 + $0x410] sm:$0xff] }
 0x727   :  { %v1917_v51 = vsel %vm1904_vm6, %v1888_v43, %v1889_v28  ;;  %v1956_v8 = vadd.f32 %v1940_v23, %v1873_v34  ;;  %v5099_v9 = vsel %vm2034_vm7, %v2020_v7, %v2021_v18  ;;  %v3362_v43 = vld [vmem:[%s6285_s5 + $0x220] sm:$0xff]  ;;  %v1990_v23 = vmul.f32 %v3378_v25, %v1840_v53  ;;  %v3878_v54 = vld [vmem:[%s6279_s0 + $0x30] sm:$0xff] }
 0x728   :  { %v2071_v57 = vmul.f32 %v3393_v4, %v5099_v9  ;;  %v2168_v52 = vmul.f32 %v3424_v58, %v5099_v9  ;;  %v2217_v44 = vmul.f32 %v3440_v1, %v1917_v51  ;;  %v2120_v33 = vmul.f32 %v3409_v0, %v1917_v51  ;;  %v3410_v53 = vld [vmem:[%s6285_s5 + $0x1a0] sm:$0xff] }
 0x729   :  { %v2005_v22 = vadd.f32 %v1989_v16, %v1956_v8  ;;  %v1941_v15 = vmul.f32 %v1925_v31, %v1917_v51  ;;  %v3441_v16 = vld [vmem:[%s6285_s5 + $0x318] sm:$0xff]  ;;  %v1178_v1 = vadd.f32 %v4820_v60, %v493_v2 }
 0x72a   :  { %v1807_v11 = vpop.f32.mrf.mxu3  ;;  %v2184_v7 = vadd.f32 %v2168_v52, %v2135_v45 }
 0x72b   :  { %v1841_v14 = vadd.f32 %v1807_v11, %v1177_v63  ;;  %v1742_v27 = vpop.f32.mrf.mxu2  ;;  %v2087_v6 = vadd.f32 %v2071_v57, %v2005_v22  ;;  %v1926_v22 = vld [vmem:[%s6285_s5 + $0x28] sm:$0xff]  ;;  %v494_v11 = vadd.f32 %v3878_v54, %v4993_v5 }
 0x72c   :  { %v2233_v20 = vadd.f32 %v2217_v44, %v2184_v7 }
 0x72d   :  { %v1874_v38 = vmul.f32 %v3362_v43, %v1841_v14  ;;  %v1890_v41 = vrot.slane %v1841_v14, 7  ;;  %v2022_v3 = vrot.slane %v1841_v14, 1  ;;  %v2136_v34 = vadd.f32 %v2120_v33, %v2087_v6  ;;  %v3379_v6 = vld [vmem:[%s6285_s5 + $0xa8] sm:$0xff] }
 0x72e   :  { %v2282_v17 = vadd.f32 %v2266_v13, %v2233_v20 }
 0x72f   :  { %v1916_v4 = vsel %vm1904_vm6, %v1889_v28, %v1890_v41  ;;  %v1957_v58 = vadd.f32 %v1941_v15, %v1874_v38  ;;  %v2046_v45 = vsel %vm2034_vm7, %v2021_v18, %v2022_v3  ;;  %v3457_v28 = vld [vmem:[%s6285_s5 + $0x398] sm:$0xff]  ;;  %v3363_v18 = vld [vmem:[%s6285_s5 + $0x228] sm:$0xff] }
 0x730   :  { %v2072_v51 = vmul.f32 %v3394_v30, %v2046_v45  ;;  %v2169_v8 = vmul.f32 %v3425_v24, %v2046_v45  ;;  %v2315_v52 = vmul.f32 %v3472_v56, %v2046_v45  ;;  %v2218_v0 = vmul.f32 %v3441_v16, %v1916_v4  ;;  %v3395_v30 = vld [vmem:[%s6285_s5 + $0x128] sm:$0xff]  ;;  %v3426_v24 = vld [vmem:[%s6285_s5 + $0x2a0] sm:$0xff] }
 0x731   :  { %v2006_v57 = vadd.f32 %v1990_v23, %v1957_v58  ;;  %v2121_v49 = vmul.f32 %v3410_v53, %v1916_v4  ;;  %v2267_v2 = vmul.f32 %v3457_v28, %v1841_v14  ;;  %v1942_v38 = vmul.f32 %v1926_v22, %v1916_v4 }
 0x732   :  { %v1809_v63 = vpop.f32.mrf.mxu3  ;;  %v2185_v60 = vadd.f32 %v2169_v8, %v2136_v34  ;;  %v5159_v44 = vadd.f32 %v2315_v52, %v2282_v17  ;;  %v1991_v34 = vmul.f32 %v3379_v6, %v1841_v14  ;;  %v1179_v16 = vadd.f32 %v4823_v12, %v494_v11  ;;  %v3411_v8 = vld [vmem:[%s6285_s5 + $0x1a8] sm:$0xff]  ;;  %v3442_v14 = vld [vmem:[%s6285_s5 + $0x320] sm:$0xff]  ;;  %v1927_v12 = vld [vmem:[%s6285_s5 + $0x30] sm:$0xff] }
 0x733   :  { %v1842_v43 = vadd.f32 %v1809_v63, %v1178_v1  ;;  %v1744_v31 = vpop.f32.mrf.mxu2  ;;  %v2088_v7 = vadd.f32 %v2072_v51, %v2006_v57 }
 0x734   :  { %v1754_v25 = vpack.c.bf16 %v1744_v31, %v1742_v27  ;;  %v2234_v33 = vadd.f32 %v2218_v0, %v2185_v60  ;;  %v3473_v27 = vld [vmem:[%s6285_s5 + $0x418] sm:$0xff]  ;;  %v3458_v0 = vld [vmem:[%s6285_s5 + $0x3a0] sm:$0xff] }
 0x735   :  { %v1875_v13 = vmul.f32 %v3363_v18, %v1842_v43  ;;  %v1891_v20 = vrot.slane %v1842_v43, 7  ;;  %v2023_v15 = vrot.slane %v1842_v43, 1  ;;  %v2137_v56 = vadd.f32 %v2121_v49, %v2088_v7  ;;  %v3879_v18 = vld [vmem:[%s6279_s0 + $0x38] sm:$0xff] }
 0x736   :  { %3357 = vmatmul.msk.bf16.gmra.mxu3 %vm777_vm5, %v1754_v25  ;;  %v2283_v17 = vadd.f32 %v2267_v2, %v2234_v33  ;;  %v495_v22 = vadd.f32 %v3879_v18, %v4993_v5  ;;  %v3396_v25 = vld [vmem:[%s6285_s5 + $0x130] sm:$0xff]  ;;  %v3427_v33 = vld [vmem:[%s6285_s5 + $0x2a8] sm:$0xff] }
 0x737   :  { %v1915_v23 = vsel %vm1904_vm6, %v1890_v41, %v1891_v20  ;;  %v1958_v4 = vadd.f32 %v1942_v38, %v1875_v13  ;;  %v2045_v58 = vsel %vm2034_vm7, %v2022_v3, %v2023_v15  ;;  %v3364_v41 = vld [vmem:[%s6285_s5 + $0x230] sm:$0xff] }
 0x738   :  { %v2073_v45 = vmul.f32 %v3395_v30, %v2045_v58  ;;  %v2170_v1 = vmul.f32 %v3426_v24, %v2045_v58  ;;  %v2316_v57 = vmul.f32 %v3473_v27, %v2045_v58  ;;  %v3380_v3 = vld [vmem:[%s6285_s5 + $0xb0] sm:$0xff]  ;;  %v2122_v60 = vmul.f32 %v3411_v8, %v1915_v23 }
 0x739   :  { %v2007_v51 = vadd.f32 %v1991_v34, %v1958_v4  ;;  %v2219_v11 = vmul.f32 %v3442_v14, %v1915_v23  ;;  %v1943_v6 = vmul.f32 %v1927_v12, %v1915_v23  ;;  %v1992_v2 = vmul.f32 %v3380_v3, %v1842_v43  ;;  %v3412_v4 = vld [vmem:[%s6285_s5 + $0x1b0] sm:$0xff]  ;;  %v3381_v14 = vld [vmem:[%s6285_s5 + $0xb8] sm:$0xff] }
 0x73a   :  { %v1812_v53 = vpop.f32.mrf.mxu3  ;;  %v5194_v63 = vadd.f32 %v2316_v57, %v2283_v17  ;;  %v2186_v54 = vadd.f32 %v2170_v1, %v2137_v56  ;;  %v2268_v30 = vmul.f32 %v3458_v0, %v1842_v43  ;;  %v3474_v56 = vld [vmem:[%s6285_s5 + $0x420] sm:$0xff]  ;;  %v1180_v34 = vadd.f32 %v4827_v35, %v495_v22  ;;  %v1928_v35 = vld [vmem:[%s6285_s5 + $0x38] sm:$0xff] }
 0x73b   :  { %v1843_v28 = vadd.f32 %v1812_v53, %v1179_v16  ;;  %v2089_v52 = vadd.f32 %v2073_v45, %v2007_v51  ;;  %v3397_v0 = vld [vmem:[%s6285_s5 + $0x138] sm:$0xff] }
 0x73c   :  { %v2235_v13 = vadd.f32 %v2219_v11, %v2186_v54  ;;  %v3428_v54 = vld [vmem:[%s6285_s5 + $0x2b0] sm:$0xff] }
 0x73d   :  { %v1876_v31 = vmul.f32 %v3364_v41, %v1843_v28  ;;  %v1892_v7 = vrot.slane %v1843_v28, 7  ;;  %v2024_v49 = vrot.slane %v1843_v28, 1  ;;  %v2138_v38 = vadd.f32 %v2122_v60, %v2089_v52  ;;  %v3459_v41 = vld [vmem:[%s6285_s5 + $0x3a8] sm:$0xff] }
 0x73e   :  { %v2284_v45 = vadd.f32 %v2268_v30, %v2235_v13  ;;  %v3475_v13 = vld [vmem:[%s6285_s5 + $0x428] sm:$0xff]  ;;  %v3413_v30 = vld [vmem:[%s6285_s5 + $0x1b8] sm:$0xff] }
 0x73f   :  { %v1914_v24 = vsel %vm1904_vm6, %v1891_v20, %v1892_v7  ;;  %v1959_v17 = vadd.f32 %v1943_v6, %v1876_v31  ;;  %v2044_v27 = vsel %vm2034_vm7, %v2023_v15, %v2024_v49  ;;  %v3443_v20 = vld [vmem:[%s6285_s5 + $0x328] sm:$0xff]  ;;  %v3365_v15 = vld [vmem:[%s6285_s5 + $0x238] sm:$0xff]  ;;  %v1993_v6 = vmul.f32 %v3381_v14, %v1843_v28 }
 0x740   :  { %v2074_v58 = vmul.f32 %v3396_v25, %v2044_v27  ;;  %v2171_v43 = vmul.f32 %v3427_v33, %v2044_v27  ;;  %v2317_v51 = vmul.f32 %v3474_v56, %v2044_v27  ;;  %v2123_v53 = vmul.f32 %v3412_v4, %v1914_v24 }
 0x741   :  { %v2008_v23 = vadd.f32 %v1992_v2, %v1959_v17  ;;  %v2220_v3 = vmul.f32 %v3443_v20, %v1914_v24  ;;  %v1944_v22 = vmul.f32 %v1928_v35, %v1914_v24  ;;  %v2269_v2 = vmul.f32 %v3459_v41, %v1843_v28  ;;  %v3444_v24 = vld [vmem:[%s6285_s5 + $0x330] sm:$0xff]  ;;  %v3880_v20 = vld [vmem:[%s6279_s0 + $0x40] sm:$0xff] }
 0x742   :  { %v1814_v16 = vpop.f32.mrf.mxu3  ;;  %v2187_v57 = vadd.f32 %v2171_v43, %v2138_v38  ;;  %v5235_v12 = vadd.f32 %v2317_v51, %v2284_v45  ;;  %v3366_v51 = vld [vmem:[%s6285_s5 + $0x240] sm:$0xff]  ;;  %v3460_v41 = vld [vmem:[%s6285_s5 + $0x3b0] sm:$0xff] }
 0x743   :  { %v1844_v8 = vadd.f32 %v1814_v16, %v1180_v34  ;;  %v2090_v1 = vadd.f32 %v2074_v58, %v2008_v23  ;;  %v496_v16 = vadd.f32 %v3880_v20, %v4993_v5 }
 0x744   :  { %v2236_v11 = vadd.f32 %v2220_v3, %v2187_v57  ;;  %v3382_v57 = vld [vmem:[%s6285_s5 + $0xc0] sm:$0xff] }
 0x745   :  { %v1877_v52 = vmul.f32 %v3365_v15, %v1844_v8  ;;  %v1893_v18 = vrot.slane %v1844_v8, 7  ;;  %v2025_v60 = vrot.slane %v1844_v8, 1  ;;  %v2139_v31 = vadd.f32 %v2123_v53, %v2090_v1  ;;  %v1929_v1 = vld [vmem:[%s6285_s5 + $0x40] sm:$0xff]  ;;  %v3881_v53 = vld [vmem:[%s6279_s0 + $0x48] sm:$0xff] }
 0x746   :  { %v2285_v56 = vadd.f32 %v2269_v2, %v2236_v11  ;;  %v1181_v15 = vadd.f32 %v4831_v50, %v496_v16  ;;  %v497_v50 = vadd.f32 %v3881_v53, %v4993_v5  ;;  %v3429_v11 = vld [vmem:[%s6285_s5 + $0x2b8] sm:$0xff]  ;;  %v2270_v2 = vmul.f32 %v3460_v41, %v1844_v8  ;;  %v3399_v41 = vld [vmem:[%s6285_s5 + $0x148] sm:$0xff] }
 0x747   :  { %v1960_v25 = vadd.f32 %v1944_v22, %v1877_v52  ;;  %v2043_v33 = vsel %vm2034_vm7, %v2024_v49, %v2025_v60  ;;  %v1913_v38 = vsel %vm1904_vm6, %v1892_v7, %v1893_v18 }
 0x748   :  { %v2075_v17 = vmul.f32 %v3397_v0, %v2043_v33  ;;  %v2172_v27 = vmul.f32 %v3428_v54, %v2043_v33  ;;  %v2318_v49 = vmul.f32 %v3475_v13, %v2043_v33  ;;  %v2124_v34 = vmul.f32 %v3413_v30, %v1913_v38  ;;  %v3398_v54 = vld [vmem:[%s6285_s5 + $0x140] sm:$0xff] }
 0x749   :  { %v2009_v28 = vadd.f32 %v1993_v6, %v1960_v25  ;;  %v2221_v58 = vmul.f32 %v3444_v24, %v1913_v38  ;;  %v1945_v22 = vmul.f32 %v1929_v1, %v1913_v38  ;;  %v3476_v6 = vld [vmem:[%s6285_s5 + $0x430] sm:$0xff]  ;;  %v3445_v38 = vld [vmem:[%s6285_s5 + $0x338] sm:$0xff] }
 0x74a   :  { %v2188_v4 = vadd.f32 %v2172_v27, %v2139_v31  ;;  %v5256_v43 = vadd.f32 %v2318_v49, %v2285_v56  ;;  %v1994_v31 = vmul.f32 %v3382_v57, %v1844_v8  ;;  %v3414_v8 = vld [vmem:[%s6285_s5 + $0x1c0] sm:$0xff]  ;;  %v3367_v49 = vld [vmem:[%s6285_s5 + $0x248] sm:$0xff] }
 0x74b   :  { %v2091_v23 = vadd.f32 %v2075_v17, %v2009_v28  ;;  %v1182_v28 = vadd.f32 %v4834_v61, %v497_v50  ;;  %v1930_v61 = vld [vmem:[%s6285_s5 + $0x48] sm:$0xff] }
 0x74c   :  { %v2237_v45 = vadd.f32 %v2221_v58, %v2188_v4 }
 0x74d   :  { %v2140_v7 = vadd.f32 %v2124_v34, %v2091_v23 }
 0x74e   :  { %v2286_v27 = vadd.f32 %v2270_v2, %v2237_v45  ;;  %v3882_v45 = vld [vmem:[%s6279_s0 + $0x50] sm:$0xff] }
 0x74f   :  { %v498_v16 = vadd.f32 %v3882_v45, %v4993_v5 }
 0x789   :  { %v1817_v35 = vpop.f32.mrf.mxu3 }
 0x78a   :  { %v1845_v14 = vadd.f32 %v1817_v35, %v1181_v15  ;;  %v3383_v15 = vld [vmem:[%s6285_s5 + $0xc8] sm:$0xff] }
 0x78c   :  { %v1878_v3 = vmul.f32 %v3366_v51, %v1845_v14  ;;  %v1894_v52 = vrot.slane %v1845_v14, 7  ;;  %v2026_v0 = vrot.slane %v1845_v14, 1 }
 0x78e   :  { %v1912_v25 = vsel %vm1904_vm6, %v1893_v18, %v1894_v52  ;;  %v1961_v33 = vadd.f32 %v1945_v22, %v1878_v3  ;;  %v2042_v13 = vsel %vm2034_vm7, %v2025_v60, %v2026_v0  ;;  %v3461_v18 = vld [vmem:[%s6285_s5 + $0x3b8] sm:$0xff]  ;;  %v3430_v3 = vld [vmem:[%s6285_s5 + $0x2c0] sm:$0xff] }
 0x78f   :  { %v2076_v30 = vmul.f32 %v3398_v54, %v2042_v13  ;;  %v2173_v24 = vmul.f32 %v3429_v11, %v2042_v13  ;;  %v2319_v56 = vmul.f32 %v3476_v6, %v2042_v13  ;;  %v2222_v23 = vmul.f32 %v3445_v38, %v1912_v25  ;;  %v3477_v54 = vld [vmem:[%s6285_s5 + $0x438] sm:$0xff] }
 0x790   :  { %v2010_v17 = vadd.f32 %v1994_v31, %v1961_v33  ;;  %v2125_v35 = vmul.f32 %v3414_v8, %v1912_v25  ;;  %v2271_v51 = vmul.f32 %v3461_v18, %v1845_v14  ;;  %v1946_v53 = vmul.f32 %v1930_v61, %v1912_v25  ;;  %v3446_v33 = vld [vmem:[%s6285_s5 + $0x340] sm:$0xff]  ;;  %v1931_v8 = vld [vmem:[%s6285_s5 + $0x50] sm:$0xff] }
 0x791   :  { %v1819_v60 = vpop.f32.mrf.mxu3  ;;  %v2189_v34 = vadd.f32 %v2173_v24, %v2140_v7  ;;  %v5308_v20 = vadd.f32 %v2319_v56, %v2286_v27  ;;  %v1995_v31 = vmul.f32 %v3383_v15, %v1845_v14  ;;  %v3415_v14 = vld [vmem:[%s6285_s5 + $0x1c8] sm:$0xff] }
 0x792   :  { %v2092_v4 = vadd.f32 %v2076_v30, %v2010_v17  ;;  %v1846_v58 = vadd.f32 %v1819_v60, %v1182_v28  ;;  %v1183_v30 = vadd.f32 %v4838_v62, %v498_v16 }
 0x793   :  { %v2238_v1 = vadd.f32 %v2222_v23, %v2189_v34  ;;  %v3384_v34 = vld [vmem:[%s6285_s5 + $0xd0] sm:$0xff] }
 0x794   :  { %v1879_v57 = vmul.f32 %v3367_v49, %v1846_v58  ;;  %v1895_v7 = vrot.slane %v1846_v58, 7  ;;  %v2027_v50 = vrot.slane %v1846_v58, 1  ;;  %v2141_v11 = vadd.f32 %v2125_v35, %v2092_v4  ;;  %v3883_v49 = vld [vmem:[%s6279_s0 + $0x58] sm:$0xff] }
 0x795   :  { %v2287_v22 = vadd.f32 %v2271_v51, %v2238_v1  ;;  %v499_v61 = vadd.f32 %v3883_v49, %v4993_v5  ;;  %v3400_v1 = vld [vmem:[%s6285_s5 + $0x150] sm:$0xff] }
 0x796   :  { %v1911_v6 = vsel %vm1904_vm6, %v1894_v52, %v1895_v7  ;;  %v1962_v2 = vadd.f32 %v1946_v53, %v1879_v57  ;;  %v2041_v25 = vsel %vm2034_vm7, %v2026_v0, %v2027_v50  ;;  %v3462_v52 = vld [vmem:[%s6285_s5 + $0x3c0] sm:$0xff]  ;;  %v3368_v0 = vld [vmem:[%s6285_s5 + $0x250] sm:$0xff]  ;;  %v3431_v57 = vld [vmem:[%s6285_s5 + $0x2c8] sm:$0xff] }
 0x797   :  { %v2077_v13 = vmul.f32 %v3399_v41, %v2041_v25  ;;  %v2174_v38 = vmul.f32 %v3430_v3, %v2041_v25  ;;  %v2320_v28 = vmul.f32 %v3477_v54, %v2041_v25  ;;  %v2223_v18 = vmul.f32 %v3446_v33, %v1911_v6  ;;  %v3478_v41 = vld [vmem:[%s6285_s5 + $0x440] sm:$0xff]  ;;  %v3416_v33 = vld [vmem:[%s6285_s5 + $0x1d0] sm:$0xff] }
 0x798   :  { %v2011_v24 = vadd.f32 %v1995_v31, %v1962_v2  ;;  %v2126_v23 = vmul.f32 %v3415_v14, %v1911_v6  ;;  %v2272_v4 = vmul.f32 %v3462_v52, %v1846_v58  ;;  %v1947_v35 = vmul.f32 %v1931_v8, %v1911_v6  ;;  %v3463_v8 = vld [vmem:[%s6285_s5 + $0x3c8] sm:$0xff] }
 0x799   :  { %v1822_v17 = vpop.f32.mrf.mxu3  ;;  %v2190_v62 = vadd.f32 %v2174_v38, %v2141_v11  ;;  %v5346_v60 = vadd.f32 %v2320_v28, %v2287_v22  ;;  %v1996_v22 = vmul.f32 %v3384_v34, %v1846_v58  ;;  %v1184_v2 = vadd.f32 %v4841_v21, %v499_v61  ;;  %v3447_v58 = vld [vmem:[%s6285_s5 + $0x348] sm:$0xff]  ;;  %v1932_v21 = vld [vmem:[%s6285_s5 + $0x58] sm:$0xff]  ;;  %v3884_v28 = vld [vmem:[%s6279_s0 + $0x60] sm:$0xff] }
 0x79a   :  { %v1847_v27 = vadd.f32 %v1822_v17, %v1183_v30  ;;  %v2093_v56 = vadd.f32 %v2077_v13, %v2011_v24  ;;  %v500_v17 = vadd.f32 %v3884_v28, %v4993_v5 }
 0x79b   :  { %v2239_v45 = vadd.f32 %v2223_v18, %v2190_v62 }
 0x79c   :  { %v1880_v16 = vmul.f32 %v3368_v0, %v1847_v27  ;;  %v1896_v15 = vrot.slane %v1847_v27, 7  ;;  %v2028_v51 = vrot.slane %v1847_v27, 1  ;;  %v2142_v3 = vadd.f32 %v2126_v23, %v2093_v56  ;;  %v3401_v23 = vld [vmem:[%s6285_s5 + $0x158] sm:$0xff] }
 0x79d   :  { %v2288_v53 = vadd.f32 %v2272_v4, %v2239_v45  ;;  %v3432_v45 = vld [vmem:[%s6285_s5 + $0x2d0] sm:$0xff] }
 0x79e   :  { %v1910_v54 = vsel %vm1904_vm6, %v1895_v7, %v1896_v15  ;;  %v1963_v11 = vadd.f32 %v1947_v35, %v1880_v16  ;;  %v2040_v31 = vsel %vm2034_vm7, %v2027_v50, %v2028_v51  ;;  %v3369_v7 = vld [vmem:[%s6285_s5 + $0x258] sm:$0xff]  ;;  %v3479_v35 = vld [vmem:[%s6285_s5 + $0x448] sm:$0xff] }
 0x79f   :  { %v2078_v6 = vmul.f32 %v3400_v1, %v2040_v31  ;;  %v2175_v13 = vmul.f32 %v3431_v57, %v2040_v31  ;;  %v2321_v38 = vmul.f32 %v3478_v41, %v2040_v31  ;;  %v3385_v50 = vld [vmem:[%s6285_s5 + $0xd8] sm:$0xff]  ;;  %v2127_v0 = vmul.f32 %v3416_v33, %v1910_v54  ;;  %v3386_v33 = vld [vmem:[%s6285_s5 + $0xe0] sm:$0xff] }
 0x7a0   :  { %v2012_v25 = vadd.f32 %v1996_v22, %v1963_v11  ;;  %v2224_v18 = vmul.f32 %v3447_v58, %v1910_v54  ;;  %v1948_v61 = vmul.f32 %v1932_v21, %v1910_v54  ;;  %v1997_v4 = vmul.f32 %v3385_v50, %v1847_v27  ;;  %v3417_v31 = vld [vmem:[%s6285_s5 + $0x1d8] sm:$0xff] }
 0x7a1   :  { %v1824_v30 = vpop.f32.mrf.mxu3  ;;  %v5384_v52 = vadd.f32 %v2321_v38, %v2288_v53  ;;  %v2191_v62 = vadd.f32 %v2175_v13, %v2142_v3  ;;  %v2273_v57 = vmul.f32 %v3463_v8, %v1847_v27  ;;  %v1185_v22 = vadd.f32 %v4845_v39, %v500_v17  ;;  %v3448_v27 = vld [vmem:[%s6285_s5 + $0x350] sm:$0xff]  ;;  %v1933_v39 = vld [vmem:[%s6285_s5 + $0x60] sm:$0xff] }
 0x7a2   :  { %v1848_v24 = vadd.f32 %v1824_v30, %v1184_v2  ;;  %v2094_v14 = vadd.f32 %v2078_v6, %v2012_v25 }
 0x7a3   :  { %v2240_v16 = vadd.f32 %v2224_v18, %v2191_v62 }
 0x7a4   :  { %v1881_v56 = vmul.f32 %v3369_v7, %v1848_v24  ;;  %v1897_v49 = vrot.slane %v1848_v24, 7  ;;  %v2029_v34 = vrot.slane %v1848_v24, 1  ;;  %v2143_v1 = vadd.f32 %v2127_v0, %v2094_v14  ;;  %v3885_v7 = vld [vmem:[%s6279_s0 + $0x68] sm:$0xff]  ;;  %v3464_v14 = vld [vmem:[%s6285_s5 + $0x3d0] sm:$0xff] }
 0x7a5   :  { %v2289_v2 = vadd.f32 %v2273_v57, %v2240_v16  ;;  %v501_v21 = vadd.f32 %v3885_v7, %v4993_v5  ;;  %v1998_v18 = vmul.f32 %v3386_v33, %v1848_v24  ;;  %v3480_v57 = vld [vmem:[%s6285_s5 + $0x450] sm:$0xff]  ;;  %v3465_v33 = vld [vmem:[%s6285_s5 + $0x3d8] sm:$0xff] }
 0x7a6   :  { %v1909_v53 = vsel %vm1904_vm6, %v1896_v15, %v1897_v49  ;;  %v1964_v41 = vadd.f32 %v1948_v61, %v1881_v56  ;;  %v2039_v3 = vsel %vm2034_vm7, %v2028_v51, %v2029_v34  ;;  %v3370_v51 = vld [vmem:[%s6285_s5 + $0x260] sm:$0xff]  ;;  %v3433_v61 = vld [vmem:[%s6285_s5 + $0x2d8] sm:$0xff] }
 0x7a7   :  { %v2079_v54 = vmul.f32 %v3401_v23, %v2039_v3  ;;  %v2176_v6 = vmul.f32 %v3432_v45, %v2039_v3  ;;  %v2322_v25 = vmul.f32 %v3479_v35, %v2039_v3  ;;  %v2128_v50 = vmul.f32 %v3417_v31, %v1909_v53  ;;  %v3402_v56 = vld [vmem:[%s6285_s5 + $0x160] sm:$0xff] }
 0x7a8   :  { %v2013_v11 = vadd.f32 %v1997_v4, %v1964_v41  ;;  %v2225_v28 = vmul.f32 %v3448_v27, %v1909_v53  ;;  %v1949_v8 = vmul.f32 %v1933_v39, %v1909_v53  ;;  %v2274_v45 = vmul.f32 %v3464_v14, %v1848_v24  ;;  %v3418_v3 = vld [vmem:[%s6285_s5 + $0x1e0] sm:$0xff] }
 0x7a9   :  { %v1827_v15 = vpop.f32.mrf.mxu3  ;;  %v5422_v58 = vadd.f32 %v2322_v25, %v2289_v2  ;;  %v2192_v30 = vadd.f32 %v2176_v6, %v2143_v1  ;;  %v1186_v53 = vadd.f32 %v4848_v42, %v501_v21  ;;  %v1934_v42 = vld [vmem:[%s6285_s5 + $0x68] sm:$0xff] }
 0x7aa   :  { %v1849_v13 = vadd.f32 %v1827_v15, %v1185_v22  ;;  %v2095_v38 = vadd.f32 %v2079_v54, %v2013_v11  ;;  %v3387_v6 = vld [vmem:[%s6285_s5 + $0xe8] sm:$0xff]  ;;  %v3886_v15 = vld [vmem:[%s6279_s0 + $0x70] sm:$0xff] }
 0x7ab   :  { %v2241_v23 = vadd.f32 %v2225_v28, %v2192_v30 }
 0x7ac   :  { %v1882_v17 = vmul.f32 %v3370_v51, %v1849_v13  ;;  %v1898_v0 = vrot.slane %v1849_v13, 7  ;;  %v2030_v62 = vrot.slane %v1849_v13, 1  ;;  %v2144_v4 = vadd.f32 %v2128_v50, %v2095_v38 }
 0x7ad   :  { %v2290_v54 = vadd.f32 %v2274_v45, %v2241_v23  ;;  %v502_v51 = vadd.f32 %v3886_v15, %v4993_v5  ;;  %v1999_v28 = vmul.f32 %v3387_v6, %v1849_v13 }
 0x7ae   :  { %v1908_v16 = vsel %vm1904_vm6, %v1897_v49, %v1898_v0  ;;  %v1965_v35 = vadd.f32 %v1949_v8, %v1882_v17  ;;  %v2038_v1 = vsel %vm2034_vm7, %v2029_v34, %v2030_v62  ;;  %v3449_v49 = vld [vmem:[%s6285_s5 + $0x358] sm:$0xff]  ;;  %v3371_v34 = vld [vmem:[%s6285_s5 + $0x268] sm:$0xff]  ;;  %v3434_v8 = vld [vmem:[%s6285_s5 + $0x2e0] sm:$0xff] }
 0x7af   :  { %v2080_v22 = vmul.f32 %v3402_v56, %v2038_v1  ;;  %v2177_v24 = vmul.f32 %v3433_v61, %v2038_v1  ;;  %v2323_v31 = vmul.f32 %v3480_v57, %v2038_v1  ;;  %v2129_v39 = vmul.f32 %v3418_v3, %v1908_v16  ;;  %v3403_v17 = vld [vmem:[%s6285_s5 + $0x168] sm:$0xff] }
 0x7b0   :  { %v2014_v41 = vadd.f32 %v1998_v18, %v1965_v35  ;;  %v2226_v30 = vmul.f32 %v3449_v49, %v1908_v16  ;;  %v1950_v50 = vmul.f32 %v1934_v42, %v1908_v16  ;;  %v2275_v61 = vmul.f32 %v3465_v33, %v1849_v13  ;;  %v3481_v16 = vld [vmem:[%s6285_s5 + $0x458] sm:$0xff]  ;;  %v3419_v57 = vld [vmem:[%s6285_s5 + $0x1e8] sm:$0xff]  ;;  %v3388_v42 = vld [vmem:[%s6285_s5 + $0xf0] sm:$0xff] }
 0x7b1   :  { %v1829_v11 = vpop.f32.mrf.mxu3  ;;  %v2193_v27 = vadd.f32 %v2177_v24, %v2144_v4  ;;  %v5467_v38 = vadd.f32 %v2323_v31, %v2290_v54  ;;  %v1187_v35 = vadd.f32 %v4852_v47, %v502_v51  ;;  %v1935_v47 = vld [vmem:[%s6285_s5 + $0x70] sm:$0xff] }
 0x7b2   :  { %v1850_v2 = vadd.f32 %v1829_v11, %v1186_v53  ;;  %v2096_v25 = vadd.f32 %v2080_v22, %v2014_v41  ;;  %v3887_v11 = vld [vmem:[%s6279_s0 + $0x78] sm:$0xff] }
 0x7b3   :  { %v2242_v18 = vadd.f32 %v2226_v30, %v2193_v27  ;;  %v3466_v27 = vld [vmem:[%s6285_s5 + $0x3e0] sm:$0xff] }
 0x7b4   :  { %v1883_v7 = vmul.f32 %v3371_v34, %v1850_v2  ;;  %v1899_v21 = vrot.slane %v1850_v2, 7  ;;  %v2031_v14 = vrot.slane %v1850_v2, 1  ;;  %v2145_v56 = vadd.f32 %v2129_v39, %v2096_v25 }
 0x7b5   :  { %v2291_v41 = vadd.f32 %v2275_v61, %v2242_v18  ;;  %v503_v34 = vadd.f32 %v3887_v11, %v4993_v5  ;;  %v3404_v5 = vld [vmem:[%s6285_s5 + $0x170] sm:$0xff]  ;;  %v3482_v61 = vld [vmem:[%s6285_s5 + $0x460] sm:$0xff] }
 0x7b6   :  { %v1907_v23 = vsel %vm1904_vm6, %v1898_v0, %v1899_v21  ;;  %v1966_v4 = vadd.f32 %v1950_v50, %v1883_v7  ;;  %v2037_v45 = vsel %vm2034_vm7, %v2030_v62, %v2031_v14  ;;  %v3450_v0 = vld [vmem:[%s6285_s5 + $0x360] sm:$0xff]  ;;  %v3372_v62 = vld [vmem:[%s6285_s5 + $0x270] sm:$0xff]  ;;  %v3435_v7 = vld [vmem:[%s6285_s5 + $0x2e8] sm:$0xff] }
 0x7b7   :  { %v2081_v53 = vmul.f32 %v3403_v17, %v2037_v45  ;;  %v2178_v13 = vmul.f32 %v3434_v8, %v2037_v45  ;;  %v2324_v22 = vmul.f32 %v3481_v16, %v2037_v45  ;;  %v2130_v31 = vmul.f32 %v3419_v57, %v1907_v23  ;;  %v3451_v57 = vld [vmem:[%s6285_s5 + $0x368] sm:$0xff] }
 0x7b8   :  { %v2015_v1 = vadd.f32 %v1999_v28, %v1966_v4  ;;  %v2227_v25 = vmul.f32 %v3450_v0, %v1907_v23  ;;  %v1951_v39 = vmul.f32 %v1935_v47, %v1907_v23  ;;  %v3358_v28 = vld [vmem:[%s6285_s5 + $0x200] sm:$0xff]  ;;  %v2000_v17 = vmul.f32 %v3388_v42, %v1850_v2  ;;  %v3375_v23 = vld [vmem:[%s6285_s5 + $0x88] sm:$0xff]  ;;  %v3389_v47 = vld [vmem:[%s6285_s5 + $0xf8] sm:$0xff] }
 0x7b9   :  { %v1832_v3 = vpop.f32.mrf.mxu3  ;;  %v2194_v49 = vadd.f32 %v2178_v13, %v2145_v56  ;;  %v5504_v6 = vadd.f32 %v2324_v22, %v2291_v41  ;;  %v2276_v4 = vmul.f32 %v3466_v27, %v1850_v2  ;;  %v1188_v16 = vadd.f32 %v4855_v48, %v503_v34  ;;  %v3373_v48 = vld [vmem:[%s6285_s5 + $0x278] sm:$0xff]  ;;  %v3467_v42 = vld [vmem:[%s6285_s5 + $0x3e8] sm:$0xff] }
 0x7ba   :  { %v5495_v24 = vadd.f32 %v1832_v3, %v1187_v35  ;;  %v2097_v54 = vadd.f32 %v2081_v53, %v2015_v1  ;;  %v1870_v53 = vmul.f32 %v3358_v28, %v5001_v26  ;;  %v1936_v13 = vld [vmem:[%s6285_s5 + $0x78] sm:$0xff]  ;;  %v1987_v3 = vmul.f32 %v3375_v23, %v5001_v26  ;;  %v3407_v27 = vld [vmem:[%s6285_s5 + $0x188] sm:$0xff] }
 0x7bb   :  { %v2243_v50 = vadd.f32 %v2227_v25, %v2194_v49 }
 0x7bc   :  { %v1884_v15 = vmul.f32 %v3372_v62, %v5495_v24  ;;  %v1900_v51 = vrot.slane %v5495_v24, 7  ;;  %v2032_v33 = vrot.slane %v5495_v24, 1  ;;  %v2146_v30 = vadd.f32 %v2130_v31, %v2097_v54  ;;  %v3391_v62 = vld [vmem:[%s6285_s5 + $0x108] sm:$0xff] }
 0x7bd   :  { %v2292_v41 = vadd.f32 %v2276_v4, %v2243_v50  ;;  %v2069_v28 = vmul.f32 %v3391_v62, %v5033_v37  ;;  %v2277_v23 = vmul.f32 %v3467_v42, %v5495_v24 }
 0x7be   :  { %v1906_v8 = vsel %vm1904_vm6, %v1899_v21, %v1900_v51  ;;  %v1967_v18 = vadd.f32 %v1951_v39, %v1884_v15  ;;  %v2036_v56 = vsel %vm2034_vm7, %v2031_v14, %v2032_v33  ;;  %v3359_v21 = vld [vmem:[%s6285_s5 + $0x208] sm:$0xff]  ;;  %v3420_v14 = vld [vmem:[%s6285_s5 + $0x1f0] sm:$0xff] }
 0x7bf   :  { %v2082_v45 = vmul.f32 %v3404_v5, %v2036_v56  ;;  %v2179_v1 = vmul.f32 %v3435_v7, %v2036_v56  ;;  %v2325_v0 = vmul.f32 %v3482_v61, %v2036_v56  ;;  %v1871_v11 = vmul.f32 %v3359_v21, %v5010_v59  ;;  %v1921_v5 = vld [vmem:[%s6285_s5] sm:$0xff]  ;;  %v3405_v21 = vld [vmem:[%s6285_s5 + $0x178] sm:$0xff] }
 0x7c0   :  { %v2016_v35 = vadd.f32 %v2000_v17, %v1967_v18  ;;  %v2131_v34 = vmul.f32 %v3420_v14, %v1906_v8  ;;  %v2228_v31 = vmul.f32 %v3451_v57, %v1906_v8  ;;  %v1952_v7 = vmul.f32 %v1936_v13, %v1906_v8  ;;  %v3374_v18 = vld [vmem:[%s6285_s5 + $0x80] sm:$0xff]  ;;  %v3421_v57 = vld [vmem:[%s6285_s5 + $0x1f8] sm:$0xff] }
 0x7c1   :  { %v1834_v2 = vpop.f32.mrf.mxu3  ;;  %v2195_v49 = vadd.f32 %v2179_v1, %v2146_v30  ;;  %v5561_v25 = vadd.f32 %v2325_v0, %v2292_v41  ;;  %v1922_v30 = vld [vmem:[%s6285_s5 + $0x8] sm:$0xff]  ;;  %v2001_v17 = vmul.f32 %v3389_v47, %v5495_v24  ;;  %v3437_v24 = vld [vmem:[%s6285_s5 + $0x2f8] sm:$0xff] }
 0x7c2   :  { %v2098_v22 = vadd.f32 %v2082_v45, %v2016_v35  ;;  %v1852_v54 = vadd.f32 %v1834_v2, %v1188_v16  ;;  %v3390_v16 = vld [vmem:[%s6285_s5 + $0x100] sm:$0xff]  ;;  %v3436_v35 = vld [vmem:[%s6285_s5 + $0x2f0] sm:$0xff]  ;;  %v3483_v2 = vld [vmem:[%s6285_s5 + $0x468] sm:$0xff] }
 0x7c3   :  { %v2244_v56 = vadd.f32 %v2228_v31, %v2195_v49  ;;  %v3468_v49 = vld [vmem:[%s6285_s5 + $0x3f0] sm:$0xff] }
 0x7c4   :  { %v1885_v15 = vmul.f32 %v3373_v48, %v1852_v54  ;;  %v1901_v39 = vrot.slane %v1852_v54, 7  ;;  %v2033_v50 = vrot.slane %v1852_v54, 1  ;;  %v2147_v61 = vadd.f32 %v2131_v34, %v2098_v22  ;;  %v3452_v48 = vld [vmem:[%s6285_s5 + $0x370] sm:$0xff]  ;;  %v3406_v22 = vld [vmem:[%s6285_s5 + $0x180] sm:$0xff] }
 0x7c5   :  { %v1986_v13 = vmul.f32 %v3374_v18, %v1852_v54  ;;  %v2278_v18 = vmul.f32 %v3468_v49, %v1852_v54 }
 0x7c6   :  { %v1905_v4 = vsel %vm1904_vm6, %v1900_v51, %v1901_v39  ;;  %v1920_v8 = vsel %vm1904_vm6, %v1901_v39, %v1886_v46  ;;  %v1968_v45 = vadd.f32 %v1952_v7, %v1885_v15  ;;  %v2118_v51 = vmul.f32 %v3407_v27, %v5027_v36  ;;  %v3423_v39 = vld [vmem:[%s6285_s5 + $0x288] sm:$0xff]  ;;  %v3484_v7 = vld [vmem:[%s6285_s5 + $0x470] sm:$0xff] }
 0x7c7   :  { %v1937_v14 = vmul.f32 %v1921_v5, %v1905_v4  ;;  %v1938_v1 = vmul.f32 %v1922_v30, %v1920_v8  ;;  %v2050_v46 = vsel %vm2034_vm7, %v2033_v50, %v2018_v29  ;;  %v2035_v0 = vsel %vm2034_vm7, %v2032_v33, %v2033_v50  ;;  %v3422_v33 = vld [vmem:[%s6285_s5 + $0x280] sm:$0xff]  ;;  %v3453_v50 = vld [vmem:[%s6285_s5 + $0x378] sm:$0xff] }
 0x7c8   :  { %v2017_v41 = vadd.f32 %v2001_v17, %v1968_v45  ;;  %v2293_v29 = vadd.f32 %v2277_v23, %v2244_v56  ;;  %v2083_v34 = vmul.f32 %v3405_v21, %v2035_v0  ;;  %v2180_v42 = vmul.f32 %v3436_v35, %v2035_v0 }
 0x7c9   :  { %v1953_v62 = vadd.f32 %v1937_v14, %v1870_v53  ;;  %v1954_v47 = vadd.f32 %v1938_v1, %v1871_v11  ;;  %v2068_v31 = vmul.f32 %v3390_v16, %v2050_v46  ;;  %v2132_v40 = vmul.f32 %v3421_v57, %v1905_v4  ;;  %v3438_v16 = vld [vmem:[%s6285_s5 + $0x300] sm:$0xff] }
 0x7ca   :  { %v2326_v53 = vmul.f32 %v3483_v2, %v2035_v0  ;;  %v2229_v11 = vmul.f32 %v3452_v48, %v1905_v4  ;;  %v2099_v5 = vadd.f32 %v2083_v34, %v2017_v41  ;;  %v2196_v30 = vadd.f32 %v2180_v42, %v2147_v61  ;;  %v3439_v61 = vld [vmem:[%s6285_s5 + $0x308] sm:$0xff]  ;;  %v3485_v0 = vld [vmem:[%s6285_s5 + $0x478] sm:$0xff] }
 0x7cb   :  { %v2002_v27 = vadd.f32 %v1986_v13, %v1953_v62  ;;  %v2003_v15 = vadd.f32 %v1987_v3, %v1954_v47  ;;  %v2117_v17 = vmul.f32 %v3406_v22, %v1920_v8  ;;  %v2181_v23 = vmul.f32 %v3437_v24, %v2050_v46  ;;  %v3469_v3 = vld [vmem:[%s6285_s5 + $0x3f8] sm:$0xff]  ;;  %v3455_v62 = vld [vmem:[%s6285_s5 + $0x388] sm:$0xff] }
 0x7cc   :  { %v5632_v56 = vadd.f32 %v2326_v53, %v2293_v29  ;;  %v2245_v21 = vadd.f32 %v2229_v11, %v2196_v30  ;;  %v2148_v35 = vadd.f32 %v2132_v40, %v2099_v5  ;;  %v2167_v54 = vmul.f32 %v3423_v39, %v5065_v55 }
 0x7cd   :  { %v2084_v4 = vadd.f32 %v2068_v31, %v2002_v27  ;;  %v2085_v45 = vadd.f32 %v2069_v28, %v2003_v15  ;;  %v2166_v14 = vmul.f32 %v3422_v33, %v5033_v37  ;;  %v2327_v1 = vmul.f32 %v3484_v7, %v2050_v46  ;;  %v3454_v28 = vld [vmem:[%s6285_s5 + $0x380] sm:$0xff] }
 0x7ce   :  { %v2230_v57 = vmul.f32 %v3453_v50, %v1920_v8  ;;  %v2294_v13 = vadd.f32 %v2278_v18, %v2245_v21  ;;  %v2197_v41 = vadd.f32 %v2181_v23, %v2148_v35  ;;  %v2279_v29 = vmul.f32 %v3469_v3, %v5001_v26  ;;  %v3471_v26 = vld [vmem:[%s6285_s5 + $0x408] sm:$0xff] }
 0x7cf   :  { %v2134_v2 = vadd.f32 %v2118_v51, %v2085_v45  ;;  %v2133_v48 = vadd.f32 %v2117_v17, %v2084_v4  ;;  %v2216_v8 = vmul.f32 %v3439_v61, %v5061_v32  ;;  %v2215_v46 = vmul.f32 %v3438_v16, %v5027_v36  ;;  %v3470_v51 = vld [vmem:[%s6285_s5 + $0x400] sm:$0xff] }
 0x7d0   :  { %v5660_v49 = vadd.f32 %v2327_v1, %v2294_v13  ;;  %v2246_v34 = vadd.f32 %v2230_v57, %v2197_v41  ;;  %v2264_v42 = vmul.f32 %v3454_v28, %v5010_v59  ;;  %v2328_v24 = vmul.f32 %v3485_v0, %v5033_v37  ;;  %v3549_v59 = vld [vmem:[%s6286_s6 + $0x8] sm:$0xff]  ;;  %v5678_v37 = vld [vmem:[%s6281_s9] sm:$0x7f] }
 0x7d1   :  { %v2183_v47 = vadd.f32 %v2167_v54, %v2134_v2  ;;  %v2182_v22 = vadd.f32 %v2166_v14, %v2133_v48  ;;  %v2265_v32 = vmul.f32 %v3455_v62, %v5042_v19  ;;  %v2313_v33 = vmul.f32 %v3470_v51, %v5065_v55  ;;  %2838 = vmatpush.bf16.msrb.mxu0 %v3549_v59 }
 0x7d2   :  { %v2295_v40 = vadd.f32 %v2279_v29, %v2246_v34  ;;  %v2314_v11 = vmul.f32 %v3471_v26, %v5099_v9  ;;  %v5681_v19 = vperm.slane %v5678_v37, 3 }
 0x7d3   :  { %v2232_v36 = vadd.f32 %v2216_v8, %v2183_v47  ;;  %v2231_v31 = vadd.f32 %v2215_v46, %v2182_v22 }
 0x7d4   :  { %v5670_v15 = vadd.f32 %v2328_v24, %v2295_v40  ;;  %v5698_v18 = vadd.f32 %v5681_v19, %v5159_v44  ;;  %v5704_v3 = vadd.f32 %v5681_v19, %v5194_v63  ;;  %v5717_v63 = vadd.f32 %v5681_v19, %v5235_v12 }
 0x7d5   :  { %v2281_v53 = vadd.f32 %v2265_v32, %v2232_v36  ;;  %v2280_v27 = vadd.f32 %v2264_v42, %v2231_v31  ;;  %v5725_v14 = vadd.f32 %v5681_v19, %v5256_v43  ;;  %v5737_v43 = vadd.f32 %v5681_v19, %v5308_v20  ;;  %v3548_v42 = vld [vmem:[%s6286_s6] sm:$0xff] }
 0x7d6   :  { %v2368_v4 = vsel %vm53_vm0, %v5698_v18, 0.0  ;;  %v2371_v61 = vsel %vm53_vm0, %v5704_v3, 0.0  ;;  %v2429_v44 = vmul.f32 %v5704_v3, %v5704_v3  ;;  %v2428_v16 = vmul.f32 %v5698_v18, %v5698_v18  ;;  %2839 = vmatpush.bf16.msrb.mxu0 %v3548_v42 }
 0x7d7   :  { %v2330_v39 = vadd.f32 %v2314_v11, %v2281_v53  ;;  %v2329_v55 = vadd.f32 %v2313_v33, %v2280_v27  ;;  %v2374_v54 = vsel %vm53_vm0, %v5717_v63, 0.0  ;;  %v2430_v1 = vmul.f32 %v5717_v63, %v5717_v63 }
 0x7d8   :  { %v2451_v21 = vsel %vm53_vm0, %v2429_v44, 0.0  ;;  %v2448_v35 = vsel %vm53_vm0, %v2428_v16, 0.0  ;;  %v2431_v12 = vmul.f32 %v5725_v14, %v5725_v14  ;;  %v2377_v28 = vsel %vm53_vm0, %v5725_v14, 0.0 }
 0x7d9   :  { %v5684_v9 = vadd.f32 %v5681_v19, %v2330_v39  ;;  %v5687_v5 = vadd.f32 %v5681_v19, %v2329_v55  ;;  %v2454_v57 = vsel %vm53_vm0, %v2430_v1, 0.0  ;;  %v5741_v48 = vadd.f32 %v5681_v19, %v5346_v60 }
 0x7da   :  { %v2457_v2 = vsel %vm53_vm0, %v2431_v12, 0.0  ;;  %v2432_v13 = vmul.f32 %v5737_v43, %v5737_v43  ;;  %v2380_v0 = vsel %vm53_vm0, %v5737_v43, 0.0  ;;  %v5752_v20 = vadd.f32 %v5681_v19, %v5384_v52 }
 0x7db   :  { %v2365_v30 = vsel %vm53_vm0, %v5684_v9, 0.0  ;;  %v2362_v7 = vsel %vm53_vm0, %v5687_v5, 0.0  ;;  %v2426_v50 = vmul.f32 %v5687_v5, %v5687_v5  ;;  %v2427_v23 = vmul.f32 %v5684_v9, %v5684_v9 }
 0x7dc   :  { %2366 = vadd.xlane.f32.xlu1 %v2365_v30  ;;  %2363 = vadd.xlane.f32.xlu0 %v2362_v7  ;;  %v2383_v41 = vsel %vm53_vm0, %v5741_v48, 0.0  ;;  %v2460_v29 = vsel %vm53_vm0, %v2432_v13, 0.0  ;;  %v2433_v60 = vmul.f32 %v5741_v48, %v5741_v48  ;;  %v5758_v62 = vadd.f32 %v5681_v19, %v5422_v58 }
 0x7dd   :  { %v2442_v17 = vsel %vm53_vm0, %v2426_v50, 0.0  ;;  %v2445_v45 = vsel %vm53_vm0, %v2427_v23, 0.0  ;;  %v2386_v8 = vsel %vm53_vm0, %v5752_v20, 0.0  ;;  %v2434_v22 = vmul.f32 %v5752_v20, %v5752_v20 }
 0x7de   :  { %2443 = vadd.xlane.f32.xlu2 %v2442_v17  ;;  %v2463_v46 = vsel %vm53_vm0, %v2433_v60, 0.0  ;;  %v2389_v47 = vsel %vm53_vm0, %v5758_v62, 0.0  ;;  %v2435_v52 = vmul.f32 %v5758_v62, %v5758_v62  ;;  %v5771_v58 = vadd.f32 %v5681_v19, %v5467_v38 }
 0x7df   :  { %v2466_v34 = vsel %vm53_vm0, %v2434_v22, 0.0  ;;  %v5782_v24 = vadd.f32 %v5681_v19, %v5504_v6  ;;  %v5794_v6 = vadd.f32 %v5681_v19, %v5561_v25  ;;  %v5798_v33 = vadd.f32 %v5681_v19, %v5632_v56 }
 0x7e0   :  { %v2469_v51 = vsel %vm53_vm0, %v2435_v52, 0.0  ;;  %v2392_v26 = vsel %vm53_vm0, %v5771_v58, 0.0  ;;  %v2436_v38 = vmul.f32 %v5771_v58, %v5771_v58  ;;  %v5809_v25 = vadd.f32 %v5681_v19, %v5660_v49 }
 0x7e1   :  { %v2437_v32 = vmul.f32 %v5782_v24, %v5782_v24  ;;  %v2395_v31 = vsel %vm53_vm0, %v5782_v24, 0.0  ;;  %v2438_v53 = vmul.f32 %v5794_v6, %v5794_v6  ;;  %v2401_v11 = vsel %vm53_vm0, %v5798_v33, 0.0 }
 0x7e2   :  { %v2472_v36 = vsel %vm53_vm0, %v2436_v38, 0.0  ;;  %v2398_v27 = vsel %vm53_vm0, %v5794_v6, 0.0  ;;  %v2439_v56 = vmul.f32 %v5798_v33, %v5798_v33  ;;  %v5815_v39 = vadd.f32 %v5681_v19, %v5670_v15 }
 0x7e3   :  { %v2475_v40 = vsel %vm53_vm0, %v2437_v32, 0.0  ;;  %v2478_v59 = vsel %vm53_vm0, %v2438_v53, 0.0  ;;  %v2404_v55 = vsel %vm53_vm0, %v5809_v25, 0.0  ;;  %v2440_v49 = vmul.f32 %v5809_v25, %v5809_v25 }
 0x7e4   :  { %2369 = vadd.xlane.f32.xlu1 %v2368_v4  ;;  %2446 = vadd.xlane.f32.xlu0 %v2445_v45  ;;  %v2481_v30 = vsel %vm53_vm0, %v2439_v56, 0.0  ;;  %v2407_v7 = vsel %vm53_vm0, %v5815_v39, 0.0  ;;  %v2441_v50 = vmul.f32 %v5815_v39, %v5815_v39 }
 0x7e5   :  { %v2484_v15 = vsel %vm53_vm0, %v2440_v49, 0.0 }
 0x7e6   :  { %2372 = vadd.xlane.f32.xlu2 %v2371_v61  ;;  %v2487_v19 = vsel %vm53_vm0, %v2441_v50, 0.0 }
 0x7ec   :  { %2452 = vadd.xlane.f32.xlu1 %v2451_v21  ;;  %2449 = vadd.xlane.f32.xlu0 %v2448_v35 }
 0x7ee   :  { %2375 = vadd.xlane.f32.xlu2 %v2374_v54 }
 0x7f4   :  { %2455 = vadd.xlane.f32.xlu1 %v2454_v57  ;;  %2378 = vadd.xlane.f32.xlu0 %v2377_v28 }
 0x7f6   :  { %2458 = vadd.xlane.f32.xlu2 %v2457_v2 }
 0x7fc   :  { %2384 = vadd.xlane.f32.xlu1 %v2383_v41  ;;  %2381 = vadd.xlane.f32.xlu0 %v2380_v0 }
 0x7fe   :  { %2461 = vadd.xlane.f32.xlu2 %v2460_v29 }
 0x804   :  { %2387 = vadd.xlane.f32.xlu1 %v2386_v8  ;;  %2464 = vadd.xlane.f32.xlu0 %v2463_v46 }
 0x806   :  { %2390 = vadd.xlane.f32.xlu2 %v2389_v47 }
 0x80c   :  { %2470 = vadd.xlane.f32.xlu1 %v2469_v51  ;;  %2467 = vadd.xlane.f32.xlu0 %v2466_v34 }
 0x80e   :  { %2393 = vadd.xlane.f32.xlu2 %v2392_v26 }
 0x814   :  { %2473 = vadd.xlane.f32.xlu1 %v2472_v36  ;;  %2396 = vadd.xlane.f32.xlu0 %v2395_v31 }
 0x816   :  { %2476 = vadd.xlane.f32.xlu2 %v2475_v40 }
 0x81c   :  { %2402 = vadd.xlane.f32.xlu1 %v2401_v11  ;;  %2399 = vadd.xlane.f32.xlu0 %v2398_v27 }
 0x81e   :  { %2479 = vadd.xlane.f32.xlu2 %v2478_v59 }
 0x824   :  { %2405 = vadd.xlane.f32.xlu1 %v2404_v55  ;;  %2482 = vadd.xlane.f32.xlu0 %v2481_v30 }
 0x826   :  { %2408 = vadd.xlane.f32.xlu2 %v2407_v7 }
 0x82c   :  { %2485 = vadd.xlane.f32.xlu0 %v2484_v15  ;;  %2488 = vadd.xlane.f32.xlu1 %v2487_v19 }
 0x84f   :  { %v2367_v17 = vpop.xlane.xlu1 %2366  ;;  %v2364_v23 = vpop.xlane.xlu0 %2363 }
 0x850   :  { %v2410_v4 = vmul.f32 %v2364_v23, %v4106_v10  ;;  %v5831_v16 = vmul.f32 %v2367_v17, %v4106_v10  ;;  %v5865_v23 = vperm.slane %v5678_v37, 4 }
 0x851   :  { %v2444_v45 = vpop.xlane.xlu2 %2443 }
 0x852   :  { %v2522_v61 = vmul.f32 %v2410_v4, %v2410_v4  ;;  %v2490_v44 = vmul.f32 %v2444_v45, %v4106_v10  ;;  %v2523_v12 = vmul.f32 %v5831_v16, %v5831_v16  ;;  %v2506_v15 = vsub.f32 %v5687_v5, %v2410_v4 }
 0x854   :  { %v2538_v21 = vsub.f32 %v2490_v44, %v2522_v61 }
 0x856   :  { %v2554_v35 = vadd.f32 1e-05, %v2538_v21 }
 0x857   :  { %v2370_v54 = vpop.xlane.xlu1 %2369  ;;  %v2447_v1 = vpop.xlane.xlu0 %2446 }
 0x858   :  { %v2491_v57 = vmul.f32 %v2447_v1, %v4106_v10  ;;  %3807 = vrsqrt.f32 %v2554_v35  ;;  %v5837_v13 = vmul.f32 %v2370_v54, %v4106_v10  ;;  %vm2576_vm9 = vweird.f32 %v2554_v35 }
 0x859   :  { %v2373_v28 = vpop.xlane.xlu2 %2372 }
 0x85a   :  { %v2539_v2 = vsub.f32 %v2491_v57, %v2523_v12  ;;  %v5840_v0 = vmul.f32 %v2373_v28, %v4106_v10  ;;  %v2524_v60 = vmul.f32 %v5837_v13, %v5837_v13 }
 0x85c   :  { %v2555_v41 = vadd.f32 1e-05, %v2539_v2  ;;  %v2525_v52 = vmul.f32 %v5840_v0, %v5840_v0  ;;  %v2507_v2 = vsub.f32 %v5684_v9, %v5831_v16 }
 0x85e   :  { %3809 = vrsqrt.f32 %v2555_v41  ;;  %v3808_v29 = vpop.eup %3807  ;;  %vm2586_vm12 = vweird.f32 %v2555_v41 }
 0x85f   :  { %v2453_v8 = vpop.xlane.xlu1 %2452  ;;  %v2450_v46 = vpop.xlane.xlu0 %2449  ;;  %v2571_v47 = vmul.f32 %v3808_v29, %v2554_v35  ;;  %vm2577_vm8 = vweird.f32 %v3808_v29 }
 0x860   :  { %v2493_v22 = vmul.f32 %v2453_v8, %v4106_v10  ;;  %v2492_v51 = vmul.f32 %v2450_v46, %v4106_v10  ;;  %vm2578_vm10 = vmor %vm2576_vm9, %vm2577_vm8 }
 0x861   :  { %v2376_v34 = vpop.xlane.xlu2 %2375  ;;  %v2572_v42 = vmul.f32 %v3808_v29, %v2571_v47 }
 0x862   :  { %v2541_v26 = vsub.f32 %v2493_v22, %v2525_v52  ;;  %v2540_v38 = vsub.f32 %v2492_v51, %v2524_v60  ;;  %v5853_v53 = vmul.f32 %v2376_v34, %v4106_v10 }
 0x863   :  { %v2573_v36 = vmul.f32 0.5, %v2572_v42 }
 0x864   :  { %v3810_v32 = vpop.eup %3809  ;;  %v5848_v31 = vadd.f32 1e-05, %v2541_v26  ;;  %v5850_v40 = vadd.f32 1e-05, %v2540_v38  ;;  %v2526_v7 = vmul.f32 %v5853_v53, %v5853_v53 }
 0x865   :  { %v2581_v11 = vmul.f32 %v3810_v32, %v2555_v41  ;;  %v2574_v27 = vsub.f32 1.5, %v2573_v36  ;;  %vm2587_vm11 = vweird.f32 %v3810_v32 }
 0x866   :  { %3811 = vrsqrt.f32 %v5848_v31  ;;  %vm2588_vm13 = vmor %vm2586_vm12, %vm2587_vm11  ;;  %vm2606_vm1 = vweird.f32 %v5848_v31  ;;  %vm2596_vm3 = vweird.f32 %v5850_v40 }
 0x867   :  { %v2582_v59 = vmul.f32 %v3810_v32, %v2581_v11  ;;  %3813 = vrsqrt.f32 %v5850_v40  ;;  %v2456_v56 = vpop.xlane.xlu1 %2455  ;;  %v2379_v55 = vpop.xlane.xlu0 %2378  ;;  %v2575_v30 = vmul.f32 %v3808_v29, %v2574_v27 }
 0x868   :  { %v2494_v49 = vmul.f32 %v2456_v56, %v4106_v10  ;;  %v5861_v50 = vmul.f32 %v2379_v55, %v4106_v10 }
 0x869   :  { %v2583_v19 = vmul.f32 0.5, %v2582_v59  ;;  %v2459_v17 = vpop.xlane.xlu2 %2458  ;;  %v2579_v45 = vsel %vm2578_vm10, %v3808_v29, %v2575_v30  ;;  %v5876_v29 = vperm.slane %v5678_v37, 5 }
 0x86a   :  { %v2542_v61 = vsub.f32 %v2494_v49, %v2526_v7  ;;  %v2730_v44 = vmul.f32 %v2579_v45, %v2506_v15  ;;  %v2527_v35 = vmul.f32 %v5861_v50, %v5861_v50  ;;  %v2495_v54 = vmul.f32 %v2459_v17, %v4106_v10 }
 0x86b   :  { %v2584_v21 = vsub.f32 1.5, %v2583_v19 }
 0x86c   :  { %v3812_v1 = vpop.eup %3811  ;;  %v5870_v12 = vadd.f32 1e-05, %v2542_v61  ;;  %v2747_v8 = vmul.f32 %v5865_v23, %v2730_v44  ;;  %v2543_v52 = vsub.f32 %v2495_v54, %v2527_v35  ;;  %v2508_v35 = vsub.f32 %v5698_v18, %v5837_v13 }
 0x86d   :  { %v3814_v4 = vpop.eup %3813  ;;  %v2585_v57 = vmul.f32 %v3810_v32, %v2584_v21  ;;  %v2601_v28 = vmul.f32 %v3812_v1, %v5848_v31  ;;  %vm2607_vm14 = vweird.f32 %v3812_v1  ;;  %v2509_v54 = vsub.f32 %v5704_v3, %v5840_v0 }
 0x86e   :  { %v2591_v60 = vmul.f32 %v3814_v4, %v5850_v40  ;;  %3815 = vrsqrt.f32 %v5870_v12  ;;  %v5884_v37 = vadd.f32 1e-05, %v2543_v52  ;;  %v2764_v11 = vadd.f32 %v5876_v29, %v2747_v8  ;;  %vm5902_vm2 = vmor %vm2606_vm1, %vm2607_vm14 }
 0x86f   :  { %v2589_v46 = vsel %vm2588_vm13, %v3810_v32, %v2585_v57  ;;  %v2602_v47 = vmul.f32 %v3812_v1, %v2601_v28  ;;  %v2385_v22 = vpop.xlane.xlu1 %2384  ;;  %v2382_v41 = vpop.xlane.xlu0 %2381  ;;  %vm2597_vm15 = vweird.f32 %v3814_v4  ;;  %vm2616_vm9 = vweird.f32 %v5870_v12 }
 0x870   :  { %v2731_v51 = vmul.f32 %v2589_v46, %v2507_v2  ;;  %v2592_v34 = vmul.f32 %v3814_v4, %v2591_v60  ;;  %v5882_v42 = vmul.f32 %v2382_v41, %v4106_v10  ;;  %3817 = vrsqrt.f32 %v5884_v37  ;;  %vm2598_vm4 = vmor %vm2596_vm3, %vm2597_vm15 }
 0x871   :  { %v2603_v16 = vmul.f32 0.5, %v2602_v47  ;;  %v2462_v26 = vpop.xlane.xlu2 %2461  ;;  %v5899_v15 = vmul.f32 %v2385_v22, %v4106_v10  ;;  %vm2626_vm6 = vweird.f32 %v5884_v37 }
 0x872   :  { %v2748_v38 = vmul.f32 %v5865_v23, %v2731_v51  ;;  %v2593_v36 = vmul.f32 0.5, %v2592_v34  ;;  %v2528_v55 = vmul.f32 %v5882_v42, %v5882_v42  ;;  %v2496_v30 = vmul.f32 %v2462_v26, %v4106_v10 }
 0x873   :  { %v2604_v32 = vsub.f32 1.5, %v2603_v16 }
 0x874   :  { %v5889_v27 = vpop.eup %3815  ;;  %v2765_v59 = vadd.f32 %v5876_v29, %v2748_v38  ;;  %v2594_v56 = vsub.f32 1.5, %v2593_v36  ;;  %v2544_v45 = vsub.f32 %v2496_v30, %v2528_v55 }
 0x875   :  { %v2605_v7 = vmul.f32 %v3812_v1, %v2604_v32  ;;  %v2611_v49 = vmul.f32 %v5889_v27, %v5870_v12  ;;  %vm2617_vm7 = vweird.f32 %v5889_v27  ;;  %v2510_v12 = vsub.f32 %v5717_v63, %v5853_v53 }
 0x876   :  { %v2595_v17 = vmul.f32 %v3814_v4, %v2594_v56  ;;  %v2780_v61 = vpack.c.bf16 %v2765_v59, %v2764_v11  ;;  %v5914_v28 = vadd.f32 1e-05, %v2544_v45  ;;  %v3818_v40 = vpop.eup %3817  ;;  %vm2618_vm10 = vmor %vm2616_vm9, %vm2617_vm7 }
 0x877   :  { %v2609_v44 = vsel %vm5902_vm2, %v3812_v1, %v2605_v7  ;;  %v2388_v31 = vpop.xlane.xlu1 %2387  ;;  %v2465_v21 = vpop.xlane.xlu0 %2464  ;;  %v2612_v2 = vmul.f32 %v5889_v27, %v2611_v49  ;;  %v2529_v1 = vmul.f32 %v5899_v15, %v5899_v15  ;;  %v2621_v13 = vmul.f32 %v3818_v40, %v5884_v37 }
 0x878   :  { %v2599_v57 = vsel %vm2598_vm4, %v3814_v4, %v2595_v17  ;;  %3494 = vmatmul.msk.bf16.vlgmr.msrb.gmra.mxu0 %vm53_vm0, %v2780_v61  ;;  %v2497_v60 = vmul.f32 %v2465_v21, %v4106_v10  ;;  %v2733_v46 = vmul.f32 %v2609_v44, %v2509_v54  ;;  %v5923_v0 = vmul.f32 %v2388_v31, %v4106_v10 }
 0x879   :  { %v2391_v8 = vpop.xlane.xlu2 %2390  ;;  %v2732_v47 = vmul.f32 %v2599_v57, %v2508_v35  ;;  %v2622_v52 = vmul.f32 %v3818_v40, %v2621_v13  ;;  %3819 = vrsqrt.f32 %v5914_v28  ;;  %v2613_v41 = vmul.f32 0.5, %v2612_v2 }
 0x87a   :  { %v2545_v4 = vsub.f32 %v2497_v60, %v2529_v1  ;;  %v5927_v22 = vmul.f32 %v2391_v8, %v4106_v10  ;;  %v2750_v26 = vmul.f32 %v5865_v23, %v2733_v46  ;;  %v2530_v38 = vmul.f32 %v5923_v0, %v5923_v0 }
 0x87b   :  { %v2623_v34 = vmul.f32 0.5, %v2622_v52  ;;  %v2749_v16 = vmul.f32 %v5865_v23, %v2732_v47  ;;  %v2614_v30 = vsub.f32 1.5, %v2613_v41  ;;  %vm2627_vm5 = vweird.f32 %v3818_v40 }
 0x87c   :  { %v5929_v51 = vadd.f32 1e-05, %v2545_v4  ;;  %v2531_v59 = vmul.f32 %v5927_v22, %v5927_v22  ;;  %v2767_v61 = vadd.f32 %v5876_v29, %v2750_v26  ;;  %vm5953_vm8 = vmor %vm2626_vm6, %vm2627_vm5  ;;  %v2511_v46 = vsub.f32 %v5725_v14, %v5861_v50 }
 0x87d   :  { %v2624_v32 = vsub.f32 1.5, %v2623_v34  ;;  %v2766_v45 = vadd.f32 %v5876_v29, %v2749_v16  ;;  %v2615_v21 = vmul.f32 %v5889_v27, %v2614_v30  ;;  %v3557_v34 = vld [vmem:[%s6288_s8 + $0x38] sm:$0xff]  ;;  %vm2636_vm15 = vweird.f32 %v5914_v28 }
 0x87e   :  { %3821 = vrsqrt.f32 %v5929_v51  ;;  %3098 = vmatpush.bf16.msrb.mxu1 %v3557_v34  ;;  %vm2646_vm13 = vweird.f32 %v5929_v51 }
 0x87f   :  { %v2471_v36 = vpop.xlane.xlu1 %2470  ;;  %v2468_v11 = vpop.xlane.xlu0 %2467  ;;  %v2625_v44 = vmul.f32 %v3818_v40, %v2624_v32  ;;  %v2781_v37 = vpack.c.bf16 %v2767_v61, %v2766_v45  ;;  %v2619_v13 = vsel %vm2618_vm10, %v5889_v27, %v2615_v21 }
 0x880   :  { %v2499_v56 = vmul.f32 %v2471_v36, %v4106_v10  ;;  %v2498_v55 = vmul.f32 %v2468_v11, %v4106_v10  ;;  %v5940_v49 = vpop.eup %3819  ;;  %v2734_v27 = vmul.f32 %v2619_v13, %v2510_v12  ;;  %v2513_v12 = vsub.f32 %v5741_v48, %v5899_v15 }
 0x881   :  { %v2394_v7 = vpop.xlane.xlu2 %2393  ;;  %v2631_v35 = vmul.f32 %v5940_v49, %v5914_v28  ;;  %v2629_v60 = vsel %vm5953_vm8, %v3818_v40, %v2625_v44  ;;  %vm2637_vm12 = vweird.f32 %v5940_v49  ;;  %v2512_v28 = vsub.f32 %v5737_v43, %v5882_v42  ;;  %v3555_v42 = vld [vmem:[%s6288_s8 + $0x28] sm:$0xff] }
 0x882   :  { %v2547_v19 = vsub.f32 %v2499_v56, %v2531_v59  ;;  %v2546_v17 = vsub.f32 %v2498_v55, %v2530_v38  ;;  %v2735_v52 = vmul.f32 %v2629_v60, %v2511_v46  ;;  %v5981_v38 = vmul.f32 %v2394_v7, %v4106_v10  ;;  %vm2638_vm1 = vmor %vm2636_vm15, %vm2637_vm12 }
 0x883   :  { %v2632_v4 = vmul.f32 %v5940_v49, %v2631_v35  ;;  %v2751_v30 = vmul.f32 %v5865_v23, %v2734_v27 }
 0x884   :  { %v5945_v31 = vpop.eup %3821  ;;  %v5951_v54 = vadd.f32 1e-05, %v2547_v19  ;;  %v5959_v1 = vadd.f32 1e-05, %v2546_v17  ;;  %v2752_v11 = vmul.f32 %v5865_v23, %v2735_v52  ;;  %v2532_v7 = vmul.f32 %v5981_v38, %v5981_v38 }
 0x885   :  { %v2641_v2 = vmul.f32 %v5945_v31, %v5929_v51  ;;  %v2633_v16 = vmul.f32 0.5, %v2632_v4  ;;  %vm2647_vm11 = vweird.f32 %v5945_v31 }
 0x886   :  { %3823 = vrsqrt.f32 %v5951_v54  ;;  %v2769_v61 = vadd.f32 %v5876_v29, %v2752_v11  ;;  %vm2648_vm14 = vmor %vm2646_vm13, %vm2647_vm11  ;;  %vm2666_vm4 = vweird.f32 %v5951_v54  ;;  %vm2656_vm6 = vweird.f32 %v5959_v1 }
 0x887   :  { %v2397_v8 = vpop.xlane.xlu0 %2396  ;;  %v2642_v47 = vmul.f32 %v5945_v31, %v2641_v2  ;;  %3825 = vrsqrt.f32 %v5959_v1  ;;  %v2474_v26 = vpop.xlane.xlu1 %2473  ;;  %v2634_v19 = vsub.f32 1.5, %v2633_v16  ;;  %v2768_v2 = vadd.f32 %v5876_v29, %v2751_v30 }
 0x888   :  { %3495 = vmatmul.msk.bf16.gmra.mxu0 %vm53_vm0, %v2781_v37  ;;  %v5975_v40 = vmul.f32 %v2397_v8, %v4106_v10  ;;  %v2500_v55 = vmul.f32 %v2474_v26, %v4106_v10 }
 0x889   :  { %v2643_v50 = vmul.f32 0.5, %v2642_v47  ;;  %v2477_v41 = vpop.xlane.xlu2 %2476  ;;  %v2635_v37 = vmul.f32 %v5940_v49, %v2634_v19  ;;  %v2782_v8 = vpack.c.bf16 %v2769_v61, %v2768_v2 }
 0x88a   :  { %v2533_v53 = vmul.f32 %v5975_v40, %v5975_v40  ;;  %v2501_v36 = vmul.f32 %v2477_v41, %v4106_v10  ;;  %v2548_v57 = vsub.f32 %v2500_v55, %v2532_v7 }
 0x88b   :  { %v2644_v59 = vsub.f32 1.5, %v2643_v50  ;;  %v2639_v51 = vsel %vm2638_vm1, %v5940_v49, %v2635_v37 }
 0x88c   :  { %v5987_v32 = vpop.eup %3823  ;;  %v2549_v45 = vsub.f32 %v2501_v36, %v2533_v53  ;;  %v6014_v52 = vadd.f32 1e-05, %v2548_v57  ;;  %v2736_v27 = vmul.f32 %v2639_v51, %v2512_v28 }
 0x88d   :  { %v5989_v56 = vpop.eup %3825  ;;  %v2645_v44 = vmul.f32 %v5945_v31, %v2644_v59  ;;  %v2661_v21 = vmul.f32 %v5987_v32, %v5951_v54  ;;  %vm2667_vm2 = vweird.f32 %v5987_v32 }
 0x88e   :  { %v2651_v35 = vmul.f32 %v5989_v56, %v5959_v1  ;;  %v6006_v60 = vadd.f32 1e-05, %v2549_v45  ;;  %v2753_v7 = vmul.f32 %v5865_v23, %v2736_v27  ;;  %v3554_v45 = vld [vmem:[%s6288_s8 + $0x20] sm:$0xff]  ;;  %vm2657_vm3 = vweird.f32 %v5989_v56  ;;  %vm6058_vm5 = vmor %vm2666_vm4, %vm2667_vm2 }
 0x88f   :  { %v2400_v17 = vpop.xlane.xlu0 %2399  ;;  %v2649_v46 = vsel %vm2648_vm14, %v5945_v31, %v2645_v44  ;;  %v2662_v47 = vmul.f32 %v5987_v32, %v2661_v21  ;;  %v2403_v4 = vpop.xlane.xlu1 %2402  ;;  %v3556_v31 = vld [vmem:[%s6288_s8 + $0x30] sm:$0xff]  ;;  %vm2658_vm7 = vmor %vm2656_vm6, %vm2657_vm3  ;;  %v2515_v1 = vsub.f32 %v5758_v62, %v5927_v22  ;;  %vm2676_vm12 = vweird.f32 %v6014_v52 }
 0x890   :  { %v2652_v13 = vmul.f32 %v5989_v56, %v2651_v35  ;;  %v2737_v50 = vmul.f32 %v2649_v46, %v2513_v12  ;;  %3827 = vrsqrt.f32 %v6006_v60  ;;  %v6026_v16 = vmul.f32 %v2403_v4, %v4106_v10  ;;  %3099 = vmatpush.bf16.msrb.mxu1 %v3556_v31 }
 0x891   :  { %v2663_v41 = vmul.f32 0.5, %v2662_v47  ;;  %3829 = vrsqrt.f32 %v6014_v52  ;;  %v6029_v49 = vmul.f32 %v2400_v17, %v4106_v10  ;;  %v2480_v26 = vpop.xlane.xlu2 %2479  ;;  %v2770_v46 = vadd.f32 %v5876_v29, %v2753_v7 }
 0x892   :  { %v2653_v34 = vmul.f32 0.5, %v2652_v13  ;;  %v2754_v36 = vmul.f32 %v5865_v23, %v2737_v50  ;;  %v2535_v30 = vmul.f32 %v6026_v16, %v6026_v16  ;;  %v2502_v17 = vmul.f32 %v2480_v26, %v4106_v10 }
 0x893   :  { %v2664_v11 = vsub.f32 1.5, %v2663_v41  ;;  %v2534_v19 = vmul.f32 %v6029_v49, %v6029_v49  ;;  %v2514_v50 = vsub.f32 %v5752_v20, %v5923_v0  ;;  %v3553_v41 = vld [vmem:[%s6288_s8 + $0x18] sm:$0xff]  ;;  %vm2686_vm9 = vweird.f32 %v6006_v60 }
 0x894   :  { %v2654_v59 = vsub.f32 1.5, %v2653_v34  ;;  %3100 = vmatpush.bf16.msrb.mxu1 %v3555_v42  ;;  %v2771_v35 = vadd.f32 %v5876_v29, %v2754_v36 }
 0x895   :  { %v2665_v57 = vmul.f32 %v5987_v32, %v2664_v11 }
 0x896   :  { %v6036_v55 = vpop.eup %3827  ;;  %v2655_v2 = vmul.f32 %v5989_v56, %v2654_v59  ;;  %v2783_v12 = vpack.c.bf16 %v2771_v35, %v2770_v46 }
 0x897   :  { %v2483_v15 = vpop.xlane.xlu0 %2482  ;;  %v2406_v61 = vpop.xlane.xlu1 %2405  ;;  %v2681_v37 = vmul.f32 %v6036_v55, %v6006_v60  ;;  %v2669_v54 = vsel %vm6058_vm5, %v5987_v32, %v2665_v57  ;;  %vm2687_vm8 = vweird.f32 %v6036_v55  ;;  %v2517_v60 = vsub.f32 %v5782_v24, %v5975_v40 }
 0x898   :  { %3496 = vmatmul.msk.bf16.gmra.mxu0 %vm53_vm0, %v2782_v8  ;;  %v2503_v53 = vmul.f32 %v2483_v15, %v4106_v10  ;;  %v6047_v44 = vpop.eup %3829  ;;  %v2550_v8 = vsub.f32 %v2502_v17, %v2534_v19  ;;  %3101 = vmatpush.bf16.msrb.mxu1 %v3554_v45  ;;  %v2659_v51 = vsel %vm2658_vm7, %v5989_v56, %v2655_v2  ;;  %vm2688_vm11 = vmor %vm2686_vm9, %vm2687_vm8 }
 0x899   :  { %v2671_v13 = vmul.f32 %v6047_v44, %v6014_v52  ;;  %v2682_v28 = vmul.f32 %v6036_v55, %v2681_v37  ;;  %v2409_v34 = vpop.xlane.xlu2 %2408  ;;  %v2739_v56 = vmul.f32 %v2669_v54, %v2515_v1  ;;  %v2738_v15 = vmul.f32 %v2659_v51, %v2514_v50  ;;  %v3552_v50 = vld [vmem:[%s6288_s8 + $0x10] sm:$0xff] }
 0x89a   :  { %v2551_v21 = vsub.f32 %v2503_v53, %v2535_v30  ;;  %v6076_v31 = vadd.f32 1e-05, %v2550_v8  ;;  %v6085_v22 = vmul.f32 %v2406_v61, %v4106_v10  ;;  %v6089_v26 = vmul.f32 %v2409_v34, %v4106_v10 }
 0x89b   :  { %v2672_v32 = vmul.f32 %v6047_v44, %v2671_v13  ;;  %v2683_v0 = vmul.f32 0.5, %v2682_v28  ;;  %v2755_v59 = vmul.f32 %v5865_v23, %v2738_v15  ;;  %v2756_v30 = vmul.f32 %v5865_v23, %v2739_v56 }
 0x89c   :  { %v6065_v4 = vadd.f32 1e-05, %v2551_v21  ;;  %3102 = vmatpush.bf16.msrb.mxu1 %v3553_v41  ;;  %v2536_v17 = vmul.f32 %v6085_v22, %v6085_v22  ;;  %v2537_v45 = vmul.f32 %v6089_v26, %v6089_v26  ;;  %vm2677_vm10 = vweird.f32 %v6047_v44 }
 0x89d   :  { %v2673_v53 = vmul.f32 0.5, %v2672_v32  ;;  %v2684_v19 = vsub.f32 1.5, %v2683_v0  ;;  %v2772_v2 = vadd.f32 %v5876_v29, %v2755_v59  ;;  %vm2678_vm13 = vmor %vm2676_vm12, %vm2677_vm10  ;;  %v2516_v52 = vsub.f32 %v5771_v58, %v5981_v38 }
 0x89e   :  { %3831 = vrsqrt.f32 %v6065_v4  ;;  %vm2706_vm1 = vweird.f32 %v6065_v4  ;;  %vm2696_vm3 = vweird.f32 %v6076_v31 }
 0x89f   :  { %v2486_v27 = vpop.xlane.xlu0 %2485  ;;  %v2489_v42 = vpop.xlane.xlu1 %2488  ;;  %3833 = vrsqrt.f32 %v6076_v31  ;;  %v2674_v61 = vsub.f32 1.5, %v2673_v53  ;;  %v2685_v37 = vmul.f32 %v6036_v55, %v2684_v19 }
 0x8a0   :  { %v2504_v36 = vmul.f32 %v2486_v27, %v4106_v10  ;;  %v2505_v11 = vmul.f32 %v2489_v42, %v4106_v10  ;;  %v2773_v10 = vadd.f32 %v5876_v29, %v2756_v30  ;;  %3103 = vmatpush.bf16.msrb.mxu1 %v3552_v50  ;;  %v2520_v50 = vsub.f32 %v5809_v25, %v6085_v22  ;;  %v3551_v22 = vld [vmem:[%s6288_s8 + $0x8] sm:$0xff] }
 0x8a1   :  { %v2675_v46 = vmul.f32 %v6047_v44, %v2674_v61  ;;  %v2689_v51 = vsel %vm2688_vm11, %v6036_v55, %v2685_v37 }
 0x8a2   :  { %v2552_v21 = vsub.f32 %v2504_v36, %v2536_v17  ;;  %v2553_v57 = vsub.f32 %v2505_v11, %v2537_v45  ;;  %v2784_v54 = vpack.c.bf16 %v2773_v10, %v2772_v2  ;;  %v2741_v55 = vmul.f32 %v2689_v51, %v2517_v60 }
 0x8a3   :  { %v2679_v1 = vsel %vm2678_vm13, %v6047_v44, %v2675_v46  ;;  %v2518_v2 = vsub.f32 %v5794_v6, %v6029_v49 }
 0x8a4   :  { %v6097_v7 = vpop.eup %3831  ;;  %v2568_v13 = vadd.f32 1e-05, %v2552_v21  ;;  %v2740_v34 = vmul.f32 %v2679_v1, %v2516_v52  ;;  %v2758_v40 = vmul.f32 %v5865_v23, %v2741_v55  ;;  %v2519_v21 = vsub.f32 %v5798_v33, %v6026_v16  ;;  %3104 = vmatpush.bf16.msrb.mxu1 %v3551_v22 }
 0x8a5   :  { %v3834_v35 = vpop.eup %3833  ;;  %v2701_v8 = vmul.f32 %v6097_v7, %v6065_v4  ;;  %vm2707_vm14 = vweird.f32 %v6097_v7  ;;  %v2521_v1 = vsub.f32 %v5815_v39, %v6089_v26  ;;  %v3550_v26 = vld [vmem:[%s6288_s8] sm:$0xff] }
 0x8a6   :  { %v2691_v47 = vmul.f32 %v3834_v35, %v6076_v31  ;;  %3835 = vrsqrt.f32 %v2568_v13  ;;  %v2757_v42 = vmul.f32 %v5865_v23, %v2740_v34  ;;  %v2775_v44 = vadd.f32 %v5876_v29, %v2758_v40  ;;  %vm2708_vm2 = vmor %vm2706_vm1, %vm2707_vm14 }
 0x8a7   :  { %v2702_v28 = vmul.f32 %v6097_v7, %v2701_v8  ;;  %vm2697_vm15 = vweird.f32 %v3834_v35  ;;  %vm2716_vm7 = vweird.f32 %v2568_v13 }
 0x8a8   :  { %3497 = vmatmul.msk.bf16.gmra.mxu0 %vm53_vm0, %v2783_v12  ;;  %v2569_v12 = vadd.f32 1e-05, %v2553_v57  ;;  %v2692_v41 = vmul.f32 %v3834_v35, %v2691_v47  ;;  %v2774_v59 = vadd.f32 %v5876_v29, %v2757_v42  ;;  %vm2698_vm4 = vmor %vm2696_vm3, %vm2697_vm15  ;;  %3105 = vmatpush.bf16.msrb.mxu1 %v3550_v26 }
 0x8a9   :  { %v2703_v32 = vmul.f32 0.5, %v2702_v28 }
 0x8aa   :  { %3837 = vrsqrt.f32 %v2569_v12  ;;  %v2693_v56 = vmul.f32 0.5, %v2692_v41  ;;  %v2785_v19 = vpack.c.bf16 %v2775_v44, %v2774_v59  ;;  %vm2726_vm9 = vweird.f32 %v2569_v12 }
 0x8ab   :  { %v2704_v27 = vsub.f32 1.5, %v2703_v32 }
 0x8ac   :  { %v3836_v15 = vpop.eup %3835  ;;  %v2694_v53 = vsub.f32 1.5, %v2693_v56 }
 0x8ad   :  { %v2705_v36 = vmul.f32 %v6097_v7, %v2704_v27  ;;  %v2711_v38 = vmul.f32 %v3836_v15, %v2568_v13  ;;  %vm2717_vm5 = vweird.f32 %v3836_v15 }
 0x8ae   :  { %v2695_v30 = vmul.f32 %v3834_v35, %v2694_v53  ;;  %vm2718_vm8 = vmor %vm2716_vm7, %vm2717_vm5 }
 0x8af   :  { %v2709_v17 = vsel %vm2708_vm2, %v6097_v7, %v2705_v36  ;;  %v2712_v45 = vmul.f32 %v3836_v15, %v2711_v38 }
 0x8b0   :  { %v3838_v0 = vpop.eup %3837  ;;  %v2699_v57 = vsel %vm2698_vm4, %v3834_v35, %v2695_v30  ;;  %v2743_v10 = vmul.f32 %v2709_v17, %v2519_v21 }
 0x8b1   :  { %v2721_v11 = vmul.f32 %v3838_v0, %v2569_v12  ;;  %v2713_v4 = vmul.f32 0.5, %v2712_v45  ;;  %v2742_v8 = vmul.f32 %v2699_v57, %v2518_v2  ;;  %vm2727_vm6 = vweird.f32 %v3838_v0 }
 0x8b2   :  { %v2760_v31 = vmul.f32 %v5865_v23, %v2743_v10  ;;  %vm2728_vm10 = vmor %vm2726_vm9, %vm2727_vm6 }
 0x8b3   :  { %v2722_v61 = vmul.f32 %v3838_v0, %v2721_v11  ;;  %v2714_v46 = vsub.f32 1.5, %v2713_v4  ;;  %v2759_v47 = vmul.f32 %v5865_v23, %v2742_v8 }
 0x8b4   :  { %v2777_v16 = vadd.f32 %v5876_v29, %v2760_v31 }
 0x8b5   :  { %v2723_v37 = vmul.f32 0.5, %v2722_v61  ;;  %v2776_v35 = vadd.f32 %v5876_v29, %v2759_v47 }
 0x8b7   :  { %v2724_v7 = vsub.f32 1.5, %v2723_v37  ;;  %v2786_v49 = vpack.c.bf16 %v2777_v16, %v2776_v35 }
 0x8b8   :  { %3498 = vmatmul.msk.bf16.gmra.mxu0 %vm53_vm0, %v2784_v54  ;;  %v2715_v54 = vmul.f32 %v3836_v15, %v2714_v46 }
 0x8b9   :  { %v2725_v51 = vmul.f32 %v3838_v0, %v2724_v7 }
 0x8ba   :  { %v2719_v28 = vsel %vm2718_vm8, %v3836_v15, %v2715_v54 }
 0x8bb   :  { %v2729_v60 = vsel %vm2728_vm10, %v3838_v0, %v2725_v51  ;;  %v2744_v41 = vmul.f32 %v2719_v28, %v2520_v50 }
 0x8bc   :  { %v2745_v52 = vmul.f32 %v2729_v60, %v2521_v1 }
 0x8bd   :  { %v2761_v13 = vmul.f32 %v5865_v23, %v2744_v41 }
 0x8be   :  { %v2762_v55 = vmul.f32 %v5865_v23, %v2745_v52  ;;  %v6160_v23 = vld [vmem:[%s6287_s7] ss:$0 sm:$0xff] }
 0x8bf   :  { %v2778_v12 = vadd.f32 %v5876_v29, %v2761_v13 }
 0x8c0   :  { %v2779_v32 = vadd.f32 %v5876_v29, %v2762_v55 }
 0x8c2   :  { %v2787_v34 = vpack.c.bf16 %v2779_v32, %v2778_v12 }
 0x8c8   :  { %3499 = vmatmul.msk.bf16.gmra.mxu0 %vm53_vm0, %v2785_v19 }
 0x8d8   :  { %3500 = vmatmul.msk.bf16.gmra.mxu0 %vm53_vm0, %v2786_v49 }
 0x8e8   :  { %3501 = vmatmul.msk.bf16.gmra.mxu0 %vm53_vm0, %v2787_v34 }
 0x8f5   :  { %v2841_v56 = vpop.f32.mrf.mxu0 }
 0x8f6   :  { %v2842_v29 = vadd.f32 %v6160_v23, %v2841_v56 }
 0x8f8   :  { %v2897_v40 = vmul.f32 0.044715, %v2842_v29  ;;  %v2881_v46 = vmul.f32 0.5, %v2842_v29 }
 0x8fa   :  { %v2913_v15 = vmul.f32 %v2897_v40, %v2842_v29 }
 0x8fc   :  { %v2929_v27 = vmul.f32 %v2913_v15, %v2842_v29 }
 0x8fd   :  { %v2843_v0 = vpop.f32.mrf.mxu0 }
 0x8fe   :  { %v2945_v42 = vadd.f32 %v2929_v27, %v2842_v29  ;;  %v2844_v53 = vadd.f32 %v6160_v23, %v2843_v0 }
 0x900   :  { %v2898_v44 = vmul.f32 0.044715, %v2844_v53  ;;  %v2961_v36 = vmul.f32 0.7978846, %v2945_v42  ;;  %v2882_v7 = vmul.f32 0.5, %v2844_v53 }
 0x902   :  { %v2914_v38 = vmul.f32 %v2898_v44, %v2844_v53  ;;  %3839 = vtanh.f32 %v2961_v36 }
 0x904   :  { %v2930_v11 = vmul.f32 %v2914_v38, %v2844_v53 }
 0x905   :  { %v2846_v59 = vpop.f32.mrf.mxu0 }
 0x906   :  { %v2946_v30 = vadd.f32 %v2930_v11, %v2844_v53  ;;  %v2847_v19 = vadd.f32 %v6160_v23, %v2846_v59 }
 0x908   :  { %v2962_v17 = vmul.f32 0.7978846, %v2946_v30  ;;  %v2899_v45 = vmul.f32 0.044715, %v2847_v19  ;;  %v3840_v21 = vpop.eup %3839  ;;  %v2883_v40 = vmul.f32 0.5, %v2847_v19 }
 0x909   :  { %v2993_v37 = vadd.f32 1.0, %v3840_v21 }
 0x90a   :  { %3841 = vtanh.f32 %v2962_v17  ;;  %v2915_v61 = vmul.f32 %v2899_v45, %v2847_v19 }
 0x90b   :  { %v3009_v51 = vmul.f32 %v2993_v37, %v2881_v46 }
 0x90c   :  { %v2931_v57 = vmul.f32 %v2915_v61, %v2847_v19 }
 0x90d   :  { %v2848_v2 = vpop.f32.mrf.mxu0 }
 0x90e   :  { %v2849_v10 = vadd.f32 %v6160_v23, %v2848_v2  ;;  %v2947_v4 = vadd.f32 %v2931_v57, %v2847_v19 }
 0x910   :  { %v3842_v8 = vpop.eup %3841  ;;  %v2900_v31 = vmul.f32 0.044715, %v2849_v10  ;;  %v2963_v54 = vmul.f32 0.7978846, %v2947_v4  ;;  %v2884_v15 = vmul.f32 0.5, %v2849_v10 }
 0x911   :  { %v2994_v47 = vadd.f32 1.0, %v3842_v8 }
 0x912   :  { %v2916_v16 = vmul.f32 %v2900_v31, %v2849_v10  ;;  %3843 = vtanh.f32 %v2963_v54 }
 0x913   :  { %v3010_v35 = vmul.f32 %v2994_v47, %v2882_v7 }
 0x914   :  { %v2932_v49 = vmul.f32 %v2916_v16, %v2849_v10 }
 0x915   :  { %v2851_v28 = vpop.f32.mrf.mxu0  ;;  %v3025_v60 = vpack.c.bf16 %v3010_v35, %v3009_v51 }
 0x916   :  { %v2852_v50 = vadd.f32 %v6160_v23, %v2851_v28  ;;  %v2948_v1 = vadd.f32 %v2932_v49, %v2849_v10 }
 0x917   :  { %3106 = vmatmul.bf16.vlgmr.msrb.gmra.mxu1 %v3025_v60 }
 0x918   :  { %v2901_v41 = vmul.f32 0.044715, %v2852_v50  ;;  %v2964_v52 = vmul.f32 0.7978846, %v2948_v1  ;;  %v3844_v55 = vpop.eup %3843  ;;  %v2885_v31 = vmul.f32 0.5, %v2852_v50 }
 0x919   :  { %v2995_v26 = vadd.f32 1.0, %v3844_v55 }
 0x91a   :  { %v2917_v13 = vmul.f32 %v2901_v41, %v2852_v50  ;;  %3845 = vtanh.f32 %v2964_v52 }
 0x91b   :  { %v3011_v53 = vmul.f32 %v2995_v26, %v2883_v40 }
 0x91c   :  { %v2933_v12 = vmul.f32 %v2917_v13, %v2852_v50 }
 0x91d   :  { %v2853_v32 = vpop.f32.mrf.mxu0 }
 0x91e   :  { %v2854_v34 = vadd.f32 %v6160_v23, %v2853_v32  ;;  %v2949_v22 = vadd.f32 %v2933_v12, %v2852_v50 }
 0x920   :  { %v3846_v56 = vpop.eup %3845  ;;  %v2902_v29 = vmul.f32 0.044715, %v2854_v34  ;;  %v2965_v42 = vmul.f32 0.7978846, %v2949_v22  ;;  %v2886_v46 = vmul.f32 0.5, %v2854_v34 }
 0x921   :  { %v2996_v27 = vadd.f32 1.0, %v3846_v56 }
 0x922   :  { %v2918_v0 = vmul.f32 %v2902_v29, %v2854_v34  ;;  %3847 = vtanh.f32 %v2965_v42 }
 0x923   :  { %v3012_v44 = vmul.f32 %v2996_v27, %v2884_v15 }
 0x924   :  { %v2934_v36 = vmul.f32 %v2918_v0, %v2854_v34 }
 0x925   :  { %v2856_v38 = vpop.f32.mrf.mxu0  ;;  %v3026_v11 = vpack.c.bf16 %v3012_v44, %v3011_v53 }
 0x926   :  { %v2857_v59 = vadd.f32 %v6160_v23, %v2856_v38  ;;  %v2950_v30 = vadd.f32 %v2934_v36, %v2854_v34 }
 0x927   :  { %3111 = vmatmul.bf16.gmra.mxu1 %v3026_v11 }
 0x928   :  { %v2903_v17 = vmul.f32 0.044715, %v2857_v59  ;;  %v2966_v45 = vmul.f32 0.7978846, %v2950_v30  ;;  %v3848_v21 = vpop.eup %3847  ;;  %v2887_v29 = vmul.f32 0.5, %v2857_v59 }
 0x929   :  { %v2997_v4 = vadd.f32 1.0, %v3848_v21 }
 0x92a   :  { %v2919_v61 = vmul.f32 %v2903_v17, %v2857_v59  ;;  %3849 = vtanh.f32 %v2966_v45 }
 0x92b   :  { %v3013_v54 = vmul.f32 %v2997_v4, %v2885_v31 }
 0x92c   :  { %v2935_v19 = vmul.f32 %v2919_v61, %v2857_v59 }
 0x92d   :  { %v2858_v57 = vpop.f32.mrf.mxu0 }
 0x92e   :  { %v2859_v2 = vadd.f32 %v6160_v23, %v2858_v57  ;;  %v2951_v10 = vadd.f32 %v2935_v19, %v2857_v59 }
 0x930   :  { %v3850_v37 = vpop.eup %3849  ;;  %v2904_v8 = vmul.f32 0.044715, %v2859_v2  ;;  %v2967_v16 = vmul.f32 0.7978846, %v2951_v10  ;;  %v2888_v40 = vmul.f32 0.5, %v2859_v2 }
 0x931   :  { %v2998_v7 = vadd.f32 1.0, %v3850_v37 }
 0x932   :  { %v2920_v47 = vmul.f32 %v2904_v8, %v2859_v2  ;;  %3851 = vtanh.f32 %v2967_v16 }
 0x933   :  { %v3014_v51 = vmul.f32 %v2998_v7, %v2886_v46 }
 0x934   :  { %v2936_v35 = vmul.f32 %v2920_v47, %v2859_v2 }
 0x935   :  { %v2861_v49 = vpop.f32.mrf.mxu0  ;;  %v3027_v28 = vpack.c.bf16 %v3014_v51, %v3013_v54 }
 0x936   :  { %v2862_v60 = vadd.f32 %v6160_v23, %v2861_v49  ;;  %v2952_v1 = vadd.f32 %v2936_v35, %v2859_v2 }
 0x937   :  { %3116 = vmatmul.bf16.gmra.mxu1 %v3027_v28 }
 0x938   :  { %v2905_v41 = vmul.f32 0.044715, %v2862_v60  ;;  %v2968_v52 = vmul.f32 0.7978846, %v2952_v1  ;;  %v3852_v55 = vpop.eup %3851  ;;  %v2889_v8 = vmul.f32 0.5, %v2862_v60 }
 0x939   :  { %v2999_v22 = vadd.f32 1.0, %v3852_v55 }
 0x93a   :  { %v2921_v13 = vmul.f32 %v2905_v41, %v2862_v60  ;;  %3853 = vtanh.f32 %v2968_v52 }
 0x93b   :  { %v3015_v42 = vmul.f32 %v2999_v22, %v2887_v29 }
 0x93c   :  { %v2937_v50 = vmul.f32 %v2921_v13, %v2862_v60 }
 0x93d   :  { %v2863_v12 = vpop.f32.mrf.mxu0 }
 0x93e   :  { %v2864_v32 = vadd.f32 %v6160_v23, %v2863_v12  ;;  %v2953_v34 = vadd.f32 %v2937_v50, %v2862_v60 }
 0x940   :  { %v3854_v26 = vpop.eup %3853  ;;  %v2906_v56 = vmul.f32 0.044715, %v2864_v32  ;;  %v2969_v0 = vmul.f32 0.7978846, %v2953_v34  ;;  %v2890_v31 = vmul.f32 0.5, %v2864_v32 }
 0x941   :  { %v3000_v15 = vadd.f32 1.0, %v3854_v26 }
 0x942   :  { %v2922_v27 = vmul.f32 %v2906_v56, %v2864_v32  ;;  %3855 = vtanh.f32 %v2969_v0 }
 0x943   :  { %v3016_v53 = vmul.f32 %v3000_v15, %v2888_v40 }
 0x944   :  { %v2938_v44 = vmul.f32 %v2922_v27, %v2864_v32 }
 0x945   :  { %v2866_v36 = vpop.f32.mrf.mxu0  ;;  %v3028_v38 = vpack.c.bf16 %v3016_v53, %v3015_v42 }
 0x946   :  { %v2867_v11 = vadd.f32 %v6160_v23, %v2866_v36  ;;  %v2954_v30 = vadd.f32 %v2938_v44, %v2864_v32 }
 0x947   :  { %3121 = vmatmul.bf16.gmra.mxu1 %v3028_v38 }
 0x948   :  { %v2907_v17 = vmul.f32 0.044715, %v2867_v11  ;;  %v2970_v45 = vmul.f32 0.7978846, %v2954_v30  ;;  %v3856_v21 = vpop.eup %3855  ;;  %v2891_v56 = vmul.f32 0.5, %v2867_v11 }
 0x949   :  { %v3001_v10 = vadd.f32 1.0, %v3856_v21 }
 0x94a   :  { %v2923_v61 = vmul.f32 %v2907_v17, %v2867_v11  ;;  %3857 = vtanh.f32 %v2970_v45 }
 0x94b   :  { %v3017_v16 = vmul.f32 %v3001_v10, %v2889_v8 }
 0x94c   :  { %v2939_v59 = vmul.f32 %v2923_v61, %v2867_v11 }
 0x94d   :  { %v2868_v19 = vpop.f32.mrf.mxu0 }
 0x94e   :  { %v2869_v57 = vadd.f32 %v6160_v23, %v2868_v19  ;;  %v2955_v2 = vadd.f32 %v2939_v59, %v2867_v11 }
 0x950   :  { %v3858_v4 = vpop.eup %3857  ;;  %v2908_v37 = vmul.f32 0.044715, %v2869_v57  ;;  %v2971_v47 = vmul.f32 0.7978846, %v2955_v2  ;;  %v2892_v29 = vmul.f32 0.5, %v2869_v57 }
 0x951   :  { %v3002_v46 = vadd.f32 1.0, %v3858_v4 }
 0x952   :  { %v2924_v7 = vmul.f32 %v2908_v37, %v2869_v57  ;;  %3859 = vtanh.f32 %v2971_v47 }
 0x953   :  { %v3018_v54 = vmul.f32 %v3002_v46, %v2890_v31 }
 0x954   :  { %v2940_v51 = vmul.f32 %v2924_v7, %v2869_v57 }
 0x955   :  { %v2871_v35 = vpop.f32.mrf.mxu0  ;;  %v3029_v49 = vpack.c.bf16 %v3018_v54, %v3017_v16 }
 0x956   :  { %v2872_v28 = vadd.f32 %v6160_v23, %v2871_v35  ;;  %v2956_v1 = vadd.f32 %v2940_v51, %v2869_v57 }
 0x957   :  { %3126 = vmatmul.bf16.gmra.mxu1 %v3029_v49 }
 0x958   :  { %v2909_v41 = vmul.f32 0.044715, %v2872_v28  ;;  %v2972_v52 = vmul.f32 0.7978846, %v2956_v1  ;;  %v3860_v55 = vpop.eup %3859  ;;  %v2893_v37 = vmul.f32 0.5, %v2872_v28 }
 0x959   :  { %v3003_v34 = vadd.f32 1.0, %v3860_v55 }
 0x95a   :  { %v2925_v13 = vmul.f32 %v2909_v41, %v2872_v28  ;;  %3861 = vtanh.f32 %v2972_v52 }
 0x95b   :  { %v3019_v0 = vmul.f32 %v3003_v34, %v2891_v56 }
 0x95c   :  { %v2941_v60 = vmul.f32 %v2925_v13, %v2872_v28 }
 0x95d   :  { %v2873_v50 = vpop.f32.mrf.mxu0 }
 0x95e   :  { %v2874_v12 = vadd.f32 %v6160_v23, %v2873_v50  ;;  %v2957_v32 = vadd.f32 %v2941_v60, %v2872_v28 }
 0x960   :  { %v3862_v22 = vpop.eup %3861  ;;  %v2910_v26 = vmul.f32 0.044715, %v2874_v12  ;;  %v2973_v27 = vmul.f32 0.7978846, %v2957_v32  ;;  %v2894_v8 = vmul.f32 0.5, %v2874_v12 }
 0x961   :  { %v3004_v40 = vadd.f32 1.0, %v3862_v22 }
 0x962   :  { %v2926_v15 = vmul.f32 %v2910_v26, %v2874_v12  ;;  %3863 = vtanh.f32 %v2973_v27 }
 0x963   :  { %v3020_v42 = vmul.f32 %v3004_v40, %v2892_v29 }
 0x964   :  { %v2942_v53 = vmul.f32 %v2926_v15, %v2874_v12 }
 0x965   :  { %v2876_v44 = vpop.f32.mrf.mxu0  ;;  %v3030_v36 = vpack.c.bf16 %v3020_v42, %v3019_v0 }
 0x966   :  { %v2877_v38 = vadd.f32 %v6160_v23, %v2876_v44  ;;  %v2958_v30 = vadd.f32 %v2942_v53, %v2874_v12  ;;  %v3889_v12 = vld [vmem:[%s6281_s9] sm:$0x7f] }
 0x967   :  { %3131 = vmatmul.bf16.gmra.mxu1 %v3030_v36  ;;  %v6181_v32 = vperm.slane %v3889_v12, 6 }
 0x968   :  { %v2911_v17 = vmul.f32 0.044715, %v2877_v38  ;;  %v2974_v45 = vmul.f32 0.7978846, %v2958_v30  ;;  %v3864_v21 = vpop.eup %3863  ;;  %v2895_v52 = vmul.f32 0.5, %v2877_v38 }
 0x969   :  { %v3005_v2 = vadd.f32 1.0, %v3864_v21 }
 0x96a   :  { %v2927_v61 = vmul.f32 %v2911_v17, %v2877_v38  ;;  %3865 = vtanh.f32 %v2974_v45 }
 0x96b   :  { %v3021_v47 = vmul.f32 %v3005_v2, %v2893_v37 }
 0x96c   :  { %v2943_v11 = vmul.f32 %v2927_v61, %v2877_v38 }
 0x96d   :  { %v2878_v59 = vpop.f32.mrf.mxu0 }
 0x96e   :  { %v2879_v19 = vadd.f32 %v6160_v23, %v2878_v59  ;;  %v2959_v57 = vadd.f32 %v2943_v11, %v2877_v38 }
 0x970   :  { %v3866_v10 = vpop.eup %3865  ;;  %v2912_v4 = vmul.f32 0.044715, %v2879_v19  ;;  %v2975_v7 = vmul.f32 0.7978846, %v2959_v57  ;;  %v2896_v13 = vmul.f32 0.5, %v2879_v19 }
 0x971   :  { %v3006_v31 = vadd.f32 1.0, %v3866_v10 }
 0x972   :  { %v2928_v46 = vmul.f32 %v2912_v4, %v2879_v19  ;;  %3867 = vtanh.f32 %v2975_v7 }
 0x973   :  { %v3022_v16 = vmul.f32 %v3006_v31, %v2894_v8 }
 0x974   :  { %v2944_v54 = vmul.f32 %v2928_v46, %v2879_v19 }
 0x975   :  { %v3031_v51 = vpack.c.bf16 %v3022_v16, %v3021_v47 }
 0x976   :  { %v2960_v35 = vadd.f32 %v2944_v54, %v2879_v19 }
 0x977   :  { %3136 = vmatmul.bf16.gmra.mxu1 %v3031_v51 }
 0x978   :  { %v2976_v49 = vmul.f32 0.7978846, %v2960_v35  ;;  %v3868_v1 = vpop.eup %3867 }
 0x979   :  { %v3007_v23 = vadd.f32 1.0, %v3868_v1 }
 0x97a   :  { %3869 = vtanh.f32 %v2976_v49 }
 0x97b   :  { %v3023_v28 = vmul.f32 %v3007_v23, %v2895_v52 }
 0x980   :  { %v3870_v41 = vpop.eup %3869 }
 0x981   :  { %v3008_v55 = vadd.f32 1.0, %v3870_v41 }
 0x983   :  { %v3024_v60 = vmul.f32 %v3008_v55, %v2896_v13 }
 0x985   :  { %v3032_v50 = vpack.c.bf16 %v3024_v60, %v3023_v28 }
 0x987   :  { %3141 = vmatmul.bf16.gmra.mxu1 %v3032_v50 }
 0x994   :  { %v3107_v34 = vpop.f32.mrf.mxu1 }
 0x995   :  { %v3108_v22 = vadd.f32 %v3107_v34, %v6181_v32 }
 0x997   :  { %v3147_v26 = vadd.f32 %v3108_v22, %v5687_v5 }
 0x999   :  { %3163 = vst.msk [vmem:[%s6289_s10] sm:$0xff] %vm53_vm0, %v3147_v26 }
 0x99c   :  { %v3109_v56 = vpop.f32.mrf.mxu1 }
 0x99d   :  { %v3110_v29 = vadd.f32 %v3109_v56, %v6181_v32 }
 0x99f   :  { %v3148_v40 = vadd.f32 %v3110_v29, %v5684_v9 }
 0x9a1   :  { %3164 = vst.msk [vmem:[%s6289_s10 + $0x8] sm:$0xff] %vm53_vm0, %v3148_v40 }
 0x9a4   :  { %v3112_v15 = vpop.f32.mrf.mxu1 }
 0x9a5   :  { %v3113_v27 = vadd.f32 %v3112_v15, %v6181_v32 }
 0x9a7   :  { %v3149_v5 = vadd.f32 %v3113_v27, %v5698_v18 }
 0x9a9   :  { %3165 = vst.msk [vmem:[%s6289_s10 + $0x10] sm:$0xff] %vm53_vm0, %v3149_v5 }
 0x9ac   :  { %v3114_v0 = vpop.f32.mrf.mxu1 }
 0x9ad   :  { %v3115_v42 = vadd.f32 %v3114_v0, %v6181_v32 }
 0x9af   :  { %v3150_v9 = vadd.f32 %v3115_v42, %v5704_v3 }
 0x9b1   :  { %3166 = vst.msk [vmem:[%s6289_s10 + $0x18] sm:$0xff] %vm53_vm0, %v3150_v9 }
 0x9b4   :  { %v3117_v53 = vpop.f32.mrf.mxu1 }
 0x9b5   :  { %v3118_v44 = vadd.f32 %v3117_v53, %v6181_v32 }
 0x9b7   :  { %v3151_v18 = vadd.f32 %v3118_v44, %v5717_v63 }
 0x9b9   :  { %3167 = vst.msk [vmem:[%s6289_s10 + $0x20] sm:$0xff] %vm53_vm0, %v3151_v18 }
 0x9bc   :  { %v3119_v36 = vpop.f32.mrf.mxu1 }
 0x9bd   :  { %v3120_v38 = vadd.f32 %v3119_v36, %v6181_v32 }
 0x9bf   :  { %v3152_v3 = vadd.f32 %v3120_v38, %v5725_v14 }
 0x9c1   :  { %3168 = vst.msk [vmem:[%s6289_s10 + $0x28] sm:$0xff] %vm53_vm0, %v3152_v3 }
 0x9c4   :  { %v3122_v30 = vpop.f32.mrf.mxu1 }
 0x9c5   :  { %v3123_v17 = vadd.f32 %v3122_v30, %v6181_v32 }
 0x9c7   :  { %v3153_v63 = vadd.f32 %v3123_v17, %v5737_v43 }
 0x9c9   :  { %3169 = vst.msk [vmem:[%s6289_s10 + $0x30] sm:$0xff] %vm53_vm0, %v3153_v63 }
 0x9cc   :  { %v3124_v45 = vpop.f32.mrf.mxu1 }
 0x9cd   :  { %v3125_v61 = vadd.f32 %v3124_v45, %v6181_v32 }
 0x9cf   :  { %v3154_v14 = vadd.f32 %v3125_v61, %v5741_v48 }
 0x9d1   :  { %3170 = vst.msk [vmem:[%s6289_s10 + $0x38] sm:$0xff] %vm53_vm0, %v3154_v14 }
 0x9d4   :  { %v3127_v21 = vpop.f32.mrf.mxu1 }
 0x9d5   :  { %v3128_v11 = vadd.f32 %v3127_v21, %v6181_v32 }
 0x9d7   :  { %v3155_v43 = vadd.f32 %v3128_v11, %v5752_v20 }
 0x9d9   :  { %3171 = vst.msk [vmem:[%s6289_s10 + $0x40] sm:$0xff] %vm53_vm0, %v3155_v43 }
 0x9dc   :  { %v3129_v59 = vpop.f32.mrf.mxu1 }
 0x9dd   :  { %v3130_v19 = vadd.f32 %v3129_v59, %v6181_v32 }
 0x9df   :  { %v3156_v48 = vadd.f32 %v3130_v19, %v5758_v62 }
 0x9e1   :  { %3172 = vst.msk [vmem:[%s6289_s10 + $0x48] sm:$0xff] %vm53_vm0, %v3156_v48 }
 0x9e4   :  { %v3132_v57 = vpop.f32.mrf.mxu1 }
 0x9e5   :  { %v3133_v2 = vadd.f32 %v3132_v57, %v6181_v32 }
 0x9e7   :  { %v3157_v20 = vadd.f32 %v3133_v2, %v5771_v58 }
 0x9e9   :  { %3173 = vst.msk [vmem:[%s6289_s10 + $0x50] sm:$0xff] %vm53_vm0, %v3157_v20 }
 0x9ec   :  { %v3134_v10 = vpop.f32.mrf.mxu1 }
 0x9ed   :  { %v3135_v4 = vadd.f32 %v3134_v10, %v6181_v32 }
 0x9ef   :  { %v3158_v62 = vadd.f32 %v3135_v4, %v5782_v24 }
 0x9f1   :  { %3174 = vst.msk [vmem:[%s6289_s10 + $0x58] sm:$0xff] %vm53_vm0, %v3158_v62 }
 0x9f4   :  { %v3137_v37 = vpop.f32.mrf.mxu1 }
 0x9f5   :  { %v3138_v8 = vadd.f32 %v3137_v37, %v6181_v32 }
 0x9f7   :  { %v3159_v58 = vadd.f32 %v3138_v8, %v5794_v6 }
 0x9f9   :  { %3175 = vst.msk [vmem:[%s6289_s10 + $0x60] sm:$0xff] %vm53_vm0, %v3159_v58 }
 0x9fc   :  { %v3139_v31 = vpop.f32.mrf.mxu1 }
 0x9fd   :  { %v3140_v46 = vadd.f32 %v3139_v31, %v6181_v32 }
 0x9ff   :  { %v3160_v24 = vadd.f32 %v3140_v46, %v5798_v33 }
 0xa01   :  { %3176 = vst.msk [vmem:[%s6289_s10 + $0x68] sm:$0xff] %vm53_vm0, %v3160_v24 }
 0xa04   :  { %v3142_v7 = vpop.f32.mrf.mxu1 }
 0xa05   :  { %v3143_v47 = vadd.f32 %v3142_v7, %v6181_v32 }
 0xa07   :  { %v3161_v6 = vadd.f32 %v3143_v47, %v5809_v25 }
 0xa09   :  { %3177 = vst.msk [vmem:[%s6289_s10 + $0x70] sm:$0xff] %vm53_vm0, %v3161_v6 }
 0xa0c   :  { %v3144_v16 = vpop.f32.mrf.mxu1 }
 0xa0d   :  { %v3145_v54 = vadd.f32 %v3144_v16, %v6181_v32 }
 0xa0f   :  { %v3162_v33 = vadd.f32 %v3145_v54, %v5815_v39 }
 0xa11   :  { %3178 = vst.msk [vmem:[%s6289_s10 + $0x78] sm:$0xff] %vm53_vm0, %v3162_v33 }

</bundles_post_ra>
